<compile_context>
chip_gen: v5e
topology: v5e:2x2
jax: 0.10.0
libtpu: 0.0.40
codegen_flags: <defaults>
</compile_context>

<pallas_src>
import functools

import jax
import jax.numpy as jnp
from jax.experimental import pallas as pl
from jax.experimental.pallas import tpu as pltpu

EPS = 1e-7
LANES = 128


def _safe_pow(x, p):
    # x >= 0 always here; pow(x, p) = exp(p * log(x)) with a guard at x == 0.
    x_safe = jnp.where(x > 0.0, x, 1.0)
    return jnp.where(x > 0.0, jnp.exp(p * jnp.log(x_safe)), 0.0)


def _siou_dfl_kernel(box_ref, anc_ref, pd_ref, w_ref, iou_out, dfl_out, *, reg_max):
    # Output blocks are resident across the inner ("arbitrary") grid axis:
    # initialize them once per core, accumulate every step.
    @pl.when(pl.program_id(1) == 0)
    def _():
        iou_out[...] = jnp.zeros_like(iou_out)
        dfl_out[...] = jnp.zeros_like(dfl_out)

    f32 = jnp.float32
    px1 = box_ref[0].astype(f32)
    py1 = box_ref[1].astype(f32)
    px2 = box_ref[2].astype(f32)
    py2 = box_ref[3].astype(f32)
    tx1 = box_ref[4].astype(f32)
    ty1 = box_ref[5].astype(f32)
    tx2 = box_ref[6].astype(f32)
    ty2 = box_ref[7].astype(f32)
    w = w_ref[...].astype(f32)                      # (tile_rows, 128)

    pw = px2 - px1
    ph = py2 - py1
    tw = tx2 - tx1
    th = ty2 - ty1
    pcx = (px1 + px2) * 0.5
    pcy = (py1 + py2) * 0.5
    tcx = (tx1 + tx2) * 0.5
    tcy = (ty1 + ty2) * 0.5

    inter_w = jnp.maximum(jnp.minimum(px2, tx2) - jnp.maximum(px1, tx1), 0.0)
    inter_h = jnp.maximum(jnp.minimum(py2, ty2) - jnp.maximum(py1, ty1), 0.0)
    inter = inter_w * inter_h
    union = pw * ph + tw * th - inter + EPS
    iou = inter * pl.reciprocal(union, approx=True)

    dx = tcx - pcx
    dy = tcy - pcy
    dist = jnp.sqrt(dx * dx + dy * dy) + EPS
    inv_dist = pl.reciprocal(dist, approx=True)

    ex1 = jnp.minimum(px1, tx1)
    ey1 = jnp.minimum(py1, ty1)
    ex2 = jnp.maximum(px2, tx2)
    ey2 = jnp.maximum(py2, ty2)
    ew = ex2 - ex1 + EPS
    eh = ey2 - ey1 + EPS

    # angle_cost = 1 - 2*sin^2(arcsin(z) - pi/4) == 1 - (z - sqrt(1 - z^2))^2
    # (exact trig identity; avoids arcsin/sin inside the kernel)
    z = jnp.abs(dx) * inv_dist
    s = z - jnp.sqrt(jnp.maximum(1.0 - z * z, 0.0))
    angle_cost = 1.0 - s * s

    distance_cost = 2.0 - 2.0 * jnp.exp(-dist * jax.lax.rsqrt(ew * ew + eh * eh))

    wr_p = pw * pl.reciprocal(ph + EPS, approx=True)
    wr_t = tw * pl.reciprocal(th + EPS, approx=True)
    wh_ratio_loss = _safe_pow(1.0 - jnp.exp(-jnp.abs(wr_p - wr_t)), 0.6)
    # EPS in the max() denominators keeps degenerate / padded rows finite
    # (weight==0 rows must not produce NaN now that the fg select is folded in).
    w_loss = jnp.abs(pw - tw) * pl.reciprocal(jnp.maximum(pw, tw) + EPS, approx=True)
    h_loss = jnp.abs(ph - th) * pl.reciprocal(jnp.maximum(ph, th) + EPS, approx=True)
    shape_cost = (_safe_pow(1.0 - jnp.exp(-w_loss), 0.9) +
                  _safe_pow(1.0 - jnp.exp(-h_loss), 0.9))

    siou = iou - angle_cost - distance_cost - 0.5 * (wh_ratio_loss + shape_cost)
    siou = jnp.clip(siou, -1.0, 1.0)

    iou_out[...] = iou_out[...] + ((1.0 - siou) * w)[None]

    # ---- DFL (distribution focal loss) ----
    ax = anc_ref[0].astype(f32)
    ay = anc_ref[1].astype(f32)
    hi = float(reg_max - 1) - 0.01
    targets = (jnp.clip(ax - tx1, 0.0, hi),
               jnp.clip(ay - ty1, 0.0, hi),
               jnp.clip(tx2 - ax, 0.0, hi),
               jnp.clip(ty2 - ay, 0.0, hi))

    dfl_acc = jnp.zeros_like(ax)
    for j in range(4):
        base = j * reg_max
        t = targets[j]
        tl = jnp.floor(t)
        w_left = tl + 1.0 - t
        w_right = 1.0 - w_left

        # max over bins: pure element-wise plane folding (no cross-lane work)
        m = pd_ref[base].astype(f32)
        for k in range(1, reg_max):
            m = jnp.maximum(m, pd_ref[base + k].astype(f32))

        # single fused pass: softmax denominator + picked-logit gather
        # (lse - logit_l)*wl + (lse - logit_r)*wr == lse - (wl*logit_l + wr*logit_r)
        esum = jnp.zeros_like(m)
        picked = jnp.zeros_like(m)
        for k in range(reg_max):
            lk = pd_ref[base + k].astype(f32)
            esum = esum + jnp.exp(lk - m)
            sel = jnp.where(tl == float(k), w_left, 0.0)
            if k > 0:
                sel = sel + jnp.where(tl == float(k - 1), w_right, 0.0)
            picked = picked + sel * lk

        lse = m + jnp.log(esum)
        dfl_acc = dfl_acc + (lse - picked)

    dfl_out[...] = dfl_out[...] + (dfl_acc * 0.25 * w)[None]   # mean over 4 sides


def siou_bbox_loss(pred_dist, pred_bboxes, anchor_points, target_bboxes,
                   target_scores, target_scores_sum, fg_mask,
                   reg_max=16, tile_rows=16, num_cores=2):
    B, A, _ = pred_bboxes.shape
    N = B * A

    # ---- lane-dense layout plumbing (wrapper-side transposes) ----
    boxes = jnp.concatenate(
        [pred_bboxes.reshape(N, 4), target_bboxes.reshape(N, 4)], axis=-1).T    # (8, N)
    anc = jnp.broadcast_to(anchor_points[None], (B, A, 2)).reshape(N, 2).T      # (2, N)
    pd = pred_dist.reshape(N, 4 * reg_max).T                                    # (4*reg_max, N)
    # Fold target_scores.sum(-1) and fg_mask into a single per-anchor weight;
    # removes the [N, C] and [N, 1] kernel inputs entirely.
    weight = (target_scores.sum(-1) * fg_mask.astype(target_scores.dtype)).reshape(N)

    rows = -(-N // LANES)                                    # anchors / 128, rounded up
    tile_rows = min(tile_rows, max(8, -(-rows // num_cores)))
    tile_rows = -(-tile_rows // 8) * 8                       # multiple of 8 sublanes
    blocks_per_core = -(-rows // (tile_rows * num_cores))
    R = blocks_per_core * tile_rows * num_cores
    n_pad = R * LANES
    pad = n_pad - N
    if pad:
        boxes = jnp.pad(boxes, ((0, 0), (0, pad)))
        anc = jnp.pad(anc, ((0, 0), (0, pad)))
        pd = jnp.pad(pd, ((0, 0), (0, pad)))
        weight = jnp.pad(weight, ((0, pad),))                # padded rows: weight == 0

    boxes = boxes.reshape(8, R, LANES)
    anc = anc.reshape(2, R, LANES)
    pd = pd.reshape(4 * reg_max, R, LANES)
    weight = weight.reshape(R, LANES)

    T = blocks_per_core
    kernel = functools.partial(_siou_dfl_kernel, reg_max=reg_max)
    iou_part, dfl_part = pl.pallas_call(
        kernel,
        out_shape=(jax.ShapeDtypeStruct((num_cores, tile_rows, LANES), jnp.float32),
                   jax.ShapeDtypeStruct((num_cores, tile_rows, LANES), jnp.float32)),
        grid_spec=pltpu.PrefetchScalarGridSpec(
            num_scalar_prefetch=0,
            grid=(num_cores, T),
            in_specs=[
                pl.BlockSpec((8, tile_rows, LANES), lambda c, i: (0, c * T + i, 0)),
                pl.BlockSpec((2, tile_rows, LANES), lambda c, i: (0, c * T + i, 0)),
                pl.BlockSpec((4 * reg_max, tile_rows, LANES), lambda c, i: (0, c * T + i, 0)),
                pl.BlockSpec((tile_rows, LANES), lambda c, i: (c * T + i, 0)),
            ],
            out_specs=[
                pl.BlockSpec((1, tile_rows, LANES), lambda c, i: (c, 0, 0)),
                pl.BlockSpec((1, tile_rows, LANES), lambda c, i: (c, 0, 0)),
            ],
        ),
        compiler_params=pltpu.CompilerParams(
            dimension_semantics=("parallel", "arbitrary")),
    )(boxes, anc, pd, weight)

    tss = jnp.asarray(target_scores_sum, jnp.float32)
    return jnp.sum(iou_part) / tss, jnp.sum(dfl_part) / tss


# ---------------- pure-JAX reference (mirrors the PyTorch code) ----------------
def _ref_loss(pred_dist, pred_bboxes, anchor_points, target_bboxes,
              target_scores, target_scores_sum, fg_mask, reg_max=16):
    B, A, _ = pred_bboxes.shape
    N = B * A
    pb = pred_bboxes.reshape(N, 4).astype(jnp.float32)
    tb = target_bboxes.reshape(N, 4).astype(jnp.float32)
    fg = fg_mask.reshape(N).astype(bool)
    weight = target_scores.reshape(N, -1).sum(-1)

    pcx = (pb[:, 0] + pb[:, 2]) / 2; pcy = (pb[:, 1] + pb[:, 3]) / 2
    pw = pb[:, 2] - pb[:, 0]; ph = pb[:, 3] - pb[:, 1]
    tcx = (tb[:, 0] + tb[:, 2]) / 2; tcy = (tb[:, 1] + tb[:, 3]) / 2
    tw = tb[:, 2] - tb[:, 0]; th = tb[:, 3] - tb[:, 1]
    inter = (jnp.clip(jnp.minimum(pb[:, 2], tb[:, 2]) - jnp.maximum(pb[:, 0], tb[:, 0]), 0) *
             jnp.clip(jnp.minimum(pb[:, 3], tb[:, 3]) - jnp.maximum(pb[:, 1], tb[:, 1]), 0))
    union = pw * ph + tw * th - inter + EPS
    iou = inter / union
    dx = tcx - pcx; dy = tcy - pcy
    dist = jnp.sqrt(dx ** 2 + dy ** 2) + EPS
    ew = jnp.maximum(pb[:, 2], tb[:, 2]) - jnp.minimum(pb[:, 0], tb[:, 0]) + EPS
    eh = jnp.maximum(pb[:, 3], tb[:, 3]) - jnp.minimum(pb[:, 1], tb[:, 1]) + EPS
    angle_cost = 1 - 2 * jnp.sin(jnp.arcsin(jnp.abs(dx) / dist) - jnp.pi / 4) ** 2
    distance_cost = 2 - 2 * jnp.exp(-dist / jnp.sqrt(ew ** 2 + eh ** 2))
    wh_ratio_loss = jnp.power(1 - jnp.exp(-jnp.abs(pw / (ph + EPS) - tw / (th + EPS))), 0.6)
    w_loss = jnp.abs(pw - tw) / jnp.maximum(pw, tw)
    h_loss = jnp.abs(ph - th) / jnp.maximum(ph, th)
    shape_cost = jnp.power(1 - jnp.exp(-w_loss), 0.9) + jnp.power(1 - jnp.exp(-h_loss), 0.9)
    siou = jnp.clip(iou - angle_cost - distance_cost - 0.5 * (wh_ratio_loss + shape_cost), -1.0, 1.0)
    loss_iou = jnp.sum(jnp.where(fg, (1.0 - siou) * weight, 0.0)) / target_scores_sum

    anc = jnp.broadcast_to(anchor_points[None], (B, A, 2)).reshape(N, 2)
    hi = reg_max - 1 - 0.01
    ltrb = jnp.clip(jnp.concatenate([anc - tb[:, :2], tb[:, 2:] - anc], -1), 0.0, hi)
    logits = pred_dist.reshape(N, 4, reg_max).astype(jnp.float32)
    tl = jnp.floor(ltrb)
    wl = tl + 1.0 - ltrb
    wr = 1.0 - wl
    lse = jax.nn.logsumexp(logits, axis=-1)
    logit_l = jnp.take_along_axis(logits, tl.astype(jnp.int32)[..., None], -1)[..., 0]
    logit_r = jnp.take_along_axis(logits, (tl + 1).astype(jnp.int32)[..., None], -1)[..., 0]
    dfl = ((lse - logit_l) * wl + (lse - logit_r) * wr).mean(-1)
    loss_dfl = jnp.sum(jnp.where(fg, dfl * weight, 0.0)) / target_scores_sum
    return loss_iou, loss_dfl


if __name__ == "__main__":
    key = jax.random.PRNGKey(0)
    B, A, C, reg_max = 2, 64, 4, 16
    ks = jax.random.split(key, 8)

    def make_boxes(k):
        kc, kw = jax.random.split(k)
        cxy = jax.random.uniform(kc, (B, A, 2), minval=3.0, maxval=13.0)
        wh = jax.random.uniform(kw, (B, A, 2), minval=1.0, maxval=6.0)
        return jnp.concatenate([cxy - wh / 2, cxy + wh / 2], axis=-1)

    pred_bboxes = make_boxes(ks[0])
    target_bboxes = make_boxes(ks[1])
    pred_dist = jax.random.normal(ks[2], (B, A, 4 * reg_max), jnp.float32)
    target_scores = jax.random.uniform(ks[3], (B, A, C))
    fg_mask = jax.random.bernoulli(ks[4], 0.5, (B, A))
    anchor_points = jax.random.uniform(ks[5], (A, 2), minval=2.0, maxval=14.0)
    target_scores_sum = jnp.maximum(target_scores.sum(), 1.0)

    loss_iou, loss_dfl = siou_bbox_loss(
        pred_dist, pred_bboxes, anchor_points, target_bboxes,
        target_scores, target_scores_sum, fg_mask, reg_max=reg_max)
    jax.block_until_ready((loss_iou, loss_dfl))

    r_iou, r_dfl = _ref_loss(
        pred_dist, pred_bboxes, anchor_points, target_bboxes,
        target_scores, target_scores_sum, fg_mask, reg_max=reg_max)

    # Slightly looser than f32-exact to absorb approx-reciprocal / rsqrt error.
    assert jnp.allclose(loss_iou, r_iou, rtol=3e-3, atol=3e-3), (loss_iou, r_iou)
    assert jnp.allclose(loss_dfl, r_dfl, rtol=3e-3, atol=3e-3), (loss_dfl, r_dfl)
    print("KERNEL_OK")
</pallas_src>

<mosaic_0001>
module attributes {stable_mosaic.version = 11 : i64} {
  func.func @_siou_dfl_kernel(%arg0: i32, %arg1: i32, %arg2: memref<8x8x128xf32, #tpu.memory_space<vmem>>, %arg3: memref<2x8x128xf32, #tpu.memory_space<vmem>>, %arg4: memref<64x8x128xf32, #tpu.memory_space<vmem>>, %arg5: memref<8x128xf32, #tpu.memory_space<vmem>>, %arg6: memref<1x8x128xf32, #tpu.memory_space<vmem>>, %arg7: memref<1x8x128xf32, #tpu.memory_space<vmem>>) attributes {dimension_semantics = [#tpu.dimension_semantics<parallel>, #tpu.dimension_semantics<arbitrary>], iteration_bounds = array<i64: 2, 1>, scalar_prefetch = 0 : i64, scratch_operands = 0 : i64, tpu.core_type = #tpu.core_type<tc>, window_params = [{transform_indices = @transform_0, window_bounds = array<i64: 8, 8, 128>}, {transform_indices = @transform_1, window_bounds = array<i64: 2, 8, 128>}, {transform_indices = @transform_2, window_bounds = array<i64: 64, 8, 128>}, {transform_indices = @transform_3, window_bounds = array<i64: 8, 128>}, {transform_indices = @transform_4, window_bounds = array<i64: 1, 8, 128>}, {transform_indices = @transform_5, window_bounds = array<i64: 1, 8, 128>}]} {
    %c0_i32 = arith.constant 0 : i32
    %0 = arith.cmpi eq, %arg1, %c0_i32 : i32
    %1 = arith.extui %0 : i1 to i32
    %c0_i32_0 = arith.constant 0 : i32
    %2 = arith.cmpi ne, %1, %c0_i32_0 : i32
    scf.if %2 {
      %cst_683 = arith.constant 0.000000e+00 : f32
      %1463 = vector.broadcast %cst_683 : f32 to vector<1x8x128xf32>
      %c0_684 = arith.constant 0 : index
      %c0_685 = arith.constant 0 : index
      %c0_686 = arith.constant 0 : index
      %1464 = vector.load %arg6[%c0_684, %c0_685, %c0_686] : memref<1x8x128xf32, #tpu.memory_space<vmem>>, vector<1x8x128xf32>
      tpu.vector_store %arg6[%c0_684, %c0_685, %c0_686], %1463 {strides = array<i32>} : memref<1x8x128xf32, #tpu.memory_space<vmem>>, vector<1x8x128xf32>,
      %cst_687 = arith.constant 0.000000e+00 : f32
      %1465 = vector.broadcast %cst_687 : f32 to vector<1x8x128xf32>
      %c0_688 = arith.constant 0 : index
      %c0_689 = arith.constant 0 : index
      %c0_690 = arith.constant 0 : index
      %1466 = vector.load %arg7[%c0_688, %c0_689, %c0_690] : memref<1x8x128xf32, #tpu.memory_space<vmem>>, vector<1x8x128xf32>
      tpu.vector_store %arg7[%c0_688, %c0_689, %c0_690], %1465 {strides = array<i32>} : memref<1x8x128xf32, #tpu.memory_space<vmem>>, vector<1x8x128xf32>,
    } else {
    }
    %c0 = arith.constant 0 : index
    %c0_1 = arith.constant 0 : index
    %c0_2 = arith.constant 0 : index
    %3 = vector.load %arg2[%c0, %c0_1, %c0_2] : memref<8x8x128xf32, #tpu.memory_space<vmem>>, vector<1x8x128xf32>
    %4 = vector.shape_cast %3 : vector<1x8x128xf32> to vector<8x128xf32>
    %c1 = arith.constant 1 : index
    %c0_3 = arith.constant 0 : index
    %c0_4 = arith.constant 0 : index
    %5 = vector.load %arg2[%c1, %c0_3, %c0_4] : memref<8x8x128xf32, #tpu.memory_space<vmem>>, vector<1x8x128xf32>
    %6 = vector.shape_cast %5 : vector<1x8x128xf32> to vector<8x128xf32>
    %c2 = arith.constant 2 : index
    %c0_5 = arith.constant 0 : index
    %c0_6 = arith.constant 0 : index
    %7 = vector.load %arg2[%c2, %c0_5, %c0_6] : memref<8x8x128xf32, #tpu.memory_space<vmem>>, vector<1x8x128xf32>
    %8 = vector.shape_cast %7 : vector<1x8x128xf32> to vector<8x128xf32>
    %c3 = arith.constant 3 : index
    %c0_7 = arith.constant 0 : index
    %c0_8 = arith.constant 0 : index
    %9 = vector.load %arg2[%c3, %c0_7, %c0_8] : memref<8x8x128xf32, #tpu.memory_space<vmem>>, vector<1x8x128xf32>
    %10 = vector.shape_cast %9 : vector<1x8x128xf32> to vector<8x128xf32>
    %c4 = arith.constant 4 : index
    %c0_9 = arith.constant 0 : index
    %c0_10 = arith.constant 0 : index
    %11 = vector.load %arg2[%c4, %c0_9, %c0_10] : memref<8x8x128xf32, #tpu.memory_space<vmem>>, vector<1x8x128xf32>
    %12 = vector.shape_cast %11 : vector<1x8x128xf32> to vector<8x128xf32>
    %c5 = arith.constant 5 : index
    %c0_11 = arith.constant 0 : index
    %c0_12 = arith.constant 0 : index
    %13 = vector.load %arg2[%c5, %c0_11, %c0_12] : memref<8x8x128xf32, #tpu.memory_space<vmem>>, vector<1x8x128xf32>
    %14 = vector.shape_cast %13 : vector<1x8x128xf32> to vector<8x128xf32>
    %c6 = arith.constant 6 : index
    %c0_13 = arith.constant 0 : index
    %c0_14 = arith.constant 0 : index
    %15 = vector.load %arg2[%c6, %c0_13, %c0_14] : memref<8x8x128xf32, #tpu.memory_space<vmem>>, vector<1x8x128xf32>
    %16 = vector.shape_cast %15 : vector<1x8x128xf32> to vector<8x128xf32>
    %c7 = arith.constant 7 : index
    %c0_15 = arith.constant 0 : index
    %c0_16 = arith.constant 0 : index
    %17 = vector.load %arg2[%c7, %c0_15, %c0_16] : memref<8x8x128xf32, #tpu.memory_space<vmem>>, vector<1x8x128xf32>
    %18 = vector.shape_cast %17 : vector<1x8x128xf32> to vector<8x128xf32>
    %c0_17 = arith.constant 0 : index
    %c0_18 = arith.constant 0 : index
    %19 = vector.load %arg5[%c0_17, %c0_18] : memref<8x128xf32, #tpu.memory_space<vmem>>, vector<8x128xf32>
    %20 = arith.subf %8, %4 : vector<8x128xf32>
    %21 = arith.subf %10, %6 : vector<8x128xf32>
    %22 = arith.subf %16, %12 : vector<8x128xf32>
    %23 = arith.subf %18, %14 : vector<8x128xf32>
    %24 = arith.addf %4, %8 : vector<8x128xf32>
    %cst = arith.constant 5.000000e-01 : f32
    %25 = vector.broadcast %cst : f32 to vector<8x128xf32>
    %26 = arith.mulf %24, %25 : vector<8x128xf32>
    %27 = arith.addf %6, %10 : vector<8x128xf32>
    %cst_19 = arith.constant 5.000000e-01 : f32
    %28 = vector.broadcast %cst_19 : f32 to vector<8x128xf32>
    %29 = arith.mulf %27, %28 : vector<8x128xf32>
    %30 = arith.addf %12, %16 : vector<8x128xf32>
    %cst_20 = arith.constant 5.000000e-01 : f32
    %31 = vector.broadcast %cst_20 : f32 to vector<8x128xf32>
    %32 = arith.mulf %30, %31 : vector<8x128xf32>
    %33 = arith.addf %14, %18 : vector<8x128xf32>
    %cst_21 = arith.constant 5.000000e-01 : f32
    %34 = vector.broadcast %cst_21 : f32 to vector<8x128xf32>
    %35 = arith.mulf %33, %34 : vector<8x128xf32>
    %36 = arith.minimumf %8, %16 : vector<8x128xf32>
    %37 = arith.maximumf %4, %12 : vector<8x128xf32>
    %38 = arith.subf %36, %37 : vector<8x128xf32>
    %cst_22 = arith.constant 0.000000e+00 : f32
    %39 = vector.broadcast %cst_22 : f32 to vector<8x128xf32>
    %40 = arith.maximumf %38, %39 : vector<8x128xf32>
    %41 = arith.minimumf %10, %18 : vector<8x128xf32>
    %42 = arith.maximumf %6, %14 : vector<8x128xf32>
    %43 = arith.subf %41, %42 : vector<8x128xf32>
    %cst_23 = arith.constant 0.000000e+00 : f32
    %44 = vector.broadcast %cst_23 : f32 to vector<8x128xf32>
    %45 = arith.maximumf %43, %44 : vector<8x128xf32>
    %46 = arith.mulf %40, %45 : vector<8x128xf32>
    %47 = arith.mulf %20, %21 : vector<8x128xf32>
    %48 = arith.mulf %22, %23 : vector<8x128xf32>
    %49 = arith.addf %47, %48 : vector<8x128xf32>
    %50 = arith.subf %49, %46 : vector<8x128xf32>
    %cst_24 = arith.constant 1.000000e-07 : f32
    %51 = vector.broadcast %cst_24 : f32 to vector<8x128xf32>
    %52 = arith.addf %50, %51 : vector<8x128xf32>
    %53 = tpu.reciprocal %52 {approx = true} : vector<8x128xf32> -> vector<8x128xf32>
    %54 = arith.mulf %46, %53 : vector<8x128xf32>
    %55 = arith.subf %32, %26 : vector<8x128xf32>
    %56 = arith.subf %35, %29 : vector<8x128xf32>
    %57 = arith.mulf %55, %55 : vector<8x128xf32>
    %58 = arith.mulf %56, %56 : vector<8x128xf32>
    %59 = arith.addf %57, %58 : vector<8x128xf32>
    %60 = math.sqrt %59 : vector<8x128xf32>
    %cst_25 = arith.constant 1.000000e-07 : f32
    %61 = vector.broadcast %cst_25 : f32 to vector<8x128xf32>
    %62 = arith.addf %60, %61 : vector<8x128xf32>
    %63 = tpu.reciprocal %62 {approx = true} : vector<8x128xf32> -> vector<8x128xf32>
    %64 = arith.minimumf %4, %12 : vector<8x128xf32>
    %65 = arith.minimumf %6, %14 : vector<8x128xf32>
    %66 = arith.maximumf %8, %16 : vector<8x128xf32>
    %67 = arith.maximumf %10, %18 : vector<8x128xf32>
    %68 = arith.subf %66, %64 : vector<8x128xf32>
    %cst_26 = arith.constant 1.000000e-07 : f32
    %69 = vector.broadcast %cst_26 : f32 to vector<8x128xf32>
    %70 = arith.addf %68, %69 : vector<8x128xf32>
    %71 = arith.subf %67, %65 : vector<8x128xf32>
    %cst_27 = arith.constant 1.000000e-07 : f32
    %72 = vector.broadcast %cst_27 : f32 to vector<8x128xf32>
    %73 = arith.addf %71, %72 : vector<8x128xf32>
    %74 = math.absf %55 : vector<8x128xf32>
    %75 = arith.mulf %74, %63 : vector<8x128xf32>
    %76 = arith.mulf %75, %75 : vector<8x128xf32>
    %cst_28 = arith.constant 1.000000e+00 : f32
    %77 = vector.broadcast %cst_28 : f32 to vector<8x128xf32>
    %78 = arith.subf %77, %76 : vector<8x128xf32>
    %cst_29 = arith.constant 0.000000e+00 : f32
    %79 = vector.broadcast %cst_29 : f32 to vector<8x128xf32>
    %80 = arith.maximumf %78, %79 : vector<8x128xf32>
    %81 = math.sqrt %80 : vector<8x128xf32>
    %82 = arith.subf %75, %81 : vector<8x128xf32>
    %83 = arith.mulf %82, %82 : vector<8x128xf32>
    %cst_30 = arith.constant 1.000000e+00 : f32
    %84 = vector.broadcast %cst_30 : f32 to vector<8x128xf32>
    %85 = arith.subf %84, %83 : vector<8x128xf32>
    %cst_31 = arith.constant 0.000000e+00 : f32
    %86 = vector.broadcast %cst_31 : f32 to vector<8x128xf32>
    %87 = arith.subf %86, %62 : vector<8x128xf32>
    %88 = arith.mulf %70, %70 : vector<8x128xf32>
    %89 = arith.mulf %73, %73 : vector<8x128xf32>
    %90 = arith.addf %88, %89 : vector<8x128xf32>
    %91 = math.rsqrt %90 : vector<8x128xf32>
    %92 = arith.mulf %87, %91 : vector<8x128xf32>
    %93 = math.exp %92 : vector<8x128xf32>
    %cst_32 = arith.constant 2.000000e+00 : f32
    %94 = vector.broadcast %cst_32 : f32 to vector<8x128xf32>
    %95 = arith.mulf %94, %93 : vector<8x128xf32>
    %cst_33 = arith.constant 2.000000e+00 : f32
    %96 = vector.broadcast %cst_33 : f32 to vector<8x128xf32>
    %97 = arith.subf %96, %95 : vector<8x128xf32>
    %cst_34 = arith.constant 1.000000e-07 : f32
    %98 = vector.broadcast %cst_34 : f32 to vector<8x128xf32>
    %99 = arith.addf %21, %98 : vector<8x128xf32>
    %100 = tpu.reciprocal %99 {approx = true} : vector<8x128xf32> -> vector<8x128xf32>
    %101 = arith.mulf %20, %100 : vector<8x128xf32>
    %cst_35 = arith.constant 1.000000e-07 : f32
    %102 = vector.broadcast %cst_35 : f32 to vector<8x128xf32>
    %103 = arith.addf %23, %102 : vector<8x128xf32>
    %104 = tpu.reciprocal %103 {approx = true} : vector<8x128xf32> -> vector<8x128xf32>
    %105 = arith.mulf %22, %104 : vector<8x128xf32>
    %106 = arith.subf %101, %105 : vector<8x128xf32>
    %107 = math.absf %106 : vector<8x128xf32>
    %cst_36 = arith.constant 0.000000e+00 : f32
    %108 = vector.broadcast %cst_36 : f32 to vector<8x128xf32>
    %109 = arith.subf %108, %107 : vector<8x128xf32>
    %110 = math.exp %109 : vector<8x128xf32>
    %cst_37 = arith.constant 1.000000e+00 : f32
    %111 = vector.broadcast %cst_37 : f32 to vector<8x128xf32>
    %112 = arith.subf %111, %110 : vector<8x128xf32>
    %cst_38 = arith.constant 0.000000e+00 : f32
    %113 = vector.broadcast %cst_38 : f32 to vector<8x128xf32>
    %114 = arith.cmpf ogt, %112, %113 : vector<8x128xf32>
    %cst_39 = arith.constant 1.000000e+00 : f32
    %115 = vector.broadcast %cst_39 : f32 to vector<8x128xf32>
    %116 = arith.select %114, %112, %115 : vector<8x128xi1>, vector<8x128xf32>
    %cst_40 = arith.constant 0.000000e+00 : f32
    %117 = vector.broadcast %cst_40 : f32 to vector<8x128xf32>
    %118 = arith.cmpf ogt, %112, %117 : vector<8x128xf32>
    %119 = math.log %116 : vector<8x128xf32>
    %cst_41 = arith.constant 6.000000e-01 : f32
    %120 = vector.broadcast %cst_41 : f32 to vector<8x128xf32>
    %121 = arith.mulf %120, %119 : vector<8x128xf32>
    %122 = math.exp %121 : vector<8x128xf32>
    %cst_42 = arith.constant 0.000000e+00 : f32
    %123 = vector.broadcast %cst_42 : f32 to vector<8x128xf32>
    %124 = arith.select %118, %122, %123 : vector<8x128xi1>, vector<8x128xf32>
    %125 = arith.subf %20, %22 : vector<8x128xf32>
    %126 = math.absf %125 : vector<8x128xf32>
    %127 = arith.maximumf %20, %22 : vector<8x128xf32>
    %cst_43 = arith.constant 1.000000e-07 : f32
    %128 = vector.broadcast %cst_43 : f32 to vector<8x128xf32>
    %129 = arith.addf %127, %128 : vector<8x128xf32>
    %130 = tpu.reciprocal %129 {approx = true} : vector<8x128xf32> -> vector<8x128xf32>
    %131 = arith.mulf %126, %130 : vector<8x128xf32>
    %132 = arith.subf %21, %23 : vector<8x128xf32>
    %133 = math.absf %132 : vector<8x128xf32>
    %134 = arith.maximumf %21, %23 : vector<8x128xf32>
    %cst_44 = arith.constant 1.000000e-07 : f32
    %135 = vector.broadcast %cst_44 : f32 to vector<8x128xf32>
    %136 = arith.addf %134, %135 : vector<8x128xf32>
    %137 = tpu.reciprocal %136 {approx = true} : vector<8x128xf32> -> vector<8x128xf32>
    %138 = arith.mulf %133, %137 : vector<8x128xf32>
    %cst_45 = arith.constant 0.000000e+00 : f32
    %139 = vector.broadcast %cst_45 : f32 to vector<8x128xf32>
    %140 = arith.subf %139, %131 : vector<8x128xf32>
    %141 = math.exp %140 : vector<8x128xf32>
    %cst_46 = arith.constant 1.000000e+00 : f32
    %142 = vector.broadcast %cst_46 : f32 to vector<8x128xf32>
    %143 = arith.subf %142, %141 : vector<8x128xf32>
    %cst_47 = arith.constant 0.000000e+00 : f32
    %144 = vector.broadcast %cst_47 : f32 to vector<8x128xf32>
    %145 = arith.cmpf ogt, %143, %144 : vector<8x128xf32>
    %cst_48 = arith.constant 1.000000e+00 : f32
    %146 = vector.broadcast %cst_48 : f32 to vector<8x128xf32>
    %147 = arith.select %145, %143, %146 : vector<8x128xi1>, vector<8x128xf32>
    %cst_49 = arith.constant 0.000000e+00 : f32
    %148 = vector.broadcast %cst_49 : f32 to vector<8x128xf32>
    %149 = arith.cmpf ogt, %143, %148 : vector<8x128xf32>
    %150 = math.log %147 : vector<8x128xf32>
    %cst_50 = arith.constant 0.899999976 : f32
    %151 = vector.broadcast %cst_50 : f32 to vector<8x128xf32>
    %152 = arith.mulf %151, %150 : vector<8x128xf32>
    %153 = math.exp %152 : vector<8x128xf32>
    %cst_51 = arith.constant 0.000000e+00 : f32
    %154 = vector.broadcast %cst_51 : f32 to vector<8x128xf32>
    %155 = arith.select %149, %153, %154 : vector<8x128xi1>, vector<8x128xf32>
    %cst_52 = arith.constant 0.000000e+00 : f32
    %156 = vector.broadcast %cst_52 : f32 to vector<8x128xf32>
    %157 = arith.subf %156, %138 : vector<8x128xf32>
    %158 = math.exp %157 : vector<8x128xf32>
    %cst_53 = arith.constant 1.000000e+00 : f32
    %159 = vector.broadcast %cst_53 : f32 to vector<8x128xf32>
    %160 = arith.subf %159, %158 : vector<8x128xf32>
    %cst_54 = arith.constant 0.000000e+00 : f32
    %161 = vector.broadcast %cst_54 : f32 to vector<8x128xf32>
    %162 = arith.cmpf ogt, %160, %161 : vector<8x128xf32>
    %cst_55 = arith.constant 1.000000e+00 : f32
    %163 = vector.broadcast %cst_55 : f32 to vector<8x128xf32>
    %164 = arith.select %162, %160, %163 : vector<8x128xi1>, vector<8x128xf32>
    %cst_56 = arith.constant 0.000000e+00 : f32
    %165 = vector.broadcast %cst_56 : f32 to vector<8x128xf32>
    %166 = arith.cmpf ogt, %160, %165 : vector<8x128xf32>
    %167 = math.log %164 : vector<8x128xf32>
    %cst_57 = arith.constant 0.899999976 : f32
    %168 = vector.broadcast %cst_57 : f32 to vector<8x128xf32>
    %169 = arith.mulf %168, %167 : vector<8x128xf32>
    %170 = math.exp %169 : vector<8x128xf32>
    %cst_58 = arith.constant 0.000000e+00 : f32
    %171 = vector.broadcast %cst_58 : f32 to vector<8x128xf32>
    %172 = arith.select %166, %170, %171 : vector<8x128xi1>, vector<8x128xf32>
    %173 = arith.addf %155, %172 : vector<8x128xf32>
    %174 = arith.subf %54, %85 : vector<8x128xf32>
    %175 = arith.subf %174, %97 : vector<8x128xf32>
    %176 = arith.addf %124, %173 : vector<8x128xf32>
    %cst_59 = arith.constant 5.000000e-01 : f32
    %177 = vector.broadcast %cst_59 : f32 to vector<8x128xf32>
    %178 = arith.mulf %177, %176 : vector<8x128xf32>
    %179 = arith.subf %175, %178 : vector<8x128xf32>
    %cst_60 = arith.constant -1.000000e+00 : f32
    %cst_61 = arith.constant 1.000000e+00 : f32
    %180 = vector.broadcast %cst_60 : f32 to vector<8x128xf32>
    %181 = arith.maximumf %180, %179 : vector<8x128xf32>
    %182 = vector.broadcast %cst_61 : f32 to vector<8x128xf32>
    %183 = arith.minimumf %182, %181 : vector<8x128xf32>
    %c0_62 = arith.constant 0 : index
    %c0_63 = arith.constant 0 : index
    %c0_64 = arith.constant 0 : index
    %184 = vector.load %arg6[%c0_62, %c0_63, %c0_64] : memref<1x8x128xf32, #tpu.memory_space<vmem>>, vector<1x8x128xf32>
    %cst_65 = arith.constant 1.000000e+00 : f32
    %185 = vector.broadcast %cst_65 : f32 to vector<8x128xf32>
    %186 = arith.subf %185, %183 : vector<8x128xf32>
    %187 = arith.mulf %186, %19 : vector<8x128xf32>
    %188 = vector.shape_cast %187 : vector<8x128xf32> to vector<1x8x128xf32>
    %189 = arith.addf %184, %188 : vector<1x8x128xf32>
    %c0_66 = arith.constant 0 : index
    %c0_67 = arith.constant 0 : index
    %c0_68 = arith.constant 0 : index
    %190 = vector.load %arg6[%c0_66, %c0_67, %c0_68] : memref<1x8x128xf32, #tpu.memory_space<vmem>>, vector<1x8x128xf32>
    tpu.vector_store %arg6[%c0_66, %c0_67, %c0_68], %189 {strides = array<i32>} : memref<1x8x128xf32, #tpu.memory_space<vmem>>, vector<1x8x128xf32>,
    %c0_69 = arith.constant 0 : index
    %c0_70 = arith.constant 0 : index
    %c0_71 = arith.constant 0 : index
    %191 = vector.load %arg3[%c0_69, %c0_70, %c0_71] : memref<2x8x128xf32, #tpu.memory_space<vmem>>, vector<1x8x128xf32>
    %192 = vector.shape_cast %191 : vector<1x8x128xf32> to vector<8x128xf32>
    %c1_72 = arith.constant 1 : index
    %c0_73 = arith.constant 0 : index
    %c0_74 = arith.constant 0 : index
    %193 = vector.load %arg3[%c1_72, %c0_73, %c0_74] : memref<2x8x128xf32, #tpu.memory_space<vmem>>, vector<1x8x128xf32>
    %194 = vector.shape_cast %193 : vector<1x8x128xf32> to vector<8x128xf32>
    %195 = arith.subf %192, %12 : vector<8x128xf32>
    %cst_75 = arith.constant 0.000000e+00 : f32
    %cst_76 = arith.constant 1.499000e+01 : f32
    %196 = vector.broadcast %cst_75 : f32 to vector<8x128xf32>
    %197 = arith.maximumf %196, %195 : vector<8x128xf32>
    %198 = vector.broadcast %cst_76 : f32 to vector<8x128xf32>
    %199 = arith.minimumf %198, %197 : vector<8x128xf32>
    %200 = arith.subf %194, %14 : vector<8x128xf32>
    %cst_77 = arith.constant 0.000000e+00 : f32
    %cst_78 = arith.constant 1.499000e+01 : f32
    %201 = vector.broadcast %cst_77 : f32 to vector<8x128xf32>
    %202 = arith.maximumf %201, %200 : vector<8x128xf32>
    %203 = vector.broadcast %cst_78 : f32 to vector<8x128xf32>
    %204 = arith.minimumf %203, %202 : vector<8x128xf32>
    %205 = arith.subf %16, %192 : vector<8x128xf32>
    %cst_79 = arith.constant 0.000000e+00 : f32
    %cst_80 = arith.constant 1.499000e+01 : f32
    %206 = vector.broadcast %cst_79 : f32 to vector<8x128xf32>
    %207 = arith.maximumf %206, %205 : vector<8x128xf32>
    %208 = vector.broadcast %cst_80 : f32 to vector<8x128xf32>
    %209 = arith.minimumf %208, %207 : vector<8x128xf32>
    %210 = arith.subf %18, %194 : vector<8x128xf32>
    %cst_81 = arith.constant 0.000000e+00 : f32
    %cst_82 = arith.constant 1.499000e+01 : f32
    %211 = vector.broadcast %cst_81 : f32 to vector<8x128xf32>
    %212 = arith.maximumf %211, %210 : vector<8x128xf32>
    %213 = vector.broadcast %cst_82 : f32 to vector<8x128xf32>
    %214 = arith.minimumf %213, %212 : vector<8x128xf32>
    %cst_83 = arith.constant 0.000000e+00 : f32
    %215 = vector.broadcast %cst_83 : f32 to vector<8x128xf32>
    %216 = math.floor %199 : vector<8x128xf32>
    %cst_84 = arith.constant 1.000000e+00 : f32
    %217 = vector.broadcast %cst_84 : f32 to vector<8x128xf32>
    %218 = arith.addf %216, %217 : vector<8x128xf32>
    %219 = arith.subf %218, %199 : vector<8x128xf32>
    %cst_85 = arith.constant 1.000000e+00 : f32
    %220 = vector.broadcast %cst_85 : f32 to vector<8x128xf32>
    %221 = arith.subf %220, %219 : vector<8x128xf32>
    %c0_86 = arith.constant 0 : index
    %c0_87 = arith.constant 0 : index
    %c0_88 = arith.constant 0 : index
    %222 = vector.load %arg4[%c0_86, %c0_87, %c0_88] : memref<64x8x128xf32, #tpu.memory_space<vmem>>, vector<1x8x128xf32>
    %223 = vector.shape_cast %222 : vector<1x8x128xf32> to vector<8x128xf32>
    %c1_89 = arith.constant 1 : index
    %c0_90 = arith.constant 0 : index
    %c0_91 = arith.constant 0 : index
    %224 = vector.load %arg4[%c1_89, %c0_90, %c0_91] : memref<64x8x128xf32, #tpu.memory_space<vmem>>, vector<1x8x128xf32>
    %225 = vector.shape_cast %224 : vector<1x8x128xf32> to vector<8x128xf32>
    %226 = arith.maximumf %223, %225 : vector<8x128xf32>
    %c2_92 = arith.constant 2 : index
    %c0_93 = arith.constant 0 : index
    %c0_94 = arith.constant 0 : index
    %227 = vector.load %arg4[%c2_92, %c0_93, %c0_94] : memref<64x8x128xf32, #tpu.memory_space<vmem>>, vector<1x8x128xf32>
    %228 = vector.shape_cast %227 : vector<1x8x128xf32> to vector<8x128xf32>
    %229 = arith.maximumf %226, %228 : vector<8x128xf32>
    %c3_95 = arith.constant 3 : index
    %c0_96 = arith.constant 0 : index
    %c0_97 = arith.constant 0 : index
    %230 = vector.load %arg4[%c3_95, %c0_96, %c0_97] : memref<64x8x128xf32, #tpu.memory_space<vmem>>, vector<1x8x128xf32>
    %231 = vector.shape_cast %230 : vector<1x8x128xf32> to vector<8x128xf32>
    %232 = arith.maximumf %229, %231 : vector<8x128xf32>
    %c4_98 = arith.constant 4 : index
    %c0_99 = arith.constant 0 : index
    %c0_100 = arith.constant 0 : index
    %233 = vector.load %arg4[%c4_98, %c0_99, %c0_100] : memref<64x8x128xf32, #tpu.memory_space<vmem>>, vector<1x8x128xf32>
    %234 = vector.shape_cast %233 : vector<1x8x128xf32> to vector<8x128xf32>
    %235 = arith.maximumf %232, %234 : vector<8x128xf32>
    %c5_101 = arith.constant 5 : index
    %c0_102 = arith.constant 0 : index
    %c0_103 = arith.constant 0 : index
    %236 = vector.load %arg4[%c5_101, %c0_102, %c0_103] : memref<64x8x128xf32, #tpu.memory_space<vmem>>, vector<1x8x128xf32>
    %237 = vector.shape_cast %236 : vector<1x8x128xf32> to vector<8x128xf32>
    %238 = arith.maximumf %235, %237 : vector<8x128xf32>
    %c6_104 = arith.constant 6 : index
    %c0_105 = arith.constant 0 : index
    %c0_106 = arith.constant 0 : index
    %239 = vector.load %arg4[%c6_104, %c0_105, %c0_106] : memref<64x8x128xf32, #tpu.memory_space<vmem>>, vector<1x8x128xf32>
    %240 = vector.shape_cast %239 : vector<1x8x128xf32> to vector<8x128xf32>
    %241 = arith.maximumf %238, %240 : vector<8x128xf32>
    %c7_107 = arith.constant 7 : index
    %c0_108 = arith.constant 0 : index
    %c0_109 = arith.constant 0 : index
    %242 = vector.load %arg4[%c7_107, %c0_108, %c0_109] : memref<64x8x128xf32, #tpu.memory_space<vmem>>, vector<1x8x128xf32>
    %243 = vector.shape_cast %242 : vector<1x8x128xf32> to vector<8x128xf32>
    %244 = arith.maximumf %241, %243 : vector<8x128xf32>
    %c8 = arith.constant 8 : index
    %c0_110 = arith.constant 0 : index
    %c0_111 = arith.constant 0 : index
    %245 = vector.load %arg4[%c8, %c0_110, %c0_111] : memref<64x8x128xf32, #tpu.memory_space<vmem>>, vector<1x8x128xf32>
    %246 = vector.shape_cast %245 : vector<1x8x128xf32> to vector<8x128xf32>
    %247 = arith.maximumf %244, %246 : vector<8x128xf32>
    %c9 = arith.constant 9 : index
    %c0_112 = arith.constant 0 : index
    %c0_113 = arith.constant 0 : index
    %248 = vector.load %arg4[%c9, %c0_112, %c0_113] : memref<64x8x128xf32, #tpu.memory_space<vmem>>, vector<1x8x128xf32>
    %249 = vector.shape_cast %248 : vector<1x8x128xf32> to vector<8x128xf32>
    %250 = arith.maximumf %247, %249 : vector<8x128xf32>
    %c10 = arith.constant 10 : index
    %c0_114 = arith.constant 0 : index
    %c0_115 = arith.constant 0 : index
    %251 = vector.load %arg4[%c10, %c0_114, %c0_115] : memref<64x8x128xf32, #tpu.memory_space<vmem>>, vector<1x8x128xf32>
    %252 = vector.shape_cast %251 : vector<1x8x128xf32> to vector<8x128xf32>
    %253 = arith.maximumf %250, %252 : vector<8x128xf32>
    %c11 = arith.constant 11 : index
    %c0_116 = arith.constant 0 : index
    %c0_117 = arith.constant 0 : index
    %254 = vector.load %arg4[%c11, %c0_116, %c0_117] : memref<64x8x128xf32, #tpu.memory_space<vmem>>, vector<1x8x128xf32>
    %255 = vector.shape_cast %254 : vector<1x8x128xf32> to vector<8x128xf32>
    %256 = arith.maximumf %253, %255 : vector<8x128xf32>
    %c12 = arith.constant 12 : index
    %c0_118 = arith.constant 0 : index
    %c0_119 = arith.constant 0 : index
    %257 = vector.load %arg4[%c12, %c0_118, %c0_119] : memref<64x8x128xf32, #tpu.memory_space<vmem>>, vector<1x8x128xf32>
    %258 = vector.shape_cast %257 : vector<1x8x128xf32> to vector<8x128xf32>
    %259 = arith.maximumf %256, %258 : vector<8x128xf32>
    %c13 = arith.constant 13 : index
    %c0_120 = arith.constant 0 : index
    %c0_121 = arith.constant 0 : index
    %260 = vector.load %arg4[%c13, %c0_120, %c0_121] : memref<64x8x128xf32, #tpu.memory_space<vmem>>, vector<1x8x128xf32>
    %261 = vector.shape_cast %260 : vector<1x8x128xf32> to vector<8x128xf32>
    %262 = arith.maximumf %259, %261 : vector<8x128xf32>
    %c14 = arith.constant 14 : index
    %c0_122 = arith.constant 0 : index
    %c0_123 = arith.constant 0 : index
    %263 = vector.load %arg4[%c14, %c0_122, %c0_123] : memref<64x8x128xf32, #tpu.memory_space<vmem>>, vector<1x8x128xf32>
    %264 = vector.shape_cast %263 : vector<1x8x128xf32> to vector<8x128xf32>
    %265 = arith.maximumf %262, %264 : vector<8x128xf32>
    %c15 = arith.constant 15 : index
    %c0_124 = arith.constant 0 : index
    %c0_125 = arith.constant 0 : index
    %266 = vector.load %arg4[%c15, %c0_124, %c0_125] : memref<64x8x128xf32, #tpu.memory_space<vmem>>, vector<1x8x128xf32>
    %267 = vector.shape_cast %266 : vector<1x8x128xf32> to vector<8x128xf32>
    %268 = arith.maximumf %265, %267 : vector<8x128xf32>
    %cst_126 = arith.constant 0.000000e+00 : f32
    %269 = vector.broadcast %cst_126 : f32 to vector<8x128xf32>
    %cst_127 = arith.constant 0.000000e+00 : f32
    %270 = vector.broadcast %cst_127 : f32 to vector<8x128xf32>
    %c0_128 = arith.constant 0 : index
    %c0_129 = arith.constant 0 : index
    %c0_130 = arith.constant 0 : index
    %271 = vector.load %arg4[%c0_128, %c0_129, %c0_130] : memref<64x8x128xf32, #tpu.memory_space<vmem>>, vector<1x8x128xf32>
    %272 = vector.shape_cast %271 : vector<1x8x128xf32> to vector<8x128xf32>
    %273 = arith.subf %272, %268 : vector<8x128xf32>
    %274 = math.exp %273 : vector<8x128xf32>
    %275 = arith.addf %269, %274 : vector<8x128xf32>
    %cst_131 = arith.constant 0.000000e+00 : f32
    %276 = vector.broadcast %cst_131 : f32 to vector<8x128xf32>
    %277 = arith.cmpf oeq, %216, %276 : vector<8x128xf32>
    %cst_132 = arith.constant 0.000000e+00 : f32
    %278 = vector.broadcast %cst_132 : f32 to vector<8x128xf32>
    %279 = arith.select %277, %219, %278 : vector<8x128xi1>, vector<8x128xf32>
    %280 = arith.mulf %279, %272 : vector<8x128xf32>
    %281 = arith.addf %270, %280 : vector<8x128xf32>
    %c1_133 = arith.constant 1 : index
    %c0_134 = arith.constant 0 : index
    %c0_135 = arith.constant 0 : index
    %282 = vector.load %arg4[%c1_133, %c0_134, %c0_135] : memref<64x8x128xf32, #tpu.memory_space<vmem>>, vector<1x8x128xf32>
    %283 = vector.shape_cast %282 : vector<1x8x128xf32> to vector<8x128xf32>
    %284 = arith.subf %283, %268 : vector<8x128xf32>
    %285 = math.exp %284 : vector<8x128xf32>
    %286 = arith.addf %275, %285 : vector<8x128xf32>
    %cst_136 = arith.constant 1.000000e+00 : f32
    %287 = vector.broadcast %cst_136 : f32 to vector<8x128xf32>
    %288 = arith.cmpf oeq, %216, %287 : vector<8x128xf32>
    %cst_137 = arith.constant 0.000000e+00 : f32
    %289 = vector.broadcast %cst_137 : f32 to vector<8x128xf32>
    %290 = arith.select %288, %219, %289 : vector<8x128xi1>, vector<8x128xf32>
    %cst_138 = arith.constant 0.000000e+00 : f32
    %291 = vector.broadcast %cst_138 : f32 to vector<8x128xf32>
    %292 = arith.cmpf oeq, %216, %291 : vector<8x128xf32>
    %cst_139 = arith.constant 0.000000e+00 : f32
    %293 = vector.broadcast %cst_139 : f32 to vector<8x128xf32>
    %294 = arith.select %292, %221, %293 : vector<8x128xi1>, vector<8x128xf32>
    %295 = arith.addf %290, %294 : vector<8x128xf32>
    %296 = arith.mulf %295, %283 : vector<8x128xf32>
    %297 = arith.addf %281, %296 : vector<8x128xf32>
    %c2_140 = arith.constant 2 : index
    %c0_141 = arith.constant 0 : index
    %c0_142 = arith.constant 0 : index
    %298 = vector.load %arg4[%c2_140, %c0_141, %c0_142] : memref<64x8x128xf32, #tpu.memory_space<vmem>>, vector<1x8x128xf32>
    %299 = vector.shape_cast %298 : vector<1x8x128xf32> to vector<8x128xf32>
    %300 = arith.subf %299, %268 : vector<8x128xf32>
    %301 = math.exp %300 : vector<8x128xf32>
    %302 = arith.addf %286, %301 : vector<8x128xf32>
    %cst_143 = arith.constant 2.000000e+00 : f32
    %303 = vector.broadcast %cst_143 : f32 to vector<8x128xf32>
    %304 = arith.cmpf oeq, %216, %303 : vector<8x128xf32>
    %cst_144 = arith.constant 0.000000e+00 : f32
    %305 = vector.broadcast %cst_144 : f32 to vector<8x128xf32>
    %306 = arith.select %304, %219, %305 : vector<8x128xi1>, vector<8x128xf32>
    %cst_145 = arith.constant 1.000000e+00 : f32
    %307 = vector.broadcast %cst_145 : f32 to vector<8x128xf32>
    %308 = arith.cmpf oeq, %216, %307 : vector<8x128xf32>
    %cst_146 = arith.constant 0.000000e+00 : f32
    %309 = vector.broadcast %cst_146 : f32 to vector<8x128xf32>
    %310 = arith.select %308, %221, %309 : vector<8x128xi1>, vector<8x128xf32>
    %311 = arith.addf %306, %310 : vector<8x128xf32>
    %312 = arith.mulf %311, %299 : vector<8x128xf32>
    %313 = arith.addf %297, %312 : vector<8x128xf32>
    %c3_147 = arith.constant 3 : index
    %c0_148 = arith.constant 0 : index
    %c0_149 = arith.constant 0 : index
    %314 = vector.load %arg4[%c3_147, %c0_148, %c0_149] : memref<64x8x128xf32, #tpu.memory_space<vmem>>, vector<1x8x128xf32>
    %315 = vector.shape_cast %314 : vector<1x8x128xf32> to vector<8x128xf32>
    %316 = arith.subf %315, %268 : vector<8x128xf32>
    %317 = math.exp %316 : vector<8x128xf32>
    %318 = arith.addf %302, %317 : vector<8x128xf32>
    %cst_150 = arith.constant 3.000000e+00 : f32
    %319 = vector.broadcast %cst_150 : f32 to vector<8x128xf32>
    %320 = arith.cmpf oeq, %216, %319 : vector<8x128xf32>
    %cst_151 = arith.constant 0.000000e+00 : f32
    %321 = vector.broadcast %cst_151 : f32 to vector<8x128xf32>
    %322 = arith.select %320, %219, %321 : vector<8x128xi1>, vector<8x128xf32>
    %cst_152 = arith.constant 2.000000e+00 : f32
    %323 = vector.broadcast %cst_152 : f32 to vector<8x128xf32>
    %324 = arith.cmpf oeq, %216, %323 : vector<8x128xf32>
    %cst_153 = arith.constant 0.000000e+00 : f32
    %325 = vector.broadcast %cst_153 : f32 to vector<8x128xf32>
    %326 = arith.select %324, %221, %325 : vector<8x128xi1>, vector<8x128xf32>
    %327 = arith.addf %322, %326 : vector<8x128xf32>
    %328 = arith.mulf %327, %315 : vector<8x128xf32>
    %329 = arith.addf %313, %328 : vector<8x128xf32>
    %c4_154 = arith.constant 4 : index
    %c0_155 = arith.constant 0 : index
    %c0_156 = arith.constant 0 : index
    %330 = vector.load %arg4[%c4_154, %c0_155, %c0_156] : memref<64x8x128xf32, #tpu.memory_space<vmem>>, vector<1x8x128xf32>
    %331 = vector.shape_cast %330 : vector<1x8x128xf32> to vector<8x128xf32>
    %332 = arith.subf %331, %268 : vector<8x128xf32>
    %333 = math.exp %332 : vector<8x128xf32>
    %334 = arith.addf %318, %333 : vector<8x128xf32>
    %cst_157 = arith.constant 4.000000e+00 : f32
    %335 = vector.broadcast %cst_157 : f32 to vector<8x128xf32>
    %336 = arith.cmpf oeq, %216, %335 : vector<8x128xf32>
    %cst_158 = arith.constant 0.000000e+00 : f32
    %337 = vector.broadcast %cst_158 : f32 to vector<8x128xf32>
    %338 = arith.select %336, %219, %337 : vector<8x128xi1>, vector<8x128xf32>
    %cst_159 = arith.constant 3.000000e+00 : f32
    %339 = vector.broadcast %cst_159 : f32 to vector<8x128xf32>
    %340 = arith.cmpf oeq, %216, %339 : vector<8x128xf32>
    %cst_160 = arith.constant 0.000000e+00 : f32
    %341 = vector.broadcast %cst_160 : f32 to vector<8x128xf32>
    %342 = arith.select %340, %221, %341 : vector<8x128xi1>, vector<8x128xf32>
    %343 = arith.addf %338, %342 : vector<8x128xf32>
    %344 = arith.mulf %343, %331 : vector<8x128xf32>
    %345 = arith.addf %329, %344 : vector<8x128xf32>
    %c5_161 = arith.constant 5 : index
    %c0_162 = arith.constant 0 : index
    %c0_163 = arith.constant 0 : index
    %346 = vector.load %arg4[%c5_161, %c0_162, %c0_163] : memref<64x8x128xf32, #tpu.memory_space<vmem>>, vector<1x8x128xf32>
    %347 = vector.shape_cast %346 : vector<1x8x128xf32> to vector<8x128xf32>
    %348 = arith.subf %347, %268 : vector<8x128xf32>
    %349 = math.exp %348 : vector<8x128xf32>
    %350 = arith.addf %334, %349 : vector<8x128xf32>
    %cst_164 = arith.constant 5.000000e+00 : f32
    %351 = vector.broadcast %cst_164 : f32 to vector<8x128xf32>
    %352 = arith.cmpf oeq, %216, %351 : vector<8x128xf32>
    %cst_165 = arith.constant 0.000000e+00 : f32
    %353 = vector.broadcast %cst_165 : f32 to vector<8x128xf32>
    %354 = arith.select %352, %219, %353 : vector<8x128xi1>, vector<8x128xf32>
    %cst_166 = arith.constant 4.000000e+00 : f32
    %355 = vector.broadcast %cst_166 : f32 to vector<8x128xf32>
    %356 = arith.cmpf oeq, %216, %355 : vector<8x128xf32>
    %cst_167 = arith.constant 0.000000e+00 : f32
    %357 = vector.broadcast %cst_167 : f32 to vector<8x128xf32>
    %358 = arith.select %356, %221, %357 : vector<8x128xi1>, vector<8x128xf32>
    %359 = arith.addf %354, %358 : vector<8x128xf32>
    %360 = arith.mulf %359, %347 : vector<8x128xf32>
    %361 = arith.addf %345, %360 : vector<8x128xf32>
    %c6_168 = arith.constant 6 : index
    %c0_169 = arith.constant 0 : index
    %c0_170 = arith.constant 0 : index
    %362 = vector.load %arg4[%c6_168, %c0_169, %c0_170] : memref<64x8x128xf32, #tpu.memory_space<vmem>>, vector<1x8x128xf32>
    %363 = vector.shape_cast %362 : vector<1x8x128xf32> to vector<8x128xf32>
    %364 = arith.subf %363, %268 : vector<8x128xf32>
    %365 = math.exp %364 : vector<8x128xf32>
    %366 = arith.addf %350, %365 : vector<8x128xf32>
    %cst_171 = arith.constant 6.000000e+00 : f32
    %367 = vector.broadcast %cst_171 : f32 to vector<8x128xf32>
    %368 = arith.cmpf oeq, %216, %367 : vector<8x128xf32>
    %cst_172 = arith.constant 0.000000e+00 : f32
    %369 = vector.broadcast %cst_172 : f32 to vector<8x128xf32>
    %370 = arith.select %368, %219, %369 : vector<8x128xi1>, vector<8x128xf32>
    %cst_173 = arith.constant 5.000000e+00 : f32
    %371 = vector.broadcast %cst_173 : f32 to vector<8x128xf32>
    %372 = arith.cmpf oeq, %216, %371 : vector<8x128xf32>
    %cst_174 = arith.constant 0.000000e+00 : f32
    %373 = vector.broadcast %cst_174 : f32 to vector<8x128xf32>
    %374 = arith.select %372, %221, %373 : vector<8x128xi1>, vector<8x128xf32>
    %375 = arith.addf %370, %374 : vector<8x128xf32>
    %376 = arith.mulf %375, %363 : vector<8x128xf32>
    %377 = arith.addf %361, %376 : vector<8x128xf32>
    %c7_175 = arith.constant 7 : index
    %c0_176 = arith.constant 0 : index
    %c0_177 = arith.constant 0 : index
    %378 = vector.load %arg4[%c7_175, %c0_176, %c0_177] : memref<64x8x128xf32, #tpu.memory_space<vmem>>, vector<1x8x128xf32>
    %379 = vector.shape_cast %378 : vector<1x8x128xf32> to vector<8x128xf32>
    %380 = arith.subf %379, %268 : vector<8x128xf32>
    %381 = math.exp %380 : vector<8x128xf32>
    %382 = arith.addf %366, %381 : vector<8x128xf32>
    %cst_178 = arith.constant 7.000000e+00 : f32
    %383 = vector.broadcast %cst_178 : f32 to vector<8x128xf32>
    %384 = arith.cmpf oeq, %216, %383 : vector<8x128xf32>
    %cst_179 = arith.constant 0.000000e+00 : f32
    %385 = vector.broadcast %cst_179 : f32 to vector<8x128xf32>
    %386 = arith.select %384, %219, %385 : vector<8x128xi1>, vector<8x128xf32>
    %cst_180 = arith.constant 6.000000e+00 : f32
    %387 = vector.broadcast %cst_180 : f32 to vector<8x128xf32>
    %388 = arith.cmpf oeq, %216, %387 : vector<8x128xf32>
    %cst_181 = arith.constant 0.000000e+00 : f32
    %389 = vector.broadcast %cst_181 : f32 to vector<8x128xf32>
    %390 = arith.select %388, %221, %389 : vector<8x128xi1>, vector<8x128xf32>
    %391 = arith.addf %386, %390 : vector<8x128xf32>
    %392 = arith.mulf %391, %379 : vector<8x128xf32>
    %393 = arith.addf %377, %392 : vector<8x128xf32>
    %c8_182 = arith.constant 8 : index
    %c0_183 = arith.constant 0 : index
    %c0_184 = arith.constant 0 : index
    %394 = vector.load %arg4[%c8_182, %c0_183, %c0_184] : memref<64x8x128xf32, #tpu.memory_space<vmem>>, vector<1x8x128xf32>
    %395 = vector.shape_cast %394 : vector<1x8x128xf32> to vector<8x128xf32>
    %396 = arith.subf %395, %268 : vector<8x128xf32>
    %397 = math.exp %396 : vector<8x128xf32>
    %398 = arith.addf %382, %397 : vector<8x128xf32>
    %cst_185 = arith.constant 8.000000e+00 : f32
    %399 = vector.broadcast %cst_185 : f32 to vector<8x128xf32>
    %400 = arith.cmpf oeq, %216, %399 : vector<8x128xf32>
    %cst_186 = arith.constant 0.000000e+00 : f32
    %401 = vector.broadcast %cst_186 : f32 to vector<8x128xf32>
    %402 = arith.select %400, %219, %401 : vector<8x128xi1>, vector<8x128xf32>
    %cst_187 = arith.constant 7.000000e+00 : f32
    %403 = vector.broadcast %cst_187 : f32 to vector<8x128xf32>
    %404 = arith.cmpf oeq, %216, %403 : vector<8x128xf32>
    %cst_188 = arith.constant 0.000000e+00 : f32
    %405 = vector.broadcast %cst_188 : f32 to vector<8x128xf32>
    %406 = arith.select %404, %221, %405 : vector<8x128xi1>, vector<8x128xf32>
    %407 = arith.addf %402, %406 : vector<8x128xf32>
    %408 = arith.mulf %407, %395 : vector<8x128xf32>
    %409 = arith.addf %393, %408 : vector<8x128xf32>
    %c9_189 = arith.constant 9 : index
    %c0_190 = arith.constant 0 : index
    %c0_191 = arith.constant 0 : index
    %410 = vector.load %arg4[%c9_189, %c0_190, %c0_191] : memref<64x8x128xf32, #tpu.memory_space<vmem>>, vector<1x8x128xf32>
    %411 = vector.shape_cast %410 : vector<1x8x128xf32> to vector<8x128xf32>
    %412 = arith.subf %411, %268 : vector<8x128xf32>
    %413 = math.exp %412 : vector<8x128xf32>
    %414 = arith.addf %398, %413 : vector<8x128xf32>
    %cst_192 = arith.constant 9.000000e+00 : f32
    %415 = vector.broadcast %cst_192 : f32 to vector<8x128xf32>
    %416 = arith.cmpf oeq, %216, %415 : vector<8x128xf32>
    %cst_193 = arith.constant 0.000000e+00 : f32
    %417 = vector.broadcast %cst_193 : f32 to vector<8x128xf32>
    %418 = arith.select %416, %219, %417 : vector<8x128xi1>, vector<8x128xf32>
    %cst_194 = arith.constant 8.000000e+00 : f32
    %419 = vector.broadcast %cst_194 : f32 to vector<8x128xf32>
    %420 = arith.cmpf oeq, %216, %419 : vector<8x128xf32>
    %cst_195 = arith.constant 0.000000e+00 : f32
    %421 = vector.broadcast %cst_195 : f32 to vector<8x128xf32>
    %422 = arith.select %420, %221, %421 : vector<8x128xi1>, vector<8x128xf32>
    %423 = arith.addf %418, %422 : vector<8x128xf32>
    %424 = arith.mulf %423, %411 : vector<8x128xf32>
    %425 = arith.addf %409, %424 : vector<8x128xf32>
    %c10_196 = arith.constant 10 : index
    %c0_197 = arith.constant 0 : index
    %c0_198 = arith.constant 0 : index
    %426 = vector.load %arg4[%c10_196, %c0_197, %c0_198] : memref<64x8x128xf32, #tpu.memory_space<vmem>>, vector<1x8x128xf32>
    %427 = vector.shape_cast %426 : vector<1x8x128xf32> to vector<8x128xf32>
    %428 = arith.subf %427, %268 : vector<8x128xf32>
    %429 = math.exp %428 : vector<8x128xf32>
    %430 = arith.addf %414, %429 : vector<8x128xf32>
    %cst_199 = arith.constant 1.000000e+01 : f32
    %431 = vector.broadcast %cst_199 : f32 to vector<8x128xf32>
    %432 = arith.cmpf oeq, %216, %431 : vector<8x128xf32>
    %cst_200 = arith.constant 0.000000e+00 : f32
    %433 = vector.broadcast %cst_200 : f32 to vector<8x128xf32>
    %434 = arith.select %432, %219, %433 : vector<8x128xi1>, vector<8x128xf32>
    %cst_201 = arith.constant 9.000000e+00 : f32
    %435 = vector.broadcast %cst_201 : f32 to vector<8x128xf32>
    %436 = arith.cmpf oeq, %216, %435 : vector<8x128xf32>
    %cst_202 = arith.constant 0.000000e+00 : f32
    %437 = vector.broadcast %cst_202 : f32 to vector<8x128xf32>
    %438 = arith.select %436, %221, %437 : vector<8x128xi1>, vector<8x128xf32>
    %439 = arith.addf %434, %438 : vector<8x128xf32>
    %440 = arith.mulf %439, %427 : vector<8x128xf32>
    %441 = arith.addf %425, %440 : vector<8x128xf32>
    %c11_203 = arith.constant 11 : index
    %c0_204 = arith.constant 0 : index
    %c0_205 = arith.constant 0 : index
    %442 = vector.load %arg4[%c11_203, %c0_204, %c0_205] : memref<64x8x128xf32, #tpu.memory_space<vmem>>, vector<1x8x128xf32>
    %443 = vector.shape_cast %442 : vector<1x8x128xf32> to vector<8x128xf32>
    %444 = arith.subf %443, %268 : vector<8x128xf32>
    %445 = math.exp %444 : vector<8x128xf32>
    %446 = arith.addf %430, %445 : vector<8x128xf32>
    %cst_206 = arith.constant 1.100000e+01 : f32
    %447 = vector.broadcast %cst_206 : f32 to vector<8x128xf32>
    %448 = arith.cmpf oeq, %216, %447 : vector<8x128xf32>
    %cst_207 = arith.constant 0.000000e+00 : f32
    %449 = vector.broadcast %cst_207 : f32 to vector<8x128xf32>
    %450 = arith.select %448, %219, %449 : vector<8x128xi1>, vector<8x128xf32>
    %cst_208 = arith.constant 1.000000e+01 : f32
    %451 = vector.broadcast %cst_208 : f32 to vector<8x128xf32>
    %452 = arith.cmpf oeq, %216, %451 : vector<8x128xf32>
    %cst_209 = arith.constant 0.000000e+00 : f32
    %453 = vector.broadcast %cst_209 : f32 to vector<8x128xf32>
    %454 = arith.select %452, %221, %453 : vector<8x128xi1>, vector<8x128xf32>
    %455 = arith.addf %450, %454 : vector<8x128xf32>
    %456 = arith.mulf %455, %443 : vector<8x128xf32>
    %457 = arith.addf %441, %456 : vector<8x128xf32>
    %c12_210 = arith.constant 12 : index
    %c0_211 = arith.constant 0 : index
    %c0_212 = arith.constant 0 : index
    %458 = vector.load %arg4[%c12_210, %c0_211, %c0_212] : memref<64x8x128xf32, #tpu.memory_space<vmem>>, vector<1x8x128xf32>
    %459 = vector.shape_cast %458 : vector<1x8x128xf32> to vector<8x128xf32>
    %460 = arith.subf %459, %268 : vector<8x128xf32>
    %461 = math.exp %460 : vector<8x128xf32>
    %462 = arith.addf %446, %461 : vector<8x128xf32>
    %cst_213 = arith.constant 1.200000e+01 : f32
    %463 = vector.broadcast %cst_213 : f32 to vector<8x128xf32>
    %464 = arith.cmpf oeq, %216, %463 : vector<8x128xf32>
    %cst_214 = arith.constant 0.000000e+00 : f32
    %465 = vector.broadcast %cst_214 : f32 to vector<8x128xf32>
    %466 = arith.select %464, %219, %465 : vector<8x128xi1>, vector<8x128xf32>
    %cst_215 = arith.constant 1.100000e+01 : f32
    %467 = vector.broadcast %cst_215 : f32 to vector<8x128xf32>
    %468 = arith.cmpf oeq, %216, %467 : vector<8x128xf32>
    %cst_216 = arith.constant 0.000000e+00 : f32
    %469 = vector.broadcast %cst_216 : f32 to vector<8x128xf32>
    %470 = arith.select %468, %221, %469 : vector<8x128xi1>, vector<8x128xf32>
    %471 = arith.addf %466, %470 : vector<8x128xf32>
    %472 = arith.mulf %471, %459 : vector<8x128xf32>
    %473 = arith.addf %457, %472 : vector<8x128xf32>
    %c13_217 = arith.constant 13 : index
    %c0_218 = arith.constant 0 : index
    %c0_219 = arith.constant 0 : index
    %474 = vector.load %arg4[%c13_217, %c0_218, %c0_219] : memref<64x8x128xf32, #tpu.memory_space<vmem>>, vector<1x8x128xf32>
    %475 = vector.shape_cast %474 : vector<1x8x128xf32> to vector<8x128xf32>
    %476 = arith.subf %475, %268 : vector<8x128xf32>
    %477 = math.exp %476 : vector<8x128xf32>
    %478 = arith.addf %462, %477 : vector<8x128xf32>
    %cst_220 = arith.constant 1.300000e+01 : f32
    %479 = vector.broadcast %cst_220 : f32 to vector<8x128xf32>
    %480 = arith.cmpf oeq, %216, %479 : vector<8x128xf32>
    %cst_221 = arith.constant 0.000000e+00 : f32
    %481 = vector.broadcast %cst_221 : f32 to vector<8x128xf32>
    %482 = arith.select %480, %219, %481 : vector<8x128xi1>, vector<8x128xf32>
    %cst_222 = arith.constant 1.200000e+01 : f32
    %483 = vector.broadcast %cst_222 : f32 to vector<8x128xf32>
    %484 = arith.cmpf oeq, %216, %483 : vector<8x128xf32>
    %cst_223 = arith.constant 0.000000e+00 : f32
    %485 = vector.broadcast %cst_223 : f32 to vector<8x128xf32>
    %486 = arith.select %484, %221, %485 : vector<8x128xi1>, vector<8x128xf32>
    %487 = arith.addf %482, %486 : vector<8x128xf32>
    %488 = arith.mulf %487, %475 : vector<8x128xf32>
    %489 = arith.addf %473, %488 : vector<8x128xf32>
    %c14_224 = arith.constant 14 : index
    %c0_225 = arith.constant 0 : index
    %c0_226 = arith.constant 0 : index
    %490 = vector.load %arg4[%c14_224, %c0_225, %c0_226] : memref<64x8x128xf32, #tpu.memory_space<vmem>>, vector<1x8x128xf32>
    %491 = vector.shape_cast %490 : vector<1x8x128xf32> to vector<8x128xf32>
    %492 = arith.subf %491, %268 : vector<8x128xf32>
    %493 = math.exp %492 : vector<8x128xf32>
    %494 = arith.addf %478, %493 : vector<8x128xf32>
    %cst_227 = arith.constant 1.400000e+01 : f32
    %495 = vector.broadcast %cst_227 : f32 to vector<8x128xf32>
    %496 = arith.cmpf oeq, %216, %495 : vector<8x128xf32>
    %cst_228 = arith.constant 0.000000e+00 : f32
    %497 = vector.broadcast %cst_228 : f32 to vector<8x128xf32>
    %498 = arith.select %496, %219, %497 : vector<8x128xi1>, vector<8x128xf32>
    %cst_229 = arith.constant 1.300000e+01 : f32
    %499 = vector.broadcast %cst_229 : f32 to vector<8x128xf32>
    %500 = arith.cmpf oeq, %216, %499 : vector<8x128xf32>
    %cst_230 = arith.constant 0.000000e+00 : f32
    %501 = vector.broadcast %cst_230 : f32 to vector<8x128xf32>
    %502 = arith.select %500, %221, %501 : vector<8x128xi1>, vector<8x128xf32>
    %503 = arith.addf %498, %502 : vector<8x128xf32>
    %504 = arith.mulf %503, %491 : vector<8x128xf32>
    %505 = arith.addf %489, %504 : vector<8x128xf32>
    %c15_231 = arith.constant 15 : index
    %c0_232 = arith.constant 0 : index
    %c0_233 = arith.constant 0 : index
    %506 = vector.load %arg4[%c15_231, %c0_232, %c0_233] : memref<64x8x128xf32, #tpu.memory_space<vmem>>, vector<1x8x128xf32>
    %507 = vector.shape_cast %506 : vector<1x8x128xf32> to vector<8x128xf32>
    %508 = arith.subf %507, %268 : vector<8x128xf32>
    %509 = math.exp %508 : vector<8x128xf32>
    %510 = arith.addf %494, %509 : vector<8x128xf32>
    %cst_234 = arith.constant 1.500000e+01 : f32
    %511 = vector.broadcast %cst_234 : f32 to vector<8x128xf32>
    %512 = arith.cmpf oeq, %216, %511 : vector<8x128xf32>
    %cst_235 = arith.constant 0.000000e+00 : f32
    %513 = vector.broadcast %cst_235 : f32 to vector<8x128xf32>
    %514 = arith.select %512, %219, %513 : vector<8x128xi1>, vector<8x128xf32>
    %cst_236 = arith.constant 1.400000e+01 : f32
    %515 = vector.broadcast %cst_236 : f32 to vector<8x128xf32>
    %516 = arith.cmpf oeq, %216, %515 : vector<8x128xf32>
    %cst_237 = arith.constant 0.000000e+00 : f32
    %517 = vector.broadcast %cst_237 : f32 to vector<8x128xf32>
    %518 = arith.select %516, %221, %517 : vector<8x128xi1>, vector<8x128xf32>
    %519 = arith.addf %514, %518 : vector<8x128xf32>
    %520 = arith.mulf %519, %507 : vector<8x128xf32>
    %521 = arith.addf %505, %520 : vector<8x128xf32>
    %522 = math.log %510 : vector<8x128xf32>
    %523 = arith.addf %268, %522 : vector<8x128xf32>
    %524 = arith.subf %523, %521 : vector<8x128xf32>
    %525 = arith.addf %215, %524 : vector<8x128xf32>
    %526 = math.floor %204 : vector<8x128xf32>
    %cst_238 = arith.constant 1.000000e+00 : f32
    %527 = vector.broadcast %cst_238 : f32 to vector<8x128xf32>
    %528 = arith.addf %526, %527 : vector<8x128xf32>
    %529 = arith.subf %528, %204 : vector<8x128xf32>
    %cst_239 = arith.constant 1.000000e+00 : f32
    %530 = vector.broadcast %cst_239 : f32 to vector<8x128xf32>
    %531 = arith.subf %530, %529 : vector<8x128xf32>
    %c16 = arith.constant 16 : index
    %c0_240 = arith.constant 0 : index
    %c0_241 = arith.constant 0 : index
    %532 = vector.load %arg4[%c16, %c0_240, %c0_241] : memref<64x8x128xf32, #tpu.memory_space<vmem>>, vector<1x8x128xf32>
    %533 = vector.shape_cast %532 : vector<1x8x128xf32> to vector<8x128xf32>
    %c17 = arith.constant 17 : index
    %c0_242 = arith.constant 0 : index
    %c0_243 = arith.constant 0 : index
    %534 = vector.load %arg4[%c17, %c0_242, %c0_243] : memref<64x8x128xf32, #tpu.memory_space<vmem>>, vector<1x8x128xf32>
    %535 = vector.shape_cast %534 : vector<1x8x128xf32> to vector<8x128xf32>
    %536 = arith.maximumf %533, %535 : vector<8x128xf32>
    %c18 = arith.constant 18 : index
    %c0_244 = arith.constant 0 : index
    %c0_245 = arith.constant 0 : index
    %537 = vector.load %arg4[%c18, %c0_244, %c0_245] : memref<64x8x128xf32, #tpu.memory_space<vmem>>, vector<1x8x128xf32>
    %538 = vector.shape_cast %537 : vector<1x8x128xf32> to vector<8x128xf32>
    %539 = arith.maximumf %536, %538 : vector<8x128xf32>
    %c19 = arith.constant 19 : index
    %c0_246 = arith.constant 0 : index
    %c0_247 = arith.constant 0 : index
    %540 = vector.load %arg4[%c19, %c0_246, %c0_247] : memref<64x8x128xf32, #tpu.memory_space<vmem>>, vector<1x8x128xf32>
    %541 = vector.shape_cast %540 : vector<1x8x128xf32> to vector<8x128xf32>
    %542 = arith.maximumf %539, %541 : vector<8x128xf32>
    %c20 = arith.constant 20 : index
    %c0_248 = arith.constant 0 : index
    %c0_249 = arith.constant 0 : index
    %543 = vector.load %arg4[%c20, %c0_248, %c0_249] : memref<64x8x128xf32, #tpu.memory_space<vmem>>, vector<1x8x128xf32>
    %544 = vector.shape_cast %543 : vector<1x8x128xf32> to vector<8x128xf32>
    %545 = arith.maximumf %542, %544 : vector<8x128xf32>
    %c21 = arith.constant 21 : index
    %c0_250 = arith.constant 0 : index
    %c0_251 = arith.constant 0 : index
    %546 = vector.load %arg4[%c21, %c0_250, %c0_251] : memref<64x8x128xf32, #tpu.memory_space<vmem>>, vector<1x8x128xf32>
    %547 = vector.shape_cast %546 : vector<1x8x128xf32> to vector<8x128xf32>
    %548 = arith.maximumf %545, %547 : vector<8x128xf32>
    %c22 = arith.constant 22 : index
    %c0_252 = arith.constant 0 : index
    %c0_253 = arith.constant 0 : index
    %549 = vector.load %arg4[%c22, %c0_252, %c0_253] : memref<64x8x128xf32, #tpu.memory_space<vmem>>, vector<1x8x128xf32>
    %550 = vector.shape_cast %549 : vector<1x8x128xf32> to vector<8x128xf32>
    %551 = arith.maximumf %548, %550 : vector<8x128xf32>
    %c23 = arith.constant 23 : index
    %c0_254 = arith.constant 0 : index
    %c0_255 = arith.constant 0 : index
    %552 = vector.load %arg4[%c23, %c0_254, %c0_255] : memref<64x8x128xf32, #tpu.memory_space<vmem>>, vector<1x8x128xf32>
    %553 = vector.shape_cast %552 : vector<1x8x128xf32> to vector<8x128xf32>
    %554 = arith.maximumf %551, %553 : vector<8x128xf32>
    %c24 = arith.constant 24 : index
    %c0_256 = arith.constant 0 : index
    %c0_257 = arith.constant 0 : index
    %555 = vector.load %arg4[%c24, %c0_256, %c0_257] : memref<64x8x128xf32, #tpu.memory_space<vmem>>, vector<1x8x128xf32>
    %556 = vector.shape_cast %555 : vector<1x8x128xf32> to vector<8x128xf32>
    %557 = arith.maximumf %554, %556 : vector<8x128xf32>
    %c25 = arith.constant 25 : index
    %c0_258 = arith.constant 0 : index
    %c0_259 = arith.constant 0 : index
    %558 = vector.load %arg4[%c25, %c0_258, %c0_259] : memref<64x8x128xf32, #tpu.memory_space<vmem>>, vector<1x8x128xf32>
    %559 = vector.shape_cast %558 : vector<1x8x128xf32> to vector<8x128xf32>
    %560 = arith.maximumf %557, %559 : vector<8x128xf32>
    %c26 = arith.constant 26 : index
    %c0_260 = arith.constant 0 : index
    %c0_261 = arith.constant 0 : index
    %561 = vector.load %arg4[%c26, %c0_260, %c0_261] : memref<64x8x128xf32, #tpu.memory_space<vmem>>, vector<1x8x128xf32>
    %562 = vector.shape_cast %561 : vector<1x8x128xf32> to vector<8x128xf32>
    %563 = arith.maximumf %560, %562 : vector<8x128xf32>
    %c27 = arith.constant 27 : index
    %c0_262 = arith.constant 0 : index
    %c0_263 = arith.constant 0 : index
    %564 = vector.load %arg4[%c27, %c0_262, %c0_263] : memref<64x8x128xf32, #tpu.memory_space<vmem>>, vector<1x8x128xf32>
    %565 = vector.shape_cast %564 : vector<1x8x128xf32> to vector<8x128xf32>
    %566 = arith.maximumf %563, %565 : vector<8x128xf32>
    %c28 = arith.constant 28 : index
    %c0_264 = arith.constant 0 : index
    %c0_265 = arith.constant 0 : index
    %567 = vector.load %arg4[%c28, %c0_264, %c0_265] : memref<64x8x128xf32, #tpu.memory_space<vmem>>, vector<1x8x128xf32>
    %568 = vector.shape_cast %567 : vector<1x8x128xf32> to vector<8x128xf32>
    %569 = arith.maximumf %566, %568 : vector<8x128xf32>
    %c29 = arith.constant 29 : index
    %c0_266 = arith.constant 0 : index
    %c0_267 = arith.constant 0 : index
    %570 = vector.load %arg4[%c29, %c0_266, %c0_267] : memref<64x8x128xf32, #tpu.memory_space<vmem>>, vector<1x8x128xf32>
    %571 = vector.shape_cast %570 : vector<1x8x128xf32> to vector<8x128xf32>
    %572 = arith.maximumf %569, %571 : vector<8x128xf32>
    %c30 = arith.constant 30 : index
    %c0_268 = arith.constant 0 : index
    %c0_269 = arith.constant 0 : index
    %573 = vector.load %arg4[%c30, %c0_268, %c0_269] : memref<64x8x128xf32, #tpu.memory_space<vmem>>, vector<1x8x128xf32>
    %574 = vector.shape_cast %573 : vector<1x8x128xf32> to vector<8x128xf32>
    %575 = arith.maximumf %572, %574 : vector<8x128xf32>
    %c31 = arith.constant 31 : index
    %c0_270 = arith.constant 0 : index
    %c0_271 = arith.constant 0 : index
    %576 = vector.load %arg4[%c31, %c0_270, %c0_271] : memref<64x8x128xf32, #tpu.memory_space<vmem>>, vector<1x8x128xf32>
    %577 = vector.shape_cast %576 : vector<1x8x128xf32> to vector<8x128xf32>
    %578 = arith.maximumf %575, %577 : vector<8x128xf32>
    %cst_272 = arith.constant 0.000000e+00 : f32
    %579 = vector.broadcast %cst_272 : f32 to vector<8x128xf32>
    %cst_273 = arith.constant 0.000000e+00 : f32
    %580 = vector.broadcast %cst_273 : f32 to vector<8x128xf32>
    %c16_274 = arith.constant 16 : index
    %c0_275 = arith.constant 0 : index
    %c0_276 = arith.constant 0 : index
    %581 = vector.load %arg4[%c16_274, %c0_275, %c0_276] : memref<64x8x128xf32, #tpu.memory_space<vmem>>, vector<1x8x128xf32>
    %582 = vector.shape_cast %581 : vector<1x8x128xf32> to vector<8x128xf32>
    %583 = arith.subf %582, %578 : vector<8x128xf32>
    %584 = math.exp %583 : vector<8x128xf32>
    %585 = arith.addf %579, %584 : vector<8x128xf32>
    %cst_277 = arith.constant 0.000000e+00 : f32
    %586 = vector.broadcast %cst_277 : f32 to vector<8x128xf32>
    %587 = arith.cmpf oeq, %526, %586 : vector<8x128xf32>
    %cst_278 = arith.constant 0.000000e+00 : f32
    %588 = vector.broadcast %cst_278 : f32 to vector<8x128xf32>
    %589 = arith.select %587, %529, %588 : vector<8x128xi1>, vector<8x128xf32>
    %590 = arith.mulf %589, %582 : vector<8x128xf32>
    %591 = arith.addf %580, %590 : vector<8x128xf32>
    %c17_279 = arith.constant 17 : index
    %c0_280 = arith.constant 0 : index
    %c0_281 = arith.constant 0 : index
    %592 = vector.load %arg4[%c17_279, %c0_280, %c0_281] : memref<64x8x128xf32, #tpu.memory_space<vmem>>, vector<1x8x128xf32>
    %593 = vector.shape_cast %592 : vector<1x8x128xf32> to vector<8x128xf32>
    %594 = arith.subf %593, %578 : vector<8x128xf32>
    %595 = math.exp %594 : vector<8x128xf32>
    %596 = arith.addf %585, %595 : vector<8x128xf32>
    %cst_282 = arith.constant 1.000000e+00 : f32
    %597 = vector.broadcast %cst_282 : f32 to vector<8x128xf32>
    %598 = arith.cmpf oeq, %526, %597 : vector<8x128xf32>
    %cst_283 = arith.constant 0.000000e+00 : f32
    %599 = vector.broadcast %cst_283 : f32 to vector<8x128xf32>
    %600 = arith.select %598, %529, %599 : vector<8x128xi1>, vector<8x128xf32>
    %cst_284 = arith.constant 0.000000e+00 : f32
    %601 = vector.broadcast %cst_284 : f32 to vector<8x128xf32>
    %602 = arith.cmpf oeq, %526, %601 : vector<8x128xf32>
    %cst_285 = arith.constant 0.000000e+00 : f32
    %603 = vector.broadcast %cst_285 : f32 to vector<8x128xf32>
    %604 = arith.select %602, %531, %603 : vector<8x128xi1>, vector<8x128xf32>
    %605 = arith.addf %600, %604 : vector<8x128xf32>
    %606 = arith.mulf %605, %593 : vector<8x128xf32>
    %607 = arith.addf %591, %606 : vector<8x128xf32>
    %c18_286 = arith.constant 18 : index
    %c0_287 = arith.constant 0 : index
    %c0_288 = arith.constant 0 : index
    %608 = vector.load %arg4[%c18_286, %c0_287, %c0_288] : memref<64x8x128xf32, #tpu.memory_space<vmem>>, vector<1x8x128xf32>
    %609 = vector.shape_cast %608 : vector<1x8x128xf32> to vector<8x128xf32>
    %610 = arith.subf %609, %578 : vector<8x128xf32>
    %611 = math.exp %610 : vector<8x128xf32>
    %612 = arith.addf %596, %611 : vector<8x128xf32>
    %cst_289 = arith.constant 2.000000e+00 : f32
    %613 = vector.broadcast %cst_289 : f32 to vector<8x128xf32>
    %614 = arith.cmpf oeq, %526, %613 : vector<8x128xf32>
    %cst_290 = arith.constant 0.000000e+00 : f32
    %615 = vector.broadcast %cst_290 : f32 to vector<8x128xf32>
    %616 = arith.select %614, %529, %615 : vector<8x128xi1>, vector<8x128xf32>
    %cst_291 = arith.constant 1.000000e+00 : f32
    %617 = vector.broadcast %cst_291 : f32 to vector<8x128xf32>
    %618 = arith.cmpf oeq, %526, %617 : vector<8x128xf32>
    %cst_292 = arith.constant 0.000000e+00 : f32
    %619 = vector.broadcast %cst_292 : f32 to vector<8x128xf32>
    %620 = arith.select %618, %531, %619 : vector<8x128xi1>, vector<8x128xf32>
    %621 = arith.addf %616, %620 : vector<8x128xf32>
    %622 = arith.mulf %621, %609 : vector<8x128xf32>
    %623 = arith.addf %607, %622 : vector<8x128xf32>
    %c19_293 = arith.constant 19 : index
    %c0_294 = arith.constant 0 : index
    %c0_295 = arith.constant 0 : index
    %624 = vector.load %arg4[%c19_293, %c0_294, %c0_295] : memref<64x8x128xf32, #tpu.memory_space<vmem>>, vector<1x8x128xf32>
    %625 = vector.shape_cast %624 : vector<1x8x128xf32> to vector<8x128xf32>
    %626 = arith.subf %625, %578 : vector<8x128xf32>
    %627 = math.exp %626 : vector<8x128xf32>
    %628 = arith.addf %612, %627 : vector<8x128xf32>
    %cst_296 = arith.constant 3.000000e+00 : f32
    %629 = vector.broadcast %cst_296 : f32 to vector<8x128xf32>
    %630 = arith.cmpf oeq, %526, %629 : vector<8x128xf32>
    %cst_297 = arith.constant 0.000000e+00 : f32
    %631 = vector.broadcast %cst_297 : f32 to vector<8x128xf32>
    %632 = arith.select %630, %529, %631 : vector<8x128xi1>, vector<8x128xf32>
    %cst_298 = arith.constant 2.000000e+00 : f32
    %633 = vector.broadcast %cst_298 : f32 to vector<8x128xf32>
    %634 = arith.cmpf oeq, %526, %633 : vector<8x128xf32>
    %cst_299 = arith.constant 0.000000e+00 : f32
    %635 = vector.broadcast %cst_299 : f32 to vector<8x128xf32>
    %636 = arith.select %634, %531, %635 : vector<8x128xi1>, vector<8x128xf32>
    %637 = arith.addf %632, %636 : vector<8x128xf32>
    %638 = arith.mulf %637, %625 : vector<8x128xf32>
    %639 = arith.addf %623, %638 : vector<8x128xf32>
    %c20_300 = arith.constant 20 : index
    %c0_301 = arith.constant 0 : index
    %c0_302 = arith.constant 0 : index
    %640 = vector.load %arg4[%c20_300, %c0_301, %c0_302] : memref<64x8x128xf32, #tpu.memory_space<vmem>>, vector<1x8x128xf32>
    %641 = vector.shape_cast %640 : vector<1x8x128xf32> to vector<8x128xf32>
    %642 = arith.subf %641, %578 : vector<8x128xf32>
    %643 = math.exp %642 : vector<8x128xf32>
    %644 = arith.addf %628, %643 : vector<8x128xf32>
    %cst_303 = arith.constant 4.000000e+00 : f32
    %645 = vector.broadcast %cst_303 : f32 to vector<8x128xf32>
    %646 = arith.cmpf oeq, %526, %645 : vector<8x128xf32>
    %cst_304 = arith.constant 0.000000e+00 : f32
    %647 = vector.broadcast %cst_304 : f32 to vector<8x128xf32>
    %648 = arith.select %646, %529, %647 : vector<8x128xi1>, vector<8x128xf32>
    %cst_305 = arith.constant 3.000000e+00 : f32
    %649 = vector.broadcast %cst_305 : f32 to vector<8x128xf32>
    %650 = arith.cmpf oeq, %526, %649 : vector<8x128xf32>
    %cst_306 = arith.constant 0.000000e+00 : f32
    %651 = vector.broadcast %cst_306 : f32 to vector<8x128xf32>
    %652 = arith.select %650, %531, %651 : vector<8x128xi1>, vector<8x128xf32>
    %653 = arith.addf %648, %652 : vector<8x128xf32>
    %654 = arith.mulf %653, %641 : vector<8x128xf32>
    %655 = arith.addf %639, %654 : vector<8x128xf32>
    %c21_307 = arith.constant 21 : index
    %c0_308 = arith.constant 0 : index
    %c0_309 = arith.constant 0 : index
    %656 = vector.load %arg4[%c21_307, %c0_308, %c0_309] : memref<64x8x128xf32, #tpu.memory_space<vmem>>, vector<1x8x128xf32>
    %657 = vector.shape_cast %656 : vector<1x8x128xf32> to vector<8x128xf32>
    %658 = arith.subf %657, %578 : vector<8x128xf32>
    %659 = math.exp %658 : vector<8x128xf32>
    %660 = arith.addf %644, %659 : vector<8x128xf32>
    %cst_310 = arith.constant 5.000000e+00 : f32
    %661 = vector.broadcast %cst_310 : f32 to vector<8x128xf32>
    %662 = arith.cmpf oeq, %526, %661 : vector<8x128xf32>
    %cst_311 = arith.constant 0.000000e+00 : f32
    %663 = vector.broadcast %cst_311 : f32 to vector<8x128xf32>
    %664 = arith.select %662, %529, %663 : vector<8x128xi1>, vector<8x128xf32>
    %cst_312 = arith.constant 4.000000e+00 : f32
    %665 = vector.broadcast %cst_312 : f32 to vector<8x128xf32>
    %666 = arith.cmpf oeq, %526, %665 : vector<8x128xf32>
    %cst_313 = arith.constant 0.000000e+00 : f32
    %667 = vector.broadcast %cst_313 : f32 to vector<8x128xf32>
    %668 = arith.select %666, %531, %667 : vector<8x128xi1>, vector<8x128xf32>
    %669 = arith.addf %664, %668 : vector<8x128xf32>
    %670 = arith.mulf %669, %657 : vector<8x128xf32>
    %671 = arith.addf %655, %670 : vector<8x128xf32>
    %c22_314 = arith.constant 22 : index
    %c0_315 = arith.constant 0 : index
    %c0_316 = arith.constant 0 : index
    %672 = vector.load %arg4[%c22_314, %c0_315, %c0_316] : memref<64x8x128xf32, #tpu.memory_space<vmem>>, vector<1x8x128xf32>
    %673 = vector.shape_cast %672 : vector<1x8x128xf32> to vector<8x128xf32>
    %674 = arith.subf %673, %578 : vector<8x128xf32>
    %675 = math.exp %674 : vector<8x128xf32>
    %676 = arith.addf %660, %675 : vector<8x128xf32>
    %cst_317 = arith.constant 6.000000e+00 : f32
    %677 = vector.broadcast %cst_317 : f32 to vector<8x128xf32>
    %678 = arith.cmpf oeq, %526, %677 : vector<8x128xf32>
    %cst_318 = arith.constant 0.000000e+00 : f32
    %679 = vector.broadcast %cst_318 : f32 to vector<8x128xf32>
    %680 = arith.select %678, %529, %679 : vector<8x128xi1>, vector<8x128xf32>
    %cst_319 = arith.constant 5.000000e+00 : f32
    %681 = vector.broadcast %cst_319 : f32 to vector<8x128xf32>
    %682 = arith.cmpf oeq, %526, %681 : vector<8x128xf32>
    %cst_320 = arith.constant 0.000000e+00 : f32
    %683 = vector.broadcast %cst_320 : f32 to vector<8x128xf32>
    %684 = arith.select %682, %531, %683 : vector<8x128xi1>, vector<8x128xf32>
    %685 = arith.addf %680, %684 : vector<8x128xf32>
    %686 = arith.mulf %685, %673 : vector<8x128xf32>
    %687 = arith.addf %671, %686 : vector<8x128xf32>
    %c23_321 = arith.constant 23 : index
    %c0_322 = arith.constant 0 : index
    %c0_323 = arith.constant 0 : index
    %688 = vector.load %arg4[%c23_321, %c0_322, %c0_323] : memref<64x8x128xf32, #tpu.memory_space<vmem>>, vector<1x8x128xf32>
    %689 = vector.shape_cast %688 : vector<1x8x128xf32> to vector<8x128xf32>
    %690 = arith.subf %689, %578 : vector<8x128xf32>
    %691 = math.exp %690 : vector<8x128xf32>
    %692 = arith.addf %676, %691 : vector<8x128xf32>
    %cst_324 = arith.constant 7.000000e+00 : f32
    %693 = vector.broadcast %cst_324 : f32 to vector<8x128xf32>
    %694 = arith.cmpf oeq, %526, %693 : vector<8x128xf32>
    %cst_325 = arith.constant 0.000000e+00 : f32
    %695 = vector.broadcast %cst_325 : f32 to vector<8x128xf32>
    %696 = arith.select %694, %529, %695 : vector<8x128xi1>, vector<8x128xf32>
    %cst_326 = arith.constant 6.000000e+00 : f32
    %697 = vector.broadcast %cst_326 : f32 to vector<8x128xf32>
    %698 = arith.cmpf oeq, %526, %697 : vector<8x128xf32>
    %cst_327 = arith.constant 0.000000e+00 : f32
    %699 = vector.broadcast %cst_327 : f32 to vector<8x128xf32>
    %700 = arith.select %698, %531, %699 : vector<8x128xi1>, vector<8x128xf32>
    %701 = arith.addf %696, %700 : vector<8x128xf32>
    %702 = arith.mulf %701, %689 : vector<8x128xf32>
    %703 = arith.addf %687, %702 : vector<8x128xf32>
    %c24_328 = arith.constant 24 : index
    %c0_329 = arith.constant 0 : index
    %c0_330 = arith.constant 0 : index
    %704 = vector.load %arg4[%c24_328, %c0_329, %c0_330] : memref<64x8x128xf32, #tpu.memory_space<vmem>>, vector<1x8x128xf32>
    %705 = vector.shape_cast %704 : vector<1x8x128xf32> to vector<8x128xf32>
    %706 = arith.subf %705, %578 : vector<8x128xf32>
    %707 = math.exp %706 : vector<8x128xf32>
    %708 = arith.addf %692, %707 : vector<8x128xf32>
    %cst_331 = arith.constant 8.000000e+00 : f32
    %709 = vector.broadcast %cst_331 : f32 to vector<8x128xf32>
    %710 = arith.cmpf oeq, %526, %709 : vector<8x128xf32>
    %cst_332 = arith.constant 0.000000e+00 : f32
    %711 = vector.broadcast %cst_332 : f32 to vector<8x128xf32>
    %712 = arith.select %710, %529, %711 : vector<8x128xi1>, vector<8x128xf32>
    %cst_333 = arith.constant 7.000000e+00 : f32
    %713 = vector.broadcast %cst_333 : f32 to vector<8x128xf32>
    %714 = arith.cmpf oeq, %526, %713 : vector<8x128xf32>
    %cst_334 = arith.constant 0.000000e+00 : f32
    %715 = vector.broadcast %cst_334 : f32 to vector<8x128xf32>
    %716 = arith.select %714, %531, %715 : vector<8x128xi1>, vector<8x128xf32>
    %717 = arith.addf %712, %716 : vector<8x128xf32>
    %718 = arith.mulf %717, %705 : vector<8x128xf32>
    %719 = arith.addf %703, %718 : vector<8x128xf32>
    %c25_335 = arith.constant 25 : index
    %c0_336 = arith.constant 0 : index
    %c0_337 = arith.constant 0 : index
    %720 = vector.load %arg4[%c25_335, %c0_336, %c0_337] : memref<64x8x128xf32, #tpu.memory_space<vmem>>, vector<1x8x128xf32>
    %721 = vector.shape_cast %720 : vector<1x8x128xf32> to vector<8x128xf32>
    %722 = arith.subf %721, %578 : vector<8x128xf32>
    %723 = math.exp %722 : vector<8x128xf32>
    %724 = arith.addf %708, %723 : vector<8x128xf32>
    %cst_338 = arith.constant 9.000000e+00 : f32
    %725 = vector.broadcast %cst_338 : f32 to vector<8x128xf32>
    %726 = arith.cmpf oeq, %526, %725 : vector<8x128xf32>
    %cst_339 = arith.constant 0.000000e+00 : f32
    %727 = vector.broadcast %cst_339 : f32 to vector<8x128xf32>
    %728 = arith.select %726, %529, %727 : vector<8x128xi1>, vector<8x128xf32>
    %cst_340 = arith.constant 8.000000e+00 : f32
    %729 = vector.broadcast %cst_340 : f32 to vector<8x128xf32>
    %730 = arith.cmpf oeq, %526, %729 : vector<8x128xf32>
    %cst_341 = arith.constant 0.000000e+00 : f32
    %731 = vector.broadcast %cst_341 : f32 to vector<8x128xf32>
    %732 = arith.select %730, %531, %731 : vector<8x128xi1>, vector<8x128xf32>
    %733 = arith.addf %728, %732 : vector<8x128xf32>
    %734 = arith.mulf %733, %721 : vector<8x128xf32>
    %735 = arith.addf %719, %734 : vector<8x128xf32>
    %c26_342 = arith.constant 26 : index
    %c0_343 = arith.constant 0 : index
    %c0_344 = arith.constant 0 : index
    %736 = vector.load %arg4[%c26_342, %c0_343, %c0_344] : memref<64x8x128xf32, #tpu.memory_space<vmem>>, vector<1x8x128xf32>
    %737 = vector.shape_cast %736 : vector<1x8x128xf32> to vector<8x128xf32>
    %738 = arith.subf %737, %578 : vector<8x128xf32>
    %739 = math.exp %738 : vector<8x128xf32>
    %740 = arith.addf %724, %739 : vector<8x128xf32>
    %cst_345 = arith.constant 1.000000e+01 : f32
    %741 = vector.broadcast %cst_345 : f32 to vector<8x128xf32>
    %742 = arith.cmpf oeq, %526, %741 : vector<8x128xf32>
    %cst_346 = arith.constant 0.000000e+00 : f32
    %743 = vector.broadcast %cst_346 : f32 to vector<8x128xf32>
    %744 = arith.select %742, %529, %743 : vector<8x128xi1>, vector<8x128xf32>
    %cst_347 = arith.constant 9.000000e+00 : f32
    %745 = vector.broadcast %cst_347 : f32 to vector<8x128xf32>
    %746 = arith.cmpf oeq, %526, %745 : vector<8x128xf32>
    %cst_348 = arith.constant 0.000000e+00 : f32
    %747 = vector.broadcast %cst_348 : f32 to vector<8x128xf32>
    %748 = arith.select %746, %531, %747 : vector<8x128xi1>, vector<8x128xf32>
    %749 = arith.addf %744, %748 : vector<8x128xf32>
    %750 = arith.mulf %749, %737 : vector<8x128xf32>
    %751 = arith.addf %735, %750 : vector<8x128xf32>
    %c27_349 = arith.constant 27 : index
    %c0_350 = arith.constant 0 : index
    %c0_351 = arith.constant 0 : index
    %752 = vector.load %arg4[%c27_349, %c0_350, %c0_351] : memref<64x8x128xf32, #tpu.memory_space<vmem>>, vector<1x8x128xf32>
    %753 = vector.shape_cast %752 : vector<1x8x128xf32> to vector<8x128xf32>
    %754 = arith.subf %753, %578 : vector<8x128xf32>
    %755 = math.exp %754 : vector<8x128xf32>
    %756 = arith.addf %740, %755 : vector<8x128xf32>
    %cst_352 = arith.constant 1.100000e+01 : f32
    %757 = vector.broadcast %cst_352 : f32 to vector<8x128xf32>
    %758 = arith.cmpf oeq, %526, %757 : vector<8x128xf32>
    %cst_353 = arith.constant 0.000000e+00 : f32
    %759 = vector.broadcast %cst_353 : f32 to vector<8x128xf32>
    %760 = arith.select %758, %529, %759 : vector<8x128xi1>, vector<8x128xf32>
    %cst_354 = arith.constant 1.000000e+01 : f32
    %761 = vector.broadcast %cst_354 : f32 to vector<8x128xf32>
    %762 = arith.cmpf oeq, %526, %761 : vector<8x128xf32>
    %cst_355 = arith.constant 0.000000e+00 : f32
    %763 = vector.broadcast %cst_355 : f32 to vector<8x128xf32>
    %764 = arith.select %762, %531, %763 : vector<8x128xi1>, vector<8x128xf32>
    %765 = arith.addf %760, %764 : vector<8x128xf32>
    %766 = arith.mulf %765, %753 : vector<8x128xf32>
    %767 = arith.addf %751, %766 : vector<8x128xf32>
    %c28_356 = arith.constant 28 : index
    %c0_357 = arith.constant 0 : index
    %c0_358 = arith.constant 0 : index
    %768 = vector.load %arg4[%c28_356, %c0_357, %c0_358] : memref<64x8x128xf32, #tpu.memory_space<vmem>>, vector<1x8x128xf32>
    %769 = vector.shape_cast %768 : vector<1x8x128xf32> to vector<8x128xf32>
    %770 = arith.subf %769, %578 : vector<8x128xf32>
    %771 = math.exp %770 : vector<8x128xf32>
    %772 = arith.addf %756, %771 : vector<8x128xf32>
    %cst_359 = arith.constant 1.200000e+01 : f32
    %773 = vector.broadcast %cst_359 : f32 to vector<8x128xf32>
    %774 = arith.cmpf oeq, %526, %773 : vector<8x128xf32>
    %cst_360 = arith.constant 0.000000e+00 : f32
    %775 = vector.broadcast %cst_360 : f32 to vector<8x128xf32>
    %776 = arith.select %774, %529, %775 : vector<8x128xi1>, vector<8x128xf32>
    %cst_361 = arith.constant 1.100000e+01 : f32
    %777 = vector.broadcast %cst_361 : f32 to vector<8x128xf32>
    %778 = arith.cmpf oeq, %526, %777 : vector<8x128xf32>
    %cst_362 = arith.constant 0.000000e+00 : f32
    %779 = vector.broadcast %cst_362 : f32 to vector<8x128xf32>
    %780 = arith.select %778, %531, %779 : vector<8x128xi1>, vector<8x128xf32>
    %781 = arith.addf %776, %780 : vector<8x128xf32>
    %782 = arith.mulf %781, %769 : vector<8x128xf32>
    %783 = arith.addf %767, %782 : vector<8x128xf32>
    %c29_363 = arith.constant 29 : index
    %c0_364 = arith.constant 0 : index
    %c0_365 = arith.constant 0 : index
    %784 = vector.load %arg4[%c29_363, %c0_364, %c0_365] : memref<64x8x128xf32, #tpu.memory_space<vmem>>, vector<1x8x128xf32>
    %785 = vector.shape_cast %784 : vector<1x8x128xf32> to vector<8x128xf32>
    %786 = arith.subf %785, %578 : vector<8x128xf32>
    %787 = math.exp %786 : vector<8x128xf32>
    %788 = arith.addf %772, %787 : vector<8x128xf32>
    %cst_366 = arith.constant 1.300000e+01 : f32
    %789 = vector.broadcast %cst_366 : f32 to vector<8x128xf32>
    %790 = arith.cmpf oeq, %526, %789 : vector<8x128xf32>
    %cst_367 = arith.constant 0.000000e+00 : f32
    %791 = vector.broadcast %cst_367 : f32 to vector<8x128xf32>
    %792 = arith.select %790, %529, %791 : vector<8x128xi1>, vector<8x128xf32>
    %cst_368 = arith.constant 1.200000e+01 : f32
    %793 = vector.broadcast %cst_368 : f32 to vector<8x128xf32>
    %794 = arith.cmpf oeq, %526, %793 : vector<8x128xf32>
    %cst_369 = arith.constant 0.000000e+00 : f32
    %795 = vector.broadcast %cst_369 : f32 to vector<8x128xf32>
    %796 = arith.select %794, %531, %795 : vector<8x128xi1>, vector<8x128xf32>
    %797 = arith.addf %792, %796 : vector<8x128xf32>
    %798 = arith.mulf %797, %785 : vector<8x128xf32>
    %799 = arith.addf %783, %798 : vector<8x128xf32>
    %c30_370 = arith.constant 30 : index
    %c0_371 = arith.constant 0 : index
    %c0_372 = arith.constant 0 : index
    %800 = vector.load %arg4[%c30_370, %c0_371, %c0_372] : memref<64x8x128xf32, #tpu.memory_space<vmem>>, vector<1x8x128xf32>
    %801 = vector.shape_cast %800 : vector<1x8x128xf32> to vector<8x128xf32>
    %802 = arith.subf %801, %578 : vector<8x128xf32>
    %803 = math.exp %802 : vector<8x128xf32>
    %804 = arith.addf %788, %803 : vector<8x128xf32>
    %cst_373 = arith.constant 1.400000e+01 : f32
    %805 = vector.broadcast %cst_373 : f32 to vector<8x128xf32>
    %806 = arith.cmpf oeq, %526, %805 : vector<8x128xf32>
    %cst_374 = arith.constant 0.000000e+00 : f32
    %807 = vector.broadcast %cst_374 : f32 to vector<8x128xf32>
    %808 = arith.select %806, %529, %807 : vector<8x128xi1>, vector<8x128xf32>
    %cst_375 = arith.constant 1.300000e+01 : f32
    %809 = vector.broadcast %cst_375 : f32 to vector<8x128xf32>
    %810 = arith.cmpf oeq, %526, %809 : vector<8x128xf32>
    %cst_376 = arith.constant 0.000000e+00 : f32
    %811 = vector.broadcast %cst_376 : f32 to vector<8x128xf32>
    %812 = arith.select %810, %531, %811 : vector<8x128xi1>, vector<8x128xf32>
    %813 = arith.addf %808, %812 : vector<8x128xf32>
    %814 = arith.mulf %813, %801 : vector<8x128xf32>
    %815 = arith.addf %799, %814 : vector<8x128xf32>
    %c31_377 = arith.constant 31 : index
    %c0_378 = arith.constant 0 : index
    %c0_379 = arith.constant 0 : index
    %816 = vector.load %arg4[%c31_377, %c0_378, %c0_379] : memref<64x8x128xf32, #tpu.memory_space<vmem>>, vector<1x8x128xf32>
    %817 = vector.shape_cast %816 : vector<1x8x128xf32> to vector<8x128xf32>
    %818 = arith.subf %817, %578 : vector<8x128xf32>
    %819 = math.exp %818 : vector<8x128xf32>
    %820 = arith.addf %804, %819 : vector<8x128xf32>
    %cst_380 = arith.constant 1.500000e+01 : f32
    %821 = vector.broadcast %cst_380 : f32 to vector<8x128xf32>
    %822 = arith.cmpf oeq, %526, %821 : vector<8x128xf32>
    %cst_381 = arith.constant 0.000000e+00 : f32
    %823 = vector.broadcast %cst_381 : f32 to vector<8x128xf32>
    %824 = arith.select %822, %529, %823 : vector<8x128xi1>, vector<8x128xf32>
    %cst_382 = arith.constant 1.400000e+01 : f32
    %825 = vector.broadcast %cst_382 : f32 to vector<8x128xf32>
    %826 = arith.cmpf oeq, %526, %825 : vector<8x128xf32>
    %cst_383 = arith.constant 0.000000e+00 : f32
    %827 = vector.broadcast %cst_383 : f32 to vector<8x128xf32>
    %828 = arith.select %826, %531, %827 : vector<8x128xi1>, vector<8x128xf32>
    %829 = arith.addf %824, %828 : vector<8x128xf32>
    %830 = arith.mulf %829, %817 : vector<8x128xf32>
    %831 = arith.addf %815, %830 : vector<8x128xf32>
    %832 = math.log %820 : vector<8x128xf32>
    %833 = arith.addf %578, %832 : vector<8x128xf32>
    %834 = arith.subf %833, %831 : vector<8x128xf32>
    %835 = arith.addf %525, %834 : vector<8x128xf32>
    %836 = math.floor %209 : vector<8x128xf32>
    %cst_384 = arith.constant 1.000000e+00 : f32
    %837 = vector.broadcast %cst_384 : f32 to vector<8x128xf32>
    %838 = arith.addf %836, %837 : vector<8x128xf32>
    %839 = arith.subf %838, %209 : vector<8x128xf32>
    %cst_385 = arith.constant 1.000000e+00 : f32
    %840 = vector.broadcast %cst_385 : f32 to vector<8x128xf32>
    %841 = arith.subf %840, %839 : vector<8x128xf32>
    %c32 = arith.constant 32 : index
    %c0_386 = arith.constant 0 : index
    %c0_387 = arith.constant 0 : index
    %842 = vector.load %arg4[%c32, %c0_386, %c0_387] : memref<64x8x128xf32, #tpu.memory_space<vmem>>, vector<1x8x128xf32>
    %843 = vector.shape_cast %842 : vector<1x8x128xf32> to vector<8x128xf32>
    %c33 = arith.constant 33 : index
    %c0_388 = arith.constant 0 : index
    %c0_389 = arith.constant 0 : index
    %844 = vector.load %arg4[%c33, %c0_388, %c0_389] : memref<64x8x128xf32, #tpu.memory_space<vmem>>, vector<1x8x128xf32>
    %845 = vector.shape_cast %844 : vector<1x8x128xf32> to vector<8x128xf32>
    %846 = arith.maximumf %843, %845 : vector<8x128xf32>
    %c34 = arith.constant 34 : index
    %c0_390 = arith.constant 0 : index
    %c0_391 = arith.constant 0 : index
    %847 = vector.load %arg4[%c34, %c0_390, %c0_391] : memref<64x8x128xf32, #tpu.memory_space<vmem>>, vector<1x8x128xf32>
    %848 = vector.shape_cast %847 : vector<1x8x128xf32> to vector<8x128xf32>
    %849 = arith.maximumf %846, %848 : vector<8x128xf32>
    %c35 = arith.constant 35 : index
    %c0_392 = arith.constant 0 : index
    %c0_393 = arith.constant 0 : index
    %850 = vector.load %arg4[%c35, %c0_392, %c0_393] : memref<64x8x128xf32, #tpu.memory_space<vmem>>, vector<1x8x128xf32>
    %851 = vector.shape_cast %850 : vector<1x8x128xf32> to vector<8x128xf32>
    %852 = arith.maximumf %849, %851 : vector<8x128xf32>
    %c36 = arith.constant 36 : index
    %c0_394 = arith.constant 0 : index
    %c0_395 = arith.constant 0 : index
    %853 = vector.load %arg4[%c36, %c0_394, %c0_395] : memref<64x8x128xf32, #tpu.memory_space<vmem>>, vector<1x8x128xf32>
    %854 = vector.shape_cast %853 : vector<1x8x128xf32> to vector<8x128xf32>
    %855 = arith.maximumf %852, %854 : vector<8x128xf32>
    %c37 = arith.constant 37 : index
    %c0_396 = arith.constant 0 : index
    %c0_397 = arith.constant 0 : index
    %856 = vector.load %arg4[%c37, %c0_396, %c0_397] : memref<64x8x128xf32, #tpu.memory_space<vmem>>, vector<1x8x128xf32>
    %857 = vector.shape_cast %856 : vector<1x8x128xf32> to vector<8x128xf32>
    %858 = arith.maximumf %855, %857 : vector<8x128xf32>
    %c38 = arith.constant 38 : index
    %c0_398 = arith.constant 0 : index
    %c0_399 = arith.constant 0 : index
    %859 = vector.load %arg4[%c38, %c0_398, %c0_399] : memref<64x8x128xf32, #tpu.memory_space<vmem>>, vector<1x8x128xf32>
    %860 = vector.shape_cast %859 : vector<1x8x128xf32> to vector<8x128xf32>
    %861 = arith.maximumf %858, %860 : vector<8x128xf32>
    %c39 = arith.constant 39 : index
    %c0_400 = arith.constant 0 : index
    %c0_401 = arith.constant 0 : index
    %862 = vector.load %arg4[%c39, %c0_400, %c0_401] : memref<64x8x128xf32, #tpu.memory_space<vmem>>, vector<1x8x128xf32>
    %863 = vector.shape_cast %862 : vector<1x8x128xf32> to vector<8x128xf32>
    %864 = arith.maximumf %861, %863 : vector<8x128xf32>
    %c40 = arith.constant 40 : index
    %c0_402 = arith.constant 0 : index
    %c0_403 = arith.constant 0 : index
    %865 = vector.load %arg4[%c40, %c0_402, %c0_403] : memref<64x8x128xf32, #tpu.memory_space<vmem>>, vector<1x8x128xf32>
    %866 = vector.shape_cast %865 : vector<1x8x128xf32> to vector<8x128xf32>
    %867 = arith.maximumf %864, %866 : vector<8x128xf32>
    %c41 = arith.constant 41 : index
    %c0_404 = arith.constant 0 : index
    %c0_405 = arith.constant 0 : index
    %868 = vector.load %arg4[%c41, %c0_404, %c0_405] : memref<64x8x128xf32, #tpu.memory_space<vmem>>, vector<1x8x128xf32>
    %869 = vector.shape_cast %868 : vector<1x8x128xf32> to vector<8x128xf32>
    %870 = arith.maximumf %867, %869 : vector<8x128xf32>
    %c42 = arith.constant 42 : index
    %c0_406 = arith.constant 0 : index
    %c0_407 = arith.constant 0 : index
    %871 = vector.load %arg4[%c42, %c0_406, %c0_407] : memref<64x8x128xf32, #tpu.memory_space<vmem>>, vector<1x8x128xf32>
    %872 = vector.shape_cast %871 : vector<1x8x128xf32> to vector<8x128xf32>
    %873 = arith.maximumf %870, %872 : vector<8x128xf32>
    %c43 = arith.constant 43 : index
    %c0_408 = arith.constant 0 : index
    %c0_409 = arith.constant 0 : index
    %874 = vector.load %arg4[%c43, %c0_408, %c0_409] : memref<64x8x128xf32, #tpu.memory_space<vmem>>, vector<1x8x128xf32>
    %875 = vector.shape_cast %874 : vector<1x8x128xf32> to vector<8x128xf32>
    %876 = arith.maximumf %873, %875 : vector<8x128xf32>
    %c44 = arith.constant 44 : index
    %c0_410 = arith.constant 0 : index
    %c0_411 = arith.constant 0 : index
    %877 = vector.load %arg4[%c44, %c0_410, %c0_411] : memref<64x8x128xf32, #tpu.memory_space<vmem>>, vector<1x8x128xf32>
    %878 = vector.shape_cast %877 : vector<1x8x128xf32> to vector<8x128xf32>
    %879 = arith.maximumf %876, %878 : vector<8x128xf32>
    %c45 = arith.constant 45 : index
    %c0_412 = arith.constant 0 : index
    %c0_413 = arith.constant 0 : index
    %880 = vector.load %arg4[%c45, %c0_412, %c0_413] : memref<64x8x128xf32, #tpu.memory_space<vmem>>, vector<1x8x128xf32>
    %881 = vector.shape_cast %880 : vector<1x8x128xf32> to vector<8x128xf32>
    %882 = arith.maximumf %879, %881 : vector<8x128xf32>
    %c46 = arith.constant 46 : index
    %c0_414 = arith.constant 0 : index
    %c0_415 = arith.constant 0 : index
    %883 = vector.load %arg4[%c46, %c0_414, %c0_415] : memref<64x8x128xf32, #tpu.memory_space<vmem>>, vector<1x8x128xf32>
    %884 = vector.shape_cast %883 : vector<1x8x128xf32> to vector<8x128xf32>
    %885 = arith.maximumf %882, %884 : vector<8x128xf32>
    %c47 = arith.constant 47 : index
    %c0_416 = arith.constant 0 : index
    %c0_417 = arith.constant 0 : index
    %886 = vector.load %arg4[%c47, %c0_416, %c0_417] : memref<64x8x128xf32, #tpu.memory_space<vmem>>, vector<1x8x128xf32>
    %887 = vector.shape_cast %886 : vector<1x8x128xf32> to vector<8x128xf32>
    %888 = arith.maximumf %885, %887 : vector<8x128xf32>
    %cst_418 = arith.constant 0.000000e+00 : f32
    %889 = vector.broadcast %cst_418 : f32 to vector<8x128xf32>
    %cst_419 = arith.constant 0.000000e+00 : f32
    %890 = vector.broadcast %cst_419 : f32 to vector<8x128xf32>
    %c32_420 = arith.constant 32 : index
    %c0_421 = arith.constant 0 : index
    %c0_422 = arith.constant 0 : index
    %891 = vector.load %arg4[%c32_420, %c0_421, %c0_422] : memref<64x8x128xf32, #tpu.memory_space<vmem>>, vector<1x8x128xf32>
    %892 = vector.shape_cast %891 : vector<1x8x128xf32> to vector<8x128xf32>
    %893 = arith.subf %892, %888 : vector<8x128xf32>
    %894 = math.exp %893 : vector<8x128xf32>
    %895 = arith.addf %889, %894 : vector<8x128xf32>
    %cst_423 = arith.constant 0.000000e+00 : f32
    %896 = vector.broadcast %cst_423 : f32 to vector<8x128xf32>
    %897 = arith.cmpf oeq, %836, %896 : vector<8x128xf32>
    %cst_424 = arith.constant 0.000000e+00 : f32
    %898 = vector.broadcast %cst_424 : f32 to vector<8x128xf32>
    %899 = arith.select %897, %839, %898 : vector<8x128xi1>, vector<8x128xf32>
    %900 = arith.mulf %899, %892 : vector<8x128xf32>
    %901 = arith.addf %890, %900 : vector<8x128xf32>
    %c33_425 = arith.constant 33 : index
    %c0_426 = arith.constant 0 : index
    %c0_427 = arith.constant 0 : index
    %902 = vector.load %arg4[%c33_425, %c0_426, %c0_427] : memref<64x8x128xf32, #tpu.memory_space<vmem>>, vector<1x8x128xf32>
    %903 = vector.shape_cast %902 : vector<1x8x128xf32> to vector<8x128xf32>
    %904 = arith.subf %903, %888 : vector<8x128xf32>
    %905 = math.exp %904 : vector<8x128xf32>
    %906 = arith.addf %895, %905 : vector<8x128xf32>
    %cst_428 = arith.constant 1.000000e+00 : f32
    %907 = vector.broadcast %cst_428 : f32 to vector<8x128xf32>
    %908 = arith.cmpf oeq, %836, %907 : vector<8x128xf32>
    %cst_429 = arith.constant 0.000000e+00 : f32
    %909 = vector.broadcast %cst_429 : f32 to vector<8x128xf32>
    %910 = arith.select %908, %839, %909 : vector<8x128xi1>, vector<8x128xf32>
    %cst_430 = arith.constant 0.000000e+00 : f32
    %911 = vector.broadcast %cst_430 : f32 to vector<8x128xf32>
    %912 = arith.cmpf oeq, %836, %911 : vector<8x128xf32>
    %cst_431 = arith.constant 0.000000e+00 : f32
    %913 = vector.broadcast %cst_431 : f32 to vector<8x128xf32>
    %914 = arith.select %912, %841, %913 : vector<8x128xi1>, vector<8x128xf32>
    %915 = arith.addf %910, %914 : vector<8x128xf32>
    %916 = arith.mulf %915, %903 : vector<8x128xf32>
    %917 = arith.addf %901, %916 : vector<8x128xf32>
    %c34_432 = arith.constant 34 : index
    %c0_433 = arith.constant 0 : index
    %c0_434 = arith.constant 0 : index
    %918 = vector.load %arg4[%c34_432, %c0_433, %c0_434] : memref<64x8x128xf32, #tpu.memory_space<vmem>>, vector<1x8x128xf32>
    %919 = vector.shape_cast %918 : vector<1x8x128xf32> to vector<8x128xf32>
    %920 = arith.subf %919, %888 : vector<8x128xf32>
    %921 = math.exp %920 : vector<8x128xf32>
    %922 = arith.addf %906, %921 : vector<8x128xf32>
    %cst_435 = arith.constant 2.000000e+00 : f32
    %923 = vector.broadcast %cst_435 : f32 to vector<8x128xf32>
    %924 = arith.cmpf oeq, %836, %923 : vector<8x128xf32>
    %cst_436 = arith.constant 0.000000e+00 : f32
    %925 = vector.broadcast %cst_436 : f32 to vector<8x128xf32>
    %926 = arith.select %924, %839, %925 : vector<8x128xi1>, vector<8x128xf32>
    %cst_437 = arith.constant 1.000000e+00 : f32
    %927 = vector.broadcast %cst_437 : f32 to vector<8x128xf32>
    %928 = arith.cmpf oeq, %836, %927 : vector<8x128xf32>
    %cst_438 = arith.constant 0.000000e+00 : f32
    %929 = vector.broadcast %cst_438 : f32 to vector<8x128xf32>
    %930 = arith.select %928, %841, %929 : vector<8x128xi1>, vector<8x128xf32>
    %931 = arith.addf %926, %930 : vector<8x128xf32>
    %932 = arith.mulf %931, %919 : vector<8x128xf32>
    %933 = arith.addf %917, %932 : vector<8x128xf32>
    %c35_439 = arith.constant 35 : index
    %c0_440 = arith.constant 0 : index
    %c0_441 = arith.constant 0 : index
    %934 = vector.load %arg4[%c35_439, %c0_440, %c0_441] : memref<64x8x128xf32, #tpu.memory_space<vmem>>, vector<1x8x128xf32>
    %935 = vector.shape_cast %934 : vector<1x8x128xf32> to vector<8x128xf32>
    %936 = arith.subf %935, %888 : vector<8x128xf32>
    %937 = math.exp %936 : vector<8x128xf32>
    %938 = arith.addf %922, %937 : vector<8x128xf32>
    %cst_442 = arith.constant 3.000000e+00 : f32
    %939 = vector.broadcast %cst_442 : f32 to vector<8x128xf32>
    %940 = arith.cmpf oeq, %836, %939 : vector<8x128xf32>
    %cst_443 = arith.constant 0.000000e+00 : f32
    %941 = vector.broadcast %cst_443 : f32 to vector<8x128xf32>
    %942 = arith.select %940, %839, %941 : vector<8x128xi1>, vector<8x128xf32>
    %cst_444 = arith.constant 2.000000e+00 : f32
    %943 = vector.broadcast %cst_444 : f32 to vector<8x128xf32>
    %944 = arith.cmpf oeq, %836, %943 : vector<8x128xf32>
    %cst_445 = arith.constant 0.000000e+00 : f32
    %945 = vector.broadcast %cst_445 : f32 to vector<8x128xf32>
    %946 = arith.select %944, %841, %945 : vector<8x128xi1>, vector<8x128xf32>
    %947 = arith.addf %942, %946 : vector<8x128xf32>
    %948 = arith.mulf %947, %935 : vector<8x128xf32>
    %949 = arith.addf %933, %948 : vector<8x128xf32>
    %c36_446 = arith.constant 36 : index
    %c0_447 = arith.constant 0 : index
    %c0_448 = arith.constant 0 : index
    %950 = vector.load %arg4[%c36_446, %c0_447, %c0_448] : memref<64x8x128xf32, #tpu.memory_space<vmem>>, vector<1x8x128xf32>
    %951 = vector.shape_cast %950 : vector<1x8x128xf32> to vector<8x128xf32>
    %952 = arith.subf %951, %888 : vector<8x128xf32>
    %953 = math.exp %952 : vector<8x128xf32>
    %954 = arith.addf %938, %953 : vector<8x128xf32>
    %cst_449 = arith.constant 4.000000e+00 : f32
    %955 = vector.broadcast %cst_449 : f32 to vector<8x128xf32>
    %956 = arith.cmpf oeq, %836, %955 : vector<8x128xf32>
    %cst_450 = arith.constant 0.000000e+00 : f32
    %957 = vector.broadcast %cst_450 : f32 to vector<8x128xf32>
    %958 = arith.select %956, %839, %957 : vector<8x128xi1>, vector<8x128xf32>
    %cst_451 = arith.constant 3.000000e+00 : f32
    %959 = vector.broadcast %cst_451 : f32 to vector<8x128xf32>
    %960 = arith.cmpf oeq, %836, %959 : vector<8x128xf32>
    %cst_452 = arith.constant 0.000000e+00 : f32
    %961 = vector.broadcast %cst_452 : f32 to vector<8x128xf32>
    %962 = arith.select %960, %841, %961 : vector<8x128xi1>, vector<8x128xf32>
    %963 = arith.addf %958, %962 : vector<8x128xf32>
    %964 = arith.mulf %963, %951 : vector<8x128xf32>
    %965 = arith.addf %949, %964 : vector<8x128xf32>
    %c37_453 = arith.constant 37 : index
    %c0_454 = arith.constant 0 : index
    %c0_455 = arith.constant 0 : index
    %966 = vector.load %arg4[%c37_453, %c0_454, %c0_455] : memref<64x8x128xf32, #tpu.memory_space<vmem>>, vector<1x8x128xf32>
    %967 = vector.shape_cast %966 : vector<1x8x128xf32> to vector<8x128xf32>
    %968 = arith.subf %967, %888 : vector<8x128xf32>
    %969 = math.exp %968 : vector<8x128xf32>
    %970 = arith.addf %954, %969 : vector<8x128xf32>
    %cst_456 = arith.constant 5.000000e+00 : f32
    %971 = vector.broadcast %cst_456 : f32 to vector<8x128xf32>
    %972 = arith.cmpf oeq, %836, %971 : vector<8x128xf32>
    %cst_457 = arith.constant 0.000000e+00 : f32
    %973 = vector.broadcast %cst_457 : f32 to vector<8x128xf32>
    %974 = arith.select %972, %839, %973 : vector<8x128xi1>, vector<8x128xf32>
    %cst_458 = arith.constant 4.000000e+00 : f32
    %975 = vector.broadcast %cst_458 : f32 to vector<8x128xf32>
    %976 = arith.cmpf oeq, %836, %975 : vector<8x128xf32>
    %cst_459 = arith.constant 0.000000e+00 : f32
    %977 = vector.broadcast %cst_459 : f32 to vector<8x128xf32>
    %978 = arith.select %976, %841, %977 : vector<8x128xi1>, vector<8x128xf32>
    %979 = arith.addf %974, %978 : vector<8x128xf32>
    %980 = arith.mulf %979, %967 : vector<8x128xf32>
    %981 = arith.addf %965, %980 : vector<8x128xf32>
    %c38_460 = arith.constant 38 : index
    %c0_461 = arith.constant 0 : index
    %c0_462 = arith.constant 0 : index
    %982 = vector.load %arg4[%c38_460, %c0_461, %c0_462] : memref<64x8x128xf32, #tpu.memory_space<vmem>>, vector<1x8x128xf32>
    %983 = vector.shape_cast %982 : vector<1x8x128xf32> to vector<8x128xf32>
    %984 = arith.subf %983, %888 : vector<8x128xf32>
    %985 = math.exp %984 : vector<8x128xf32>
    %986 = arith.addf %970, %985 : vector<8x128xf32>
    %cst_463 = arith.constant 6.000000e+00 : f32
    %987 = vector.broadcast %cst_463 : f32 to vector<8x128xf32>
    %988 = arith.cmpf oeq, %836, %987 : vector<8x128xf32>
    %cst_464 = arith.constant 0.000000e+00 : f32
    %989 = vector.broadcast %cst_464 : f32 to vector<8x128xf32>
    %990 = arith.select %988, %839, %989 : vector<8x128xi1>, vector<8x128xf32>
    %cst_465 = arith.constant 5.000000e+00 : f32
    %991 = vector.broadcast %cst_465 : f32 to vector<8x128xf32>
    %992 = arith.cmpf oeq, %836, %991 : vector<8x128xf32>
    %cst_466 = arith.constant 0.000000e+00 : f32
    %993 = vector.broadcast %cst_466 : f32 to vector<8x128xf32>
    %994 = arith.select %992, %841, %993 : vector<8x128xi1>, vector<8x128xf32>
    %995 = arith.addf %990, %994 : vector<8x128xf32>
    %996 = arith.mulf %995, %983 : vector<8x128xf32>
    %997 = arith.addf %981, %996 : vector<8x128xf32>
    %c39_467 = arith.constant 39 : index
    %c0_468 = arith.constant 0 : index
    %c0_469 = arith.constant 0 : index
    %998 = vector.load %arg4[%c39_467, %c0_468, %c0_469] : memref<64x8x128xf32, #tpu.memory_space<vmem>>, vector<1x8x128xf32>
    %999 = vector.shape_cast %998 : vector<1x8x128xf32> to vector<8x128xf32>
    %1000 = arith.subf %999, %888 : vector<8x128xf32>
    %1001 = math.exp %1000 : vector<8x128xf32>
    %1002 = arith.addf %986, %1001 : vector<8x128xf32>
    %cst_470 = arith.constant 7.000000e+00 : f32
    %1003 = vector.broadcast %cst_470 : f32 to vector<8x128xf32>
    %1004 = arith.cmpf oeq, %836, %1003 : vector<8x128xf32>
    %cst_471 = arith.constant 0.000000e+00 : f32
    %1005 = vector.broadcast %cst_471 : f32 to vector<8x128xf32>
    %1006 = arith.select %1004, %839, %1005 : vector<8x128xi1>, vector<8x128xf32>
    %cst_472 = arith.constant 6.000000e+00 : f32
    %1007 = vector.broadcast %cst_472 : f32 to vector<8x128xf32>
    %1008 = arith.cmpf oeq, %836, %1007 : vector<8x128xf32>
    %cst_473 = arith.constant 0.000000e+00 : f32
    %1009 = vector.broadcast %cst_473 : f32 to vector<8x128xf32>
    %1010 = arith.select %1008, %841, %1009 : vector<8x128xi1>, vector<8x128xf32>
    %1011 = arith.addf %1006, %1010 : vector<8x128xf32>
    %1012 = arith.mulf %1011, %999 : vector<8x128xf32>
    %1013 = arith.addf %997, %1012 : vector<8x128xf32>
    %c40_474 = arith.constant 40 : index
    %c0_475 = arith.constant 0 : index
    %c0_476 = arith.constant 0 : index
    %1014 = vector.load %arg4[%c40_474, %c0_475, %c0_476] : memref<64x8x128xf32, #tpu.memory_space<vmem>>, vector<1x8x128xf32>
    %1015 = vector.shape_cast %1014 : vector<1x8x128xf32> to vector<8x128xf32>
    %1016 = arith.subf %1015, %888 : vector<8x128xf32>
    %1017 = math.exp %1016 : vector<8x128xf32>
    %1018 = arith.addf %1002, %1017 : vector<8x128xf32>
    %cst_477 = arith.constant 8.000000e+00 : f32
    %1019 = vector.broadcast %cst_477 : f32 to vector<8x128xf32>
    %1020 = arith.cmpf oeq, %836, %1019 : vector<8x128xf32>
    %cst_478 = arith.constant 0.000000e+00 : f32
    %1021 = vector.broadcast %cst_478 : f32 to vector<8x128xf32>
    %1022 = arith.select %1020, %839, %1021 : vector<8x128xi1>, vector<8x128xf32>
    %cst_479 = arith.constant 7.000000e+00 : f32
    %1023 = vector.broadcast %cst_479 : f32 to vector<8x128xf32>
    %1024 = arith.cmpf oeq, %836, %1023 : vector<8x128xf32>
    %cst_480 = arith.constant 0.000000e+00 : f32
    %1025 = vector.broadcast %cst_480 : f32 to vector<8x128xf32>
    %1026 = arith.select %1024, %841, %1025 : vector<8x128xi1>, vector<8x128xf32>
    %1027 = arith.addf %1022, %1026 : vector<8x128xf32>
    %1028 = arith.mulf %1027, %1015 : vector<8x128xf32>
    %1029 = arith.addf %1013, %1028 : vector<8x128xf32>
    %c41_481 = arith.constant 41 : index
    %c0_482 = arith.constant 0 : index
    %c0_483 = arith.constant 0 : index
    %1030 = vector.load %arg4[%c41_481, %c0_482, %c0_483] : memref<64x8x128xf32, #tpu.memory_space<vmem>>, vector<1x8x128xf32>
    %1031 = vector.shape_cast %1030 : vector<1x8x128xf32> to vector<8x128xf32>
    %1032 = arith.subf %1031, %888 : vector<8x128xf32>
    %1033 = math.exp %1032 : vector<8x128xf32>
    %1034 = arith.addf %1018, %1033 : vector<8x128xf32>
    %cst_484 = arith.constant 9.000000e+00 : f32
    %1035 = vector.broadcast %cst_484 : f32 to vector<8x128xf32>
    %1036 = arith.cmpf oeq, %836, %1035 : vector<8x128xf32>
    %cst_485 = arith.constant 0.000000e+00 : f32
    %1037 = vector.broadcast %cst_485 : f32 to vector<8x128xf32>
    %1038 = arith.select %1036, %839, %1037 : vector<8x128xi1>, vector<8x128xf32>
    %cst_486 = arith.constant 8.000000e+00 : f32
    %1039 = vector.broadcast %cst_486 : f32 to vector<8x128xf32>
    %1040 = arith.cmpf oeq, %836, %1039 : vector<8x128xf32>
    %cst_487 = arith.constant 0.000000e+00 : f32
    %1041 = vector.broadcast %cst_487 : f32 to vector<8x128xf32>
    %1042 = arith.select %1040, %841, %1041 : vector<8x128xi1>, vector<8x128xf32>
    %1043 = arith.addf %1038, %1042 : vector<8x128xf32>
    %1044 = arith.mulf %1043, %1031 : vector<8x128xf32>
    %1045 = arith.addf %1029, %1044 : vector<8x128xf32>
    %c42_488 = arith.constant 42 : index
    %c0_489 = arith.constant 0 : index
    %c0_490 = arith.constant 0 : index
    %1046 = vector.load %arg4[%c42_488, %c0_489, %c0_490] : memref<64x8x128xf32, #tpu.memory_space<vmem>>, vector<1x8x128xf32>
    %1047 = vector.shape_cast %1046 : vector<1x8x128xf32> to vector<8x128xf32>
    %1048 = arith.subf %1047, %888 : vector<8x128xf32>
    %1049 = math.exp %1048 : vector<8x128xf32>
    %1050 = arith.addf %1034, %1049 : vector<8x128xf32>
    %cst_491 = arith.constant 1.000000e+01 : f32
    %1051 = vector.broadcast %cst_491 : f32 to vector<8x128xf32>
    %1052 = arith.cmpf oeq, %836, %1051 : vector<8x128xf32>
    %cst_492 = arith.constant 0.000000e+00 : f32
    %1053 = vector.broadcast %cst_492 : f32 to vector<8x128xf32>
    %1054 = arith.select %1052, %839, %1053 : vector<8x128xi1>, vector<8x128xf32>
    %cst_493 = arith.constant 9.000000e+00 : f32
    %1055 = vector.broadcast %cst_493 : f32 to vector<8x128xf32>
    %1056 = arith.cmpf oeq, %836, %1055 : vector<8x128xf32>
    %cst_494 = arith.constant 0.000000e+00 : f32
    %1057 = vector.broadcast %cst_494 : f32 to vector<8x128xf32>
    %1058 = arith.select %1056, %841, %1057 : vector<8x128xi1>, vector<8x128xf32>
    %1059 = arith.addf %1054, %1058 : vector<8x128xf32>
    %1060 = arith.mulf %1059, %1047 : vector<8x128xf32>
    %1061 = arith.addf %1045, %1060 : vector<8x128xf32>
    %c43_495 = arith.constant 43 : index
    %c0_496 = arith.constant 0 : index
    %c0_497 = arith.constant 0 : index
    %1062 = vector.load %arg4[%c43_495, %c0_496, %c0_497] : memref<64x8x128xf32, #tpu.memory_space<vmem>>, vector<1x8x128xf32>
    %1063 = vector.shape_cast %1062 : vector<1x8x128xf32> to vector<8x128xf32>
    %1064 = arith.subf %1063, %888 : vector<8x128xf32>
    %1065 = math.exp %1064 : vector<8x128xf32>
    %1066 = arith.addf %1050, %1065 : vector<8x128xf32>
    %cst_498 = arith.constant 1.100000e+01 : f32
    %1067 = vector.broadcast %cst_498 : f32 to vector<8x128xf32>
    %1068 = arith.cmpf oeq, %836, %1067 : vector<8x128xf32>
    %cst_499 = arith.constant 0.000000e+00 : f32
    %1069 = vector.broadcast %cst_499 : f32 to vector<8x128xf32>
    %1070 = arith.select %1068, %839, %1069 : vector<8x128xi1>, vector<8x128xf32>
    %cst_500 = arith.constant 1.000000e+01 : f32
    %1071 = vector.broadcast %cst_500 : f32 to vector<8x128xf32>
    %1072 = arith.cmpf oeq, %836, %1071 : vector<8x128xf32>
    %cst_501 = arith.constant 0.000000e+00 : f32
    %1073 = vector.broadcast %cst_501 : f32 to vector<8x128xf32>
    %1074 = arith.select %1072, %841, %1073 : vector<8x128xi1>, vector<8x128xf32>
    %1075 = arith.addf %1070, %1074 : vector<8x128xf32>
    %1076 = arith.mulf %1075, %1063 : vector<8x128xf32>
    %1077 = arith.addf %1061, %1076 : vector<8x128xf32>
    %c44_502 = arith.constant 44 : index
    %c0_503 = arith.constant 0 : index
    %c0_504 = arith.constant 0 : index
    %1078 = vector.load %arg4[%c44_502, %c0_503, %c0_504] : memref<64x8x128xf32, #tpu.memory_space<vmem>>, vector<1x8x128xf32>
    %1079 = vector.shape_cast %1078 : vector<1x8x128xf32> to vector<8x128xf32>
    %1080 = arith.subf %1079, %888 : vector<8x128xf32>
    %1081 = math.exp %1080 : vector<8x128xf32>
    %1082 = arith.addf %1066, %1081 : vector<8x128xf32>
    %cst_505 = arith.constant 1.200000e+01 : f32
    %1083 = vector.broadcast %cst_505 : f32 to vector<8x128xf32>
    %1084 = arith.cmpf oeq, %836, %1083 : vector<8x128xf32>
    %cst_506 = arith.constant 0.000000e+00 : f32
    %1085 = vector.broadcast %cst_506 : f32 to vector<8x128xf32>
    %1086 = arith.select %1084, %839, %1085 : vector<8x128xi1>, vector<8x128xf32>
    %cst_507 = arith.constant 1.100000e+01 : f32
    %1087 = vector.broadcast %cst_507 : f32 to vector<8x128xf32>
    %1088 = arith.cmpf oeq, %836, %1087 : vector<8x128xf32>
    %cst_508 = arith.constant 0.000000e+00 : f32
    %1089 = vector.broadcast %cst_508 : f32 to vector<8x128xf32>
    %1090 = arith.select %1088, %841, %1089 : vector<8x128xi1>, vector<8x128xf32>
    %1091 = arith.addf %1086, %1090 : vector<8x128xf32>
    %1092 = arith.mulf %1091, %1079 : vector<8x128xf32>
    %1093 = arith.addf %1077, %1092 : vector<8x128xf32>
    %c45_509 = arith.constant 45 : index
    %c0_510 = arith.constant 0 : index
    %c0_511 = arith.constant 0 : index
    %1094 = vector.load %arg4[%c45_509, %c0_510, %c0_511] : memref<64x8x128xf32, #tpu.memory_space<vmem>>, vector<1x8x128xf32>
    %1095 = vector.shape_cast %1094 : vector<1x8x128xf32> to vector<8x128xf32>
    %1096 = arith.subf %1095, %888 : vector<8x128xf32>
    %1097 = math.exp %1096 : vector<8x128xf32>
    %1098 = arith.addf %1082, %1097 : vector<8x128xf32>
    %cst_512 = arith.constant 1.300000e+01 : f32
    %1099 = vector.broadcast %cst_512 : f32 to vector<8x128xf32>
    %1100 = arith.cmpf oeq, %836, %1099 : vector<8x128xf32>
    %cst_513 = arith.constant 0.000000e+00 : f32
    %1101 = vector.broadcast %cst_513 : f32 to vector<8x128xf32>
    %1102 = arith.select %1100, %839, %1101 : vector<8x128xi1>, vector<8x128xf32>
    %cst_514 = arith.constant 1.200000e+01 : f32
    %1103 = vector.broadcast %cst_514 : f32 to vector<8x128xf32>
    %1104 = arith.cmpf oeq, %836, %1103 : vector<8x128xf32>
    %cst_515 = arith.constant 0.000000e+00 : f32
    %1105 = vector.broadcast %cst_515 : f32 to vector<8x128xf32>
    %1106 = arith.select %1104, %841, %1105 : vector<8x128xi1>, vector<8x128xf32>
    %1107 = arith.addf %1102, %1106 : vector<8x128xf32>
    %1108 = arith.mulf %1107, %1095 : vector<8x128xf32>
    %1109 = arith.addf %1093, %1108 : vector<8x128xf32>
    %c46_516 = arith.constant 46 : index
    %c0_517 = arith.constant 0 : index
    %c0_518 = arith.constant 0 : index
    %1110 = vector.load %arg4[%c46_516, %c0_517, %c0_518] : memref<64x8x128xf32, #tpu.memory_space<vmem>>, vector<1x8x128xf32>
    %1111 = vector.shape_cast %1110 : vector<1x8x128xf32> to vector<8x128xf32>
    %1112 = arith.subf %1111, %888 : vector<8x128xf32>
    %1113 = math.exp %1112 : vector<8x128xf32>
    %1114 = arith.addf %1098, %1113 : vector<8x128xf32>
    %cst_519 = arith.constant 1.400000e+01 : f32
    %1115 = vector.broadcast %cst_519 : f32 to vector<8x128xf32>
    %1116 = arith.cmpf oeq, %836, %1115 : vector<8x128xf32>
    %cst_520 = arith.constant 0.000000e+00 : f32
    %1117 = vector.broadcast %cst_520 : f32 to vector<8x128xf32>
    %1118 = arith.select %1116, %839, %1117 : vector<8x128xi1>, vector<8x128xf32>
    %cst_521 = arith.constant 1.300000e+01 : f32
    %1119 = vector.broadcast %cst_521 : f32 to vector<8x128xf32>
    %1120 = arith.cmpf oeq, %836, %1119 : vector<8x128xf32>
    %cst_522 = arith.constant 0.000000e+00 : f32
    %1121 = vector.broadcast %cst_522 : f32 to vector<8x128xf32>
    %1122 = arith.select %1120, %841, %1121 : vector<8x128xi1>, vector<8x128xf32>
    %1123 = arith.addf %1118, %1122 : vector<8x128xf32>
    %1124 = arith.mulf %1123, %1111 : vector<8x128xf32>
    %1125 = arith.addf %1109, %1124 : vector<8x128xf32>
    %c47_523 = arith.constant 47 : index
    %c0_524 = arith.constant 0 : index
    %c0_525 = arith.constant 0 : index
    %1126 = vector.load %arg4[%c47_523, %c0_524, %c0_525] : memref<64x8x128xf32, #tpu.memory_space<vmem>>, vector<1x8x128xf32>
    %1127 = vector.shape_cast %1126 : vector<1x8x128xf32> to vector<8x128xf32>
    %1128 = arith.subf %1127, %888 : vector<8x128xf32>
    %1129 = math.exp %1128 : vector<8x128xf32>
    %1130 = arith.addf %1114, %1129 : vector<8x128xf32>
    %cst_526 = arith.constant 1.500000e+01 : f32
    %1131 = vector.broadcast %cst_526 : f32 to vector<8x128xf32>
    %1132 = arith.cmpf oeq, %836, %1131 : vector<8x128xf32>
    %cst_527 = arith.constant 0.000000e+00 : f32
    %1133 = vector.broadcast %cst_527 : f32 to vector<8x128xf32>
    %1134 = arith.select %1132, %839, %1133 : vector<8x128xi1>, vector<8x128xf32>
    %cst_528 = arith.constant 1.400000e+01 : f32
    %1135 = vector.broadcast %cst_528 : f32 to vector<8x128xf32>
    %1136 = arith.cmpf oeq, %836, %1135 : vector<8x128xf32>
    %cst_529 = arith.constant 0.000000e+00 : f32
    %1137 = vector.broadcast %cst_529 : f32 to vector<8x128xf32>
    %1138 = arith.select %1136, %841, %1137 : vector<8x128xi1>, vector<8x128xf32>
    %1139 = arith.addf %1134, %1138 : vector<8x128xf32>
    %1140 = arith.mulf %1139, %1127 : vector<8x128xf32>
    %1141 = arith.addf %1125, %1140 : vector<8x128xf32>
    %1142 = math.log %1130 : vector<8x128xf32>
    %1143 = arith.addf %888, %1142 : vector<8x128xf32>
    %1144 = arith.subf %1143, %1141 : vector<8x128xf32>
    %1145 = arith.addf %835, %1144 : vector<8x128xf32>
    %1146 = math.floor %214 : vector<8x128xf32>
    %cst_530 = arith.constant 1.000000e+00 : f32
    %1147 = vector.broadcast %cst_530 : f32 to vector<8x128xf32>
    %1148 = arith.addf %1146, %1147 : vector<8x128xf32>
    %1149 = arith.subf %1148, %214 : vector<8x128xf32>
    %cst_531 = arith.constant 1.000000e+00 : f32
    %1150 = vector.broadcast %cst_531 : f32 to vector<8x128xf32>
    %1151 = arith.subf %1150, %1149 : vector<8x128xf32>
    %c48 = arith.constant 48 : index
    %c0_532 = arith.constant 0 : index
    %c0_533 = arith.constant 0 : index
    %1152 = vector.load %arg4[%c48, %c0_532, %c0_533] : memref<64x8x128xf32, #tpu.memory_space<vmem>>, vector<1x8x128xf32>
    %1153 = vector.shape_cast %1152 : vector<1x8x128xf32> to vector<8x128xf32>
    %c49 = arith.constant 49 : index
    %c0_534 = arith.constant 0 : index
    %c0_535 = arith.constant 0 : index
    %1154 = vector.load %arg4[%c49, %c0_534, %c0_535] : memref<64x8x128xf32, #tpu.memory_space<vmem>>, vector<1x8x128xf32>
    %1155 = vector.shape_cast %1154 : vector<1x8x128xf32> to vector<8x128xf32>
    %1156 = arith.maximumf %1153, %1155 : vector<8x128xf32>
    %c50 = arith.constant 50 : index
    %c0_536 = arith.constant 0 : index
    %c0_537 = arith.constant 0 : index
    %1157 = vector.load %arg4[%c50, %c0_536, %c0_537] : memref<64x8x128xf32, #tpu.memory_space<vmem>>, vector<1x8x128xf32>
    %1158 = vector.shape_cast %1157 : vector<1x8x128xf32> to vector<8x128xf32>
    %1159 = arith.maximumf %1156, %1158 : vector<8x128xf32>
    %c51 = arith.constant 51 : index
    %c0_538 = arith.constant 0 : index
    %c0_539 = arith.constant 0 : index
    %1160 = vector.load %arg4[%c51, %c0_538, %c0_539] : memref<64x8x128xf32, #tpu.memory_space<vmem>>, vector<1x8x128xf32>
    %1161 = vector.shape_cast %1160 : vector<1x8x128xf32> to vector<8x128xf32>
    %1162 = arith.maximumf %1159, %1161 : vector<8x128xf32>
    %c52 = arith.constant 52 : index
    %c0_540 = arith.constant 0 : index
    %c0_541 = arith.constant 0 : index
    %1163 = vector.load %arg4[%c52, %c0_540, %c0_541] : memref<64x8x128xf32, #tpu.memory_space<vmem>>, vector<1x8x128xf32>
    %1164 = vector.shape_cast %1163 : vector<1x8x128xf32> to vector<8x128xf32>
    %1165 = arith.maximumf %1162, %1164 : vector<8x128xf32>
    %c53 = arith.constant 53 : index
    %c0_542 = arith.constant 0 : index
    %c0_543 = arith.constant 0 : index
    %1166 = vector.load %arg4[%c53, %c0_542, %c0_543] : memref<64x8x128xf32, #tpu.memory_space<vmem>>, vector<1x8x128xf32>
    %1167 = vector.shape_cast %1166 : vector<1x8x128xf32> to vector<8x128xf32>
    %1168 = arith.maximumf %1165, %1167 : vector<8x128xf32>
    %c54 = arith.constant 54 : index
    %c0_544 = arith.constant 0 : index
    %c0_545 = arith.constant 0 : index
    %1169 = vector.load %arg4[%c54, %c0_544, %c0_545] : memref<64x8x128xf32, #tpu.memory_space<vmem>>, vector<1x8x128xf32>
    %1170 = vector.shape_cast %1169 : vector<1x8x128xf32> to vector<8x128xf32>
    %1171 = arith.maximumf %1168, %1170 : vector<8x128xf32>
    %c55 = arith.constant 55 : index
    %c0_546 = arith.constant 0 : index
    %c0_547 = arith.constant 0 : index
    %1172 = vector.load %arg4[%c55, %c0_546, %c0_547] : memref<64x8x128xf32, #tpu.memory_space<vmem>>, vector<1x8x128xf32>
    %1173 = vector.shape_cast %1172 : vector<1x8x128xf32> to vector<8x128xf32>
    %1174 = arith.maximumf %1171, %1173 : vector<8x128xf32>
    %c56 = arith.constant 56 : index
    %c0_548 = arith.constant 0 : index
    %c0_549 = arith.constant 0 : index
    %1175 = vector.load %arg4[%c56, %c0_548, %c0_549] : memref<64x8x128xf32, #tpu.memory_space<vmem>>, vector<1x8x128xf32>
    %1176 = vector.shape_cast %1175 : vector<1x8x128xf32> to vector<8x128xf32>
    %1177 = arith.maximumf %1174, %1176 : vector<8x128xf32>
    %c57 = arith.constant 57 : index
    %c0_550 = arith.constant 0 : index
    %c0_551 = arith.constant 0 : index
    %1178 = vector.load %arg4[%c57, %c0_550, %c0_551] : memref<64x8x128xf32, #tpu.memory_space<vmem>>, vector<1x8x128xf32>
    %1179 = vector.shape_cast %1178 : vector<1x8x128xf32> to vector<8x128xf32>
    %1180 = arith.maximumf %1177, %1179 : vector<8x128xf32>
    %c58 = arith.constant 58 : index
    %c0_552 = arith.constant 0 : index
    %c0_553 = arith.constant 0 : index
    %1181 = vector.load %arg4[%c58, %c0_552, %c0_553] : memref<64x8x128xf32, #tpu.memory_space<vmem>>, vector<1x8x128xf32>
    %1182 = vector.shape_cast %1181 : vector<1x8x128xf32> to vector<8x128xf32>
    %1183 = arith.maximumf %1180, %1182 : vector<8x128xf32>
    %c59 = arith.constant 59 : index
    %c0_554 = arith.constant 0 : index
    %c0_555 = arith.constant 0 : index
    %1184 = vector.load %arg4[%c59, %c0_554, %c0_555] : memref<64x8x128xf32, #tpu.memory_space<vmem>>, vector<1x8x128xf32>
    %1185 = vector.shape_cast %1184 : vector<1x8x128xf32> to vector<8x128xf32>
    %1186 = arith.maximumf %1183, %1185 : vector<8x128xf32>
    %c60 = arith.constant 60 : index
    %c0_556 = arith.constant 0 : index
    %c0_557 = arith.constant 0 : index
    %1187 = vector.load %arg4[%c60, %c0_556, %c0_557] : memref<64x8x128xf32, #tpu.memory_space<vmem>>, vector<1x8x128xf32>
    %1188 = vector.shape_cast %1187 : vector<1x8x128xf32> to vector<8x128xf32>
    %1189 = arith.maximumf %1186, %1188 : vector<8x128xf32>
    %c61 = arith.constant 61 : index
    %c0_558 = arith.constant 0 : index
    %c0_559 = arith.constant 0 : index
    %1190 = vector.load %arg4[%c61, %c0_558, %c0_559] : memref<64x8x128xf32, #tpu.memory_space<vmem>>, vector<1x8x128xf32>
    %1191 = vector.shape_cast %1190 : vector<1x8x128xf32> to vector<8x128xf32>
    %1192 = arith.maximumf %1189, %1191 : vector<8x128xf32>
    %c62 = arith.constant 62 : index
    %c0_560 = arith.constant 0 : index
    %c0_561 = arith.constant 0 : index
    %1193 = vector.load %arg4[%c62, %c0_560, %c0_561] : memref<64x8x128xf32, #tpu.memory_space<vmem>>, vector<1x8x128xf32>
    %1194 = vector.shape_cast %1193 : vector<1x8x128xf32> to vector<8x128xf32>
    %1195 = arith.maximumf %1192, %1194 : vector<8x128xf32>
    %c63 = arith.constant 63 : index
    %c0_562 = arith.constant 0 : index
    %c0_563 = arith.constant 0 : index
    %1196 = vector.load %arg4[%c63, %c0_562, %c0_563] : memref<64x8x128xf32, #tpu.memory_space<vmem>>, vector<1x8x128xf32>
    %1197 = vector.shape_cast %1196 : vector<1x8x128xf32> to vector<8x128xf32>
    %1198 = arith.maximumf %1195, %1197 : vector<8x128xf32>
    %cst_564 = arith.constant 0.000000e+00 : f32
    %1199 = vector.broadcast %cst_564 : f32 to vector<8x128xf32>
    %cst_565 = arith.constant 0.000000e+00 : f32
    %1200 = vector.broadcast %cst_565 : f32 to vector<8x128xf32>
    %c48_566 = arith.constant 48 : index
    %c0_567 = arith.constant 0 : index
    %c0_568 = arith.constant 0 : index
    %1201 = vector.load %arg4[%c48_566, %c0_567, %c0_568] : memref<64x8x128xf32, #tpu.memory_space<vmem>>, vector<1x8x128xf32>
    %1202 = vector.shape_cast %1201 : vector<1x8x128xf32> to vector<8x128xf32>
    %1203 = arith.subf %1202, %1198 : vector<8x128xf32>
    %1204 = math.exp %1203 : vector<8x128xf32>
    %1205 = arith.addf %1199, %1204 : vector<8x128xf32>
    %cst_569 = arith.constant 0.000000e+00 : f32
    %1206 = vector.broadcast %cst_569 : f32 to vector<8x128xf32>
    %1207 = arith.cmpf oeq, %1146, %1206 : vector<8x128xf32>
    %cst_570 = arith.constant 0.000000e+00 : f32
    %1208 = vector.broadcast %cst_570 : f32 to vector<8x128xf32>
    %1209 = arith.select %1207, %1149, %1208 : vector<8x128xi1>, vector<8x128xf32>
    %1210 = arith.mulf %1209, %1202 : vector<8x128xf32>
    %1211 = arith.addf %1200, %1210 : vector<8x128xf32>
    %c49_571 = arith.constant 49 : index
    %c0_572 = arith.constant 0 : index
    %c0_573 = arith.constant 0 : index
    %1212 = vector.load %arg4[%c49_571, %c0_572, %c0_573] : memref<64x8x128xf32, #tpu.memory_space<vmem>>, vector<1x8x128xf32>
    %1213 = vector.shape_cast %1212 : vector<1x8x128xf32> to vector<8x128xf32>
    %1214 = arith.subf %1213, %1198 : vector<8x128xf32>
    %1215 = math.exp %1214 : vector<8x128xf32>
    %1216 = arith.addf %1205, %1215 : vector<8x128xf32>
    %cst_574 = arith.constant 1.000000e+00 : f32
    %1217 = vector.broadcast %cst_574 : f32 to vector<8x128xf32>
    %1218 = arith.cmpf oeq, %1146, %1217 : vector<8x128xf32>
    %cst_575 = arith.constant 0.000000e+00 : f32
    %1219 = vector.broadcast %cst_575 : f32 to vector<8x128xf32>
    %1220 = arith.select %1218, %1149, %1219 : vector<8x128xi1>, vector<8x128xf32>
    %cst_576 = arith.constant 0.000000e+00 : f32
    %1221 = vector.broadcast %cst_576 : f32 to vector<8x128xf32>
    %1222 = arith.cmpf oeq, %1146, %1221 : vector<8x128xf32>
    %cst_577 = arith.constant 0.000000e+00 : f32
    %1223 = vector.broadcast %cst_577 : f32 to vector<8x128xf32>
    %1224 = arith.select %1222, %1151, %1223 : vector<8x128xi1>, vector<8x128xf32>
    %1225 = arith.addf %1220, %1224 : vector<8x128xf32>
    %1226 = arith.mulf %1225, %1213 : vector<8x128xf32>
    %1227 = arith.addf %1211, %1226 : vector<8x128xf32>
    %c50_578 = arith.constant 50 : index
    %c0_579 = arith.constant 0 : index
    %c0_580 = arith.constant 0 : index
    %1228 = vector.load %arg4[%c50_578, %c0_579, %c0_580] : memref<64x8x128xf32, #tpu.memory_space<vmem>>, vector<1x8x128xf32>
    %1229 = vector.shape_cast %1228 : vector<1x8x128xf32> to vector<8x128xf32>
    %1230 = arith.subf %1229, %1198 : vector<8x128xf32>
    %1231 = math.exp %1230 : vector<8x128xf32>
    %1232 = arith.addf %1216, %1231 : vector<8x128xf32>
    %cst_581 = arith.constant 2.000000e+00 : f32
    %1233 = vector.broadcast %cst_581 : f32 to vector<8x128xf32>
    %1234 = arith.cmpf oeq, %1146, %1233 : vector<8x128xf32>
    %cst_582 = arith.constant 0.000000e+00 : f32
    %1235 = vector.broadcast %cst_582 : f32 to vector<8x128xf32>
    %1236 = arith.select %1234, %1149, %1235 : vector<8x128xi1>, vector<8x128xf32>
    %cst_583 = arith.constant 1.000000e+00 : f32
    %1237 = vector.broadcast %cst_583 : f32 to vector<8x128xf32>
    %1238 = arith.cmpf oeq, %1146, %1237 : vector<8x128xf32>
    %cst_584 = arith.constant 0.000000e+00 : f32
    %1239 = vector.broadcast %cst_584 : f32 to vector<8x128xf32>
    %1240 = arith.select %1238, %1151, %1239 : vector<8x128xi1>, vector<8x128xf32>
    %1241 = arith.addf %1236, %1240 : vector<8x128xf32>
    %1242 = arith.mulf %1241, %1229 : vector<8x128xf32>
    %1243 = arith.addf %1227, %1242 : vector<8x128xf32>
    %c51_585 = arith.constant 51 : index
    %c0_586 = arith.constant 0 : index
    %c0_587 = arith.constant 0 : index
    %1244 = vector.load %arg4[%c51_585, %c0_586, %c0_587] : memref<64x8x128xf32, #tpu.memory_space<vmem>>, vector<1x8x128xf32>
    %1245 = vector.shape_cast %1244 : vector<1x8x128xf32> to vector<8x128xf32>
    %1246 = arith.subf %1245, %1198 : vector<8x128xf32>
    %1247 = math.exp %1246 : vector<8x128xf32>
    %1248 = arith.addf %1232, %1247 : vector<8x128xf32>
    %cst_588 = arith.constant 3.000000e+00 : f32
    %1249 = vector.broadcast %cst_588 : f32 to vector<8x128xf32>
    %1250 = arith.cmpf oeq, %1146, %1249 : vector<8x128xf32>
    %cst_589 = arith.constant 0.000000e+00 : f32
    %1251 = vector.broadcast %cst_589 : f32 to vector<8x128xf32>
    %1252 = arith.select %1250, %1149, %1251 : vector<8x128xi1>, vector<8x128xf32>
    %cst_590 = arith.constant 2.000000e+00 : f32
    %1253 = vector.broadcast %cst_590 : f32 to vector<8x128xf32>
    %1254 = arith.cmpf oeq, %1146, %1253 : vector<8x128xf32>
    %cst_591 = arith.constant 0.000000e+00 : f32
    %1255 = vector.broadcast %cst_591 : f32 to vector<8x128xf32>
    %1256 = arith.select %1254, %1151, %1255 : vector<8x128xi1>, vector<8x128xf32>
    %1257 = arith.addf %1252, %1256 : vector<8x128xf32>
    %1258 = arith.mulf %1257, %1245 : vector<8x128xf32>
    %1259 = arith.addf %1243, %1258 : vector<8x128xf32>
    %c52_592 = arith.constant 52 : index
    %c0_593 = arith.constant 0 : index
    %c0_594 = arith.constant 0 : index
    %1260 = vector.load %arg4[%c52_592, %c0_593, %c0_594] : memref<64x8x128xf32, #tpu.memory_space<vmem>>, vector<1x8x128xf32>
    %1261 = vector.shape_cast %1260 : vector<1x8x128xf32> to vector<8x128xf32>
    %1262 = arith.subf %1261, %1198 : vector<8x128xf32>
    %1263 = math.exp %1262 : vector<8x128xf32>
    %1264 = arith.addf %1248, %1263 : vector<8x128xf32>
    %cst_595 = arith.constant 4.000000e+00 : f32
    %1265 = vector.broadcast %cst_595 : f32 to vector<8x128xf32>
    %1266 = arith.cmpf oeq, %1146, %1265 : vector<8x128xf32>
    %cst_596 = arith.constant 0.000000e+00 : f32
    %1267 = vector.broadcast %cst_596 : f32 to vector<8x128xf32>
    %1268 = arith.select %1266, %1149, %1267 : vector<8x128xi1>, vector<8x128xf32>
    %cst_597 = arith.constant 3.000000e+00 : f32
    %1269 = vector.broadcast %cst_597 : f32 to vector<8x128xf32>
    %1270 = arith.cmpf oeq, %1146, %1269 : vector<8x128xf32>
    %cst_598 = arith.constant 0.000000e+00 : f32
    %1271 = vector.broadcast %cst_598 : f32 to vector<8x128xf32>
    %1272 = arith.select %1270, %1151, %1271 : vector<8x128xi1>, vector<8x128xf32>
    %1273 = arith.addf %1268, %1272 : vector<8x128xf32>
    %1274 = arith.mulf %1273, %1261 : vector<8x128xf32>
    %1275 = arith.addf %1259, %1274 : vector<8x128xf32>
    %c53_599 = arith.constant 53 : index
    %c0_600 = arith.constant 0 : index
    %c0_601 = arith.constant 0 : index
    %1276 = vector.load %arg4[%c53_599, %c0_600, %c0_601] : memref<64x8x128xf32, #tpu.memory_space<vmem>>, vector<1x8x128xf32>
    %1277 = vector.shape_cast %1276 : vector<1x8x128xf32> to vector<8x128xf32>
    %1278 = arith.subf %1277, %1198 : vector<8x128xf32>
    %1279 = math.exp %1278 : vector<8x128xf32>
    %1280 = arith.addf %1264, %1279 : vector<8x128xf32>
    %cst_602 = arith.constant 5.000000e+00 : f32
    %1281 = vector.broadcast %cst_602 : f32 to vector<8x128xf32>
    %1282 = arith.cmpf oeq, %1146, %1281 : vector<8x128xf32>
    %cst_603 = arith.constant 0.000000e+00 : f32
    %1283 = vector.broadcast %cst_603 : f32 to vector<8x128xf32>
    %1284 = arith.select %1282, %1149, %1283 : vector<8x128xi1>, vector<8x128xf32>
    %cst_604 = arith.constant 4.000000e+00 : f32
    %1285 = vector.broadcast %cst_604 : f32 to vector<8x128xf32>
    %1286 = arith.cmpf oeq, %1146, %1285 : vector<8x128xf32>
    %cst_605 = arith.constant 0.000000e+00 : f32
    %1287 = vector.broadcast %cst_605 : f32 to vector<8x128xf32>
    %1288 = arith.select %1286, %1151, %1287 : vector<8x128xi1>, vector<8x128xf32>
    %1289 = arith.addf %1284, %1288 : vector<8x128xf32>
    %1290 = arith.mulf %1289, %1277 : vector<8x128xf32>
    %1291 = arith.addf %1275, %1290 : vector<8x128xf32>
    %c54_606 = arith.constant 54 : index
    %c0_607 = arith.constant 0 : index
    %c0_608 = arith.constant 0 : index
    %1292 = vector.load %arg4[%c54_606, %c0_607, %c0_608] : memref<64x8x128xf32, #tpu.memory_space<vmem>>, vector<1x8x128xf32>
    %1293 = vector.shape_cast %1292 : vector<1x8x128xf32> to vector<8x128xf32>
    %1294 = arith.subf %1293, %1198 : vector<8x128xf32>
    %1295 = math.exp %1294 : vector<8x128xf32>
    %1296 = arith.addf %1280, %1295 : vector<8x128xf32>
    %cst_609 = arith.constant 6.000000e+00 : f32
    %1297 = vector.broadcast %cst_609 : f32 to vector<8x128xf32>
    %1298 = arith.cmpf oeq, %1146, %1297 : vector<8x128xf32>
    %cst_610 = arith.constant 0.000000e+00 : f32
    %1299 = vector.broadcast %cst_610 : f32 to vector<8x128xf32>
    %1300 = arith.select %1298, %1149, %1299 : vector<8x128xi1>, vector<8x128xf32>
    %cst_611 = arith.constant 5.000000e+00 : f32
    %1301 = vector.broadcast %cst_611 : f32 to vector<8x128xf32>
    %1302 = arith.cmpf oeq, %1146, %1301 : vector<8x128xf32>
    %cst_612 = arith.constant 0.000000e+00 : f32
    %1303 = vector.broadcast %cst_612 : f32 to vector<8x128xf32>
    %1304 = arith.select %1302, %1151, %1303 : vector<8x128xi1>, vector<8x128xf32>
    %1305 = arith.addf %1300, %1304 : vector<8x128xf32>
    %1306 = arith.mulf %1305, %1293 : vector<8x128xf32>
    %1307 = arith.addf %1291, %1306 : vector<8x128xf32>
    %c55_613 = arith.constant 55 : index
    %c0_614 = arith.constant 0 : index
    %c0_615 = arith.constant 0 : index
    %1308 = vector.load %arg4[%c55_613, %c0_614, %c0_615] : memref<64x8x128xf32, #tpu.memory_space<vmem>>, vector<1x8x128xf32>
    %1309 = vector.shape_cast %1308 : vector<1x8x128xf32> to vector<8x128xf32>
    %1310 = arith.subf %1309, %1198 : vector<8x128xf32>
    %1311 = math.exp %1310 : vector<8x128xf32>
    %1312 = arith.addf %1296, %1311 : vector<8x128xf32>
    %cst_616 = arith.constant 7.000000e+00 : f32
    %1313 = vector.broadcast %cst_616 : f32 to vector<8x128xf32>
    %1314 = arith.cmpf oeq, %1146, %1313 : vector<8x128xf32>
    %cst_617 = arith.constant 0.000000e+00 : f32
    %1315 = vector.broadcast %cst_617 : f32 to vector<8x128xf32>
    %1316 = arith.select %1314, %1149, %1315 : vector<8x128xi1>, vector<8x128xf32>
    %cst_618 = arith.constant 6.000000e+00 : f32
    %1317 = vector.broadcast %cst_618 : f32 to vector<8x128xf32>
    %1318 = arith.cmpf oeq, %1146, %1317 : vector<8x128xf32>
    %cst_619 = arith.constant 0.000000e+00 : f32
    %1319 = vector.broadcast %cst_619 : f32 to vector<8x128xf32>
    %1320 = arith.select %1318, %1151, %1319 : vector<8x128xi1>, vector<8x128xf32>
    %1321 = arith.addf %1316, %1320 : vector<8x128xf32>
    %1322 = arith.mulf %1321, %1309 : vector<8x128xf32>
    %1323 = arith.addf %1307, %1322 : vector<8x128xf32>
    %c56_620 = arith.constant 56 : index
    %c0_621 = arith.constant 0 : index
    %c0_622 = arith.constant 0 : index
    %1324 = vector.load %arg4[%c56_620, %c0_621, %c0_622] : memref<64x8x128xf32, #tpu.memory_space<vmem>>, vector<1x8x128xf32>
    %1325 = vector.shape_cast %1324 : vector<1x8x128xf32> to vector<8x128xf32>
    %1326 = arith.subf %1325, %1198 : vector<8x128xf32>
    %1327 = math.exp %1326 : vector<8x128xf32>
    %1328 = arith.addf %1312, %1327 : vector<8x128xf32>
    %cst_623 = arith.constant 8.000000e+00 : f32
    %1329 = vector.broadcast %cst_623 : f32 to vector<8x128xf32>
    %1330 = arith.cmpf oeq, %1146, %1329 : vector<8x128xf32>
    %cst_624 = arith.constant 0.000000e+00 : f32
    %1331 = vector.broadcast %cst_624 : f32 to vector<8x128xf32>
    %1332 = arith.select %1330, %1149, %1331 : vector<8x128xi1>, vector<8x128xf32>
    %cst_625 = arith.constant 7.000000e+00 : f32
    %1333 = vector.broadcast %cst_625 : f32 to vector<8x128xf32>
    %1334 = arith.cmpf oeq, %1146, %1333 : vector<8x128xf32>
    %cst_626 = arith.constant 0.000000e+00 : f32
    %1335 = vector.broadcast %cst_626 : f32 to vector<8x128xf32>
    %1336 = arith.select %1334, %1151, %1335 : vector<8x128xi1>, vector<8x128xf32>
    %1337 = arith.addf %1332, %1336 : vector<8x128xf32>
    %1338 = arith.mulf %1337, %1325 : vector<8x128xf32>
    %1339 = arith.addf %1323, %1338 : vector<8x128xf32>
    %c57_627 = arith.constant 57 : index
    %c0_628 = arith.constant 0 : index
    %c0_629 = arith.constant 0 : index
    %1340 = vector.load %arg4[%c57_627, %c0_628, %c0_629] : memref<64x8x128xf32, #tpu.memory_space<vmem>>, vector<1x8x128xf32>
    %1341 = vector.shape_cast %1340 : vector<1x8x128xf32> to vector<8x128xf32>
    %1342 = arith.subf %1341, %1198 : vector<8x128xf32>
    %1343 = math.exp %1342 : vector<8x128xf32>
    %1344 = arith.addf %1328, %1343 : vector<8x128xf32>
    %cst_630 = arith.constant 9.000000e+00 : f32
    %1345 = vector.broadcast %cst_630 : f32 to vector<8x128xf32>
    %1346 = arith.cmpf oeq, %1146, %1345 : vector<8x128xf32>
    %cst_631 = arith.constant 0.000000e+00 : f32
    %1347 = vector.broadcast %cst_631 : f32 to vector<8x128xf32>
    %1348 = arith.select %1346, %1149, %1347 : vector<8x128xi1>, vector<8x128xf32>
    %cst_632 = arith.constant 8.000000e+00 : f32
    %1349 = vector.broadcast %cst_632 : f32 to vector<8x128xf32>
    %1350 = arith.cmpf oeq, %1146, %1349 : vector<8x128xf32>
    %cst_633 = arith.constant 0.000000e+00 : f32
    %1351 = vector.broadcast %cst_633 : f32 to vector<8x128xf32>
    %1352 = arith.select %1350, %1151, %1351 : vector<8x128xi1>, vector<8x128xf32>
    %1353 = arith.addf %1348, %1352 : vector<8x128xf32>
    %1354 = arith.mulf %1353, %1341 : vector<8x128xf32>
    %1355 = arith.addf %1339, %1354 : vector<8x128xf32>
    %c58_634 = arith.constant 58 : index
    %c0_635 = arith.constant 0 : index
    %c0_636 = arith.constant 0 : index
    %1356 = vector.load %arg4[%c58_634, %c0_635, %c0_636] : memref<64x8x128xf32, #tpu.memory_space<vmem>>, vector<1x8x128xf32>
    %1357 = vector.shape_cast %1356 : vector<1x8x128xf32> to vector<8x128xf32>
    %1358 = arith.subf %1357, %1198 : vector<8x128xf32>
    %1359 = math.exp %1358 : vector<8x128xf32>
    %1360 = arith.addf %1344, %1359 : vector<8x128xf32>
    %cst_637 = arith.constant 1.000000e+01 : f32
    %1361 = vector.broadcast %cst_637 : f32 to vector<8x128xf32>
    %1362 = arith.cmpf oeq, %1146, %1361 : vector<8x128xf32>
    %cst_638 = arith.constant 0.000000e+00 : f32
    %1363 = vector.broadcast %cst_638 : f32 to vector<8x128xf32>
    %1364 = arith.select %1362, %1149, %1363 : vector<8x128xi1>, vector<8x128xf32>
    %cst_639 = arith.constant 9.000000e+00 : f32
    %1365 = vector.broadcast %cst_639 : f32 to vector<8x128xf32>
    %1366 = arith.cmpf oeq, %1146, %1365 : vector<8x128xf32>
    %cst_640 = arith.constant 0.000000e+00 : f32
    %1367 = vector.broadcast %cst_640 : f32 to vector<8x128xf32>
    %1368 = arith.select %1366, %1151, %1367 : vector<8x128xi1>, vector<8x128xf32>
    %1369 = arith.addf %1364, %1368 : vector<8x128xf32>
    %1370 = arith.mulf %1369, %1357 : vector<8x128xf32>
    %1371 = arith.addf %1355, %1370 : vector<8x128xf32>
    %c59_641 = arith.constant 59 : index
    %c0_642 = arith.constant 0 : index
    %c0_643 = arith.constant 0 : index
    %1372 = vector.load %arg4[%c59_641, %c0_642, %c0_643] : memref<64x8x128xf32, #tpu.memory_space<vmem>>, vector<1x8x128xf32>
    %1373 = vector.shape_cast %1372 : vector<1x8x128xf32> to vector<8x128xf32>
    %1374 = arith.subf %1373, %1198 : vector<8x128xf32>
    %1375 = math.exp %1374 : vector<8x128xf32>
    %1376 = arith.addf %1360, %1375 : vector<8x128xf32>
    %cst_644 = arith.constant 1.100000e+01 : f32
    %1377 = vector.broadcast %cst_644 : f32 to vector<8x128xf32>
    %1378 = arith.cmpf oeq, %1146, %1377 : vector<8x128xf32>
    %cst_645 = arith.constant 0.000000e+00 : f32
    %1379 = vector.broadcast %cst_645 : f32 to vector<8x128xf32>
    %1380 = arith.select %1378, %1149, %1379 : vector<8x128xi1>, vector<8x128xf32>
    %cst_646 = arith.constant 1.000000e+01 : f32
    %1381 = vector.broadcast %cst_646 : f32 to vector<8x128xf32>
    %1382 = arith.cmpf oeq, %1146, %1381 : vector<8x128xf32>
    %cst_647 = arith.constant 0.000000e+00 : f32
    %1383 = vector.broadcast %cst_647 : f32 to vector<8x128xf32>
    %1384 = arith.select %1382, %1151, %1383 : vector<8x128xi1>, vector<8x128xf32>
    %1385 = arith.addf %1380, %1384 : vector<8x128xf32>
    %1386 = arith.mulf %1385, %1373 : vector<8x128xf32>
    %1387 = arith.addf %1371, %1386 : vector<8x128xf32>
    %c60_648 = arith.constant 60 : index
    %c0_649 = arith.constant 0 : index
    %c0_650 = arith.constant 0 : index
    %1388 = vector.load %arg4[%c60_648, %c0_649, %c0_650] : memref<64x8x128xf32, #tpu.memory_space<vmem>>, vector<1x8x128xf32>
    %1389 = vector.shape_cast %1388 : vector<1x8x128xf32> to vector<8x128xf32>
    %1390 = arith.subf %1389, %1198 : vector<8x128xf32>
    %1391 = math.exp %1390 : vector<8x128xf32>
    %1392 = arith.addf %1376, %1391 : vector<8x128xf32>
    %cst_651 = arith.constant 1.200000e+01 : f32
    %1393 = vector.broadcast %cst_651 : f32 to vector<8x128xf32>
    %1394 = arith.cmpf oeq, %1146, %1393 : vector<8x128xf32>
    %cst_652 = arith.constant 0.000000e+00 : f32
    %1395 = vector.broadcast %cst_652 : f32 to vector<8x128xf32>
    %1396 = arith.select %1394, %1149, %1395 : vector<8x128xi1>, vector<8x128xf32>
    %cst_653 = arith.constant 1.100000e+01 : f32
    %1397 = vector.broadcast %cst_653 : f32 to vector<8x128xf32>
    %1398 = arith.cmpf oeq, %1146, %1397 : vector<8x128xf32>
    %cst_654 = arith.constant 0.000000e+00 : f32
    %1399 = vector.broadcast %cst_654 : f32 to vector<8x128xf32>
    %1400 = arith.select %1398, %1151, %1399 : vector<8x128xi1>, vector<8x128xf32>
    %1401 = arith.addf %1396, %1400 : vector<8x128xf32>
    %1402 = arith.mulf %1401, %1389 : vector<8x128xf32>
    %1403 = arith.addf %1387, %1402 : vector<8x128xf32>
    %c61_655 = arith.constant 61 : index
    %c0_656 = arith.constant 0 : index
    %c0_657 = arith.constant 0 : index
    %1404 = vector.load %arg4[%c61_655, %c0_656, %c0_657] : memref<64x8x128xf32, #tpu.memory_space<vmem>>, vector<1x8x128xf32>
    %1405 = vector.shape_cast %1404 : vector<1x8x128xf32> to vector<8x128xf32>
    %1406 = arith.subf %1405, %1198 : vector<8x128xf32>
    %1407 = math.exp %1406 : vector<8x128xf32>
    %1408 = arith.addf %1392, %1407 : vector<8x128xf32>
    %cst_658 = arith.constant 1.300000e+01 : f32
    %1409 = vector.broadcast %cst_658 : f32 to vector<8x128xf32>
    %1410 = arith.cmpf oeq, %1146, %1409 : vector<8x128xf32>
    %cst_659 = arith.constant 0.000000e+00 : f32
    %1411 = vector.broadcast %cst_659 : f32 to vector<8x128xf32>
    %1412 = arith.select %1410, %1149, %1411 : vector<8x128xi1>, vector<8x128xf32>
    %cst_660 = arith.constant 1.200000e+01 : f32
    %1413 = vector.broadcast %cst_660 : f32 to vector<8x128xf32>
    %1414 = arith.cmpf oeq, %1146, %1413 : vector<8x128xf32>
    %cst_661 = arith.constant 0.000000e+00 : f32
    %1415 = vector.broadcast %cst_661 : f32 to vector<8x128xf32>
    %1416 = arith.select %1414, %1151, %1415 : vector<8x128xi1>, vector<8x128xf32>
    %1417 = arith.addf %1412, %1416 : vector<8x128xf32>
    %1418 = arith.mulf %1417, %1405 : vector<8x128xf32>
    %1419 = arith.addf %1403, %1418 : vector<8x128xf32>
    %c62_662 = arith.constant 62 : index
    %c0_663 = arith.constant 0 : index
    %c0_664 = arith.constant 0 : index
    %1420 = vector.load %arg4[%c62_662, %c0_663, %c0_664] : memref<64x8x128xf32, #tpu.memory_space<vmem>>, vector<1x8x128xf32>
    %1421 = vector.shape_cast %1420 : vector<1x8x128xf32> to vector<8x128xf32>
    %1422 = arith.subf %1421, %1198 : vector<8x128xf32>
    %1423 = math.exp %1422 : vector<8x128xf32>
    %1424 = arith.addf %1408, %1423 : vector<8x128xf32>
    %cst_665 = arith.constant 1.400000e+01 : f32
    %1425 = vector.broadcast %cst_665 : f32 to vector<8x128xf32>
    %1426 = arith.cmpf oeq, %1146, %1425 : vector<8x128xf32>
    %cst_666 = arith.constant 0.000000e+00 : f32
    %1427 = vector.broadcast %cst_666 : f32 to vector<8x128xf32>
    %1428 = arith.select %1426, %1149, %1427 : vector<8x128xi1>, vector<8x128xf32>
    %cst_667 = arith.constant 1.300000e+01 : f32
    %1429 = vector.broadcast %cst_667 : f32 to vector<8x128xf32>
    %1430 = arith.cmpf oeq, %1146, %1429 : vector<8x128xf32>
    %cst_668 = arith.constant 0.000000e+00 : f32
    %1431 = vector.broadcast %cst_668 : f32 to vector<8x128xf32>
    %1432 = arith.select %1430, %1151, %1431 : vector<8x128xi1>, vector<8x128xf32>
    %1433 = arith.addf %1428, %1432 : vector<8x128xf32>
    %1434 = arith.mulf %1433, %1421 : vector<8x128xf32>
    %1435 = arith.addf %1419, %1434 : vector<8x128xf32>
    %c63_669 = arith.constant 63 : index
    %c0_670 = arith.constant 0 : index
    %c0_671 = arith.constant 0 : index
    %1436 = vector.load %arg4[%c63_669, %c0_670, %c0_671] : memref<64x8x128xf32, #tpu.memory_space<vmem>>, vector<1x8x128xf32>
    %1437 = vector.shape_cast %1436 : vector<1x8x128xf32> to vector<8x128xf32>
    %1438 = arith.subf %1437, %1198 : vector<8x128xf32>
    %1439 = math.exp %1438 : vector<8x128xf32>
    %1440 = arith.addf %1424, %1439 : vector<8x128xf32>
    %cst_672 = arith.constant 1.500000e+01 : f32
    %1441 = vector.broadcast %cst_672 : f32 to vector<8x128xf32>
    %1442 = arith.cmpf oeq, %1146, %1441 : vector<8x128xf32>
    %cst_673 = arith.constant 0.000000e+00 : f32
    %1443 = vector.broadcast %cst_673 : f32 to vector<8x128xf32>
    %1444 = arith.select %1442, %1149, %1443 : vector<8x128xi1>, vector<8x128xf32>
    %cst_674 = arith.constant 1.400000e+01 : f32
    %1445 = vector.broadcast %cst_674 : f32 to vector<8x128xf32>
    %1446 = arith.cmpf oeq, %1146, %1445 : vector<8x128xf32>
    %cst_675 = arith.constant 0.000000e+00 : f32
    %1447 = vector.broadcast %cst_675 : f32 to vector<8x128xf32>
    %1448 = arith.select %1446, %1151, %1447 : vector<8x128xi1>, vector<8x128xf32>
    %1449 = arith.addf %1444, %1448 : vector<8x128xf32>
    %1450 = arith.mulf %1449, %1437 : vector<8x128xf32>
    %1451 = arith.addf %1435, %1450 : vector<8x128xf32>
    %1452 = math.log %1440 : vector<8x128xf32>
    %1453 = arith.addf %1198, %1452 : vector<8x128xf32>
    %1454 = arith.subf %1453, %1451 : vector<8x128xf32>
    %1455 = arith.addf %1145, %1454 : vector<8x128xf32>
    %c0_676 = arith.constant 0 : index
    %c0_677 = arith.constant 0 : index
    %c0_678 = arith.constant 0 : index
    %1456 = vector.load %arg7[%c0_676, %c0_677, %c0_678] : memref<1x8x128xf32, #tpu.memory_space<vmem>>, vector<1x8x128xf32>
    %cst_679 = arith.constant 2.500000e-01 : f32
    %1457 = vector.broadcast %cst_679 : f32 to vector<8x128xf32>
    %1458 = arith.mulf %1455, %1457 : vector<8x128xf32>
    %1459 = arith.mulf %1458, %19 : vector<8x128xf32>
    %1460 = vector.shape_cast %1459 : vector<8x128xf32> to vector<1x8x128xf32>
    %1461 = arith.addf %1456, %1460 : vector<1x8x128xf32>
    %c0_680 = arith.constant 0 : index
    %c0_681 = arith.constant 0 : index
    %c0_682 = arith.constant 0 : index
    %1462 = vector.load %arg7[%c0_680, %c0_681, %c0_682] : memref<1x8x128xf32, #tpu.memory_space<vmem>>, vector<1x8x128xf32>
    tpu.vector_store %arg7[%c0_680, %c0_681, %c0_682], %1461 {strides = array<i32>} : memref<1x8x128xf32, #tpu.memory_space<vmem>>, vector<1x8x128xf32>,
    return
  }
  func.func @transform_0(%arg0: i32, %arg1: i32) -> (i32, i32, i32) {
    %c1_i32 = arith.constant 1 : i32
    %0 = arith.muli %arg0, %c1_i32 : i32
    %1 = arith.addi %0, %arg1 : i32
    %c0_i32 = arith.constant 0 : i32
    %c0_i32_0 = arith.constant 0 : i32
    %c0_i32_1 = arith.constant 0 : i32
    return %c0_i32, %1, %c0_i32_0 : i32, i32, i32
  }
  func.func @transform_1(%arg0: i32, %arg1: i32) -> (i32, i32, i32) {
    %c1_i32 = arith.constant 1 : i32
    %0 = arith.muli %arg0, %c1_i32 : i32
    %1 = arith.addi %0, %arg1 : i32
    %c0_i32 = arith.constant 0 : i32
    %c0_i32_0 = arith.constant 0 : i32
    %c0_i32_1 = arith.constant 0 : i32
    return %c0_i32, %1, %c0_i32_0 : i32, i32, i32
  }
  func.func @transform_2(%arg0: i32, %arg1: i32) -> (i32, i32, i32) {
    %c1_i32 = arith.constant 1 : i32
    %0 = arith.muli %arg0, %c1_i32 : i32
    %1 = arith.addi %0, %arg1 : i32
    %c0_i32 = arith.constant 0 : i32
    %c0_i32_0 = arith.constant 0 : i32
    %c0_i32_1 = arith.constant 0 : i32
    return %c0_i32, %1, %c0_i32_0 : i32, i32, i32
  }
  func.func @transform_3(%arg0: i32, %arg1: i32) -> (i32, i32) {
    %c1_i32 = arith.constant 1 : i32
    %0 = arith.muli %arg0, %c1_i32 : i32
    %1 = arith.addi %0, %arg1 : i32
    %c0_i32 = arith.constant 0 : i32
    %c0_i32_0 = arith.constant 0 : i32
    return %1, %c0_i32 : i32, i32
  }
  func.func @transform_4(%arg0: i32, %arg1: i32) -> (i32, i32, i32) {
    %c0_i32 = arith.constant 0 : i32
    %c0_i32_0 = arith.constant 0 : i32
    %c0_i32_1 = arith.constant 0 : i32
    return %arg0, %c0_i32, %c0_i32_0 : i32, i32, i32
  }
  func.func @transform_5(%arg0: i32, %arg1: i32) -> (i32, i32, i32) {
    %c0_i32 = arith.constant 0 : i32
    %c0_i32_0 = arith.constant 0 : i32
    %c0_i32_1 = arith.constant 0 : i32
    return %arg0, %c0_i32, %c0_i32_0 : i32, i32, i32
  }
}

</mosaic_0001>

<bundles_post_ra>
// kernel: tpu_custom_call.1
= control target key start
LH: loop header
LB: loop body
LE: loop exit
PB: predicated region body
PF: predicated region fallthrough
CT: control target
= control target key end

     0   :  { %s3578_s0 = inlined_call_operand.hbm [shape: f32[8,16,128], index: 0, kind: input, shape index: {}]   ;;  %s3579_s1 = inlined_call_operand.hbm [shape: f32[2,16,128], index: 1, kind: input, shape index: {}]   ;;  %s3580_s2 = inlined_call_operand.hbm [shape: f32[64,16,128], index: 2, kind: input, shape index: {}]   ;;  %s3581_s3 = inlined_call_operand.hbm [shape: f32[16,128], index: 3, kind: input, shape index: {}]   ;;  %s3582_s4 = inlined_call_operand.hbm [shape: f32[2,8,128], index: 4, kind: output, shape index: {0}]   ;;  %s3583_s5 = inlined_call_operand.hbm [shape: f32[2,8,128], index: 5, kind: output, shape index: {1}]  }
   0x1   :  { %3591 = sst [smem:[#allocation25_spill]] %s3578_s0 }
   0x2   :  { %3592 = sst [smem:[#allocation26_spill]] %s3579_s1 }
   0x3   :  { %11 = vsyncpa [#allocation3], 0 }
   0x4   :  { %13 = vsyncpa [#allocation3 + $0x1], 0 }
   0x5   :  { %14 = vsyncpa [#allocation6], 0 }
   0x6   :  { %16 = vsyncpa [#allocation6 + $0x1], 0 }
   0x7   :  { %17 = vsyncpa [#allocation9], 0 }
   0x8   :  { %19 = vsyncpa [#allocation9 + $0x1], 0 }
   0x9   :  { %20 = vsyncpa [#allocation4], 0 }
   0xa   :  { %22 = vsyncpa [#allocation4 + $0x1], 0 }
   0xb   :  { %23 = vsyncpa [#allocation12], 0 }
   0xc   :  { %25 = vsyncpa [#allocation12 + $0x1], 0  ;;  %s2312_s18 = smov 0   ;;  %s2314_s19 = smov 0  }
   0xd   :  { %s2316_s20 = smov 0   ;;  %s2318_s21 = smov 0  }
   0xe   :  { %s2320_s22 = smov 0   ;;  %s2322_s23 = smov 0  }
   0xf LB: > { %3593 = sst [smem:[#allocation18_spill]] %s2257_s18  ;;  %s2343_s24 = sadd.s32 4294967295, %s2277_s23   ;;  %s2277_s23 = sphi %s2322_s23, %s31_s23   ;;  %s2273_s22 = sphi %s2320_s22, %s3620_s22   ;;  %s2269_s21 = sphi %s2318_s21, %s3619_s21   ;;  %s2265_s20 = sphi %s2316_s20, %s3618_s20   ;;  %s2261_s19 = sphi %s2314_s19, %s3622_s19   ;;  %s2257_s18 = sphi %s2312_s18, %s3621_s18  }
  0x10   : > { %3594 = sst [smem:[#allocation19_spill]] %s2265_s20  ;;  %s1678_s25 = sadd.s32 4294967294, %s2277_s23  }
  0x11   : > { %3595 = sst [smem:[#allocation20_spill]] %s2273_s22  ;;  %s43_s26 = sadd.s32 1, %s2273_s22 }
  0x12   : > { %3596 = sst [smem:[#allocation21_spill]] %s2277_s23  ;;  %s52_s27 = sadd.s32 1, %s2265_s20 }
  0x13   : > { %p45_p0 = scmp.ge.s32.totalorder %s43_s26, 2  ;;  %p59_p1 = scmp.ne.s32.totalorder %s2265_s20, %s2261_s19 }
  0x14   : > { %p60_p2 = scmp.eq.s32.totalorder %s2277_s23, 0  ;;  %p65_p3 = scmp.ne.s32.totalorder %s2261_s19, %s2257_s18 }
  0x15   : > { %s3624_s26 = smov (%p45_p0, %s43_s26), 0  ;;  %p66_p5 = scmp.eq.s32.totalorder %s2343_s24, 0 }
  0x16   : > { %3597 = sst [smem:[#allocation22_spill]] %s3624_s26  ;;  %p2355_p4 = por %p60_p2, %p59_p1 }
  0x17   : > { %s49_s29 = ssub.s32 %s2273_s22, %s3624_s26  ;;  %p173_p6 = scmp.eq.s32.totalorder %s2343_s24, 1 }
  0x18   : > { %p50_p7 = scmp.eq.s32.totalorder %s49_s29, 0  ;;  %p2363_p8 = por %p66_p5, %p65_p3 }
  0x19   : > { %p2367_p9 = por %p173_p6, %p59_p1  ;;  %p179_p10 = scmp.eq.s32.totalorder %s1678_s25, 1 }
  0x1a   : > { %s2372_s7 = scalar_select %p50_p7, %s2265_s20, %s52_s27  }
  0x1b   : > { %p2374_p11 = por %p179_p10, %p65_p3  ;;  %p1680_p12 = scmp.ge.s32.totalorder %s2277_s23, 2 }
  0x1c   : > { %3601 = sst [smem:[#allocation23_spill]] %s2372_s7  ;;  %p1806_p13 = scmp.lt.s32.totalorder %s2277_s23, 2 }
  0x1d   : > { %s3602_s8 = scalar_select %p2374_p11, 1, 0 }
  0x1e   : > { %s2381_s9 = sand.u32 1, %s2265_s20   ;;  %s2384_s10 = sshll.u32 %s2273_s22, 3 }
  0x1f   : > { %3603 = sst [smem:[#allocation24_spill]] %s3602_s8  ;;  %p2388_p0 = pnand %p1806_p13, %p2355_p4 }
  0x20   : > { %s247_s12 = sand.u32 1, %s2277_s23   ;;  %s1683_s13 = sshll.u32 %s2381_s9, 4 }
  0x21   : > { %s3605_s1 = sld [smem:[#allocation26_spill]]  ;;  %s251_s25 = scalar_lea.vmem [#allocation5], %s1683_s13 }
  0x22   : > { %s259_s27 = sshll.u32 %s251_s25, 4  ;;  %p1689_p1 = scmp.ge.s32.totalorder %s2277_s23, 1  ;;  %s260_s27 = int_to_ptr.vmem [resolvable:$true] %s259_s27 }
  0x23   : > { %s248_s28 = scalar_lea.sflag [#allocation6], %s247_s12  ;;  %s2279_s29 = smov 256  }
  0x24   : > { %s2280_s26 = smov 128   ;;  %s2281_s22 = smov 8  }
  0x25   : > { %p309_p2 = scmp.lt.s32.totalorder %s2277_s23, 3  ;;  %s1681_s15 = sshll.u32 %s2381_s9, 6 }
  0x26   : > { %s3607_s0 = sld [smem:[#allocation25_spill]]  ;;  %s226_s20 = scalar_lea.sflag [#allocation3], %s2381_s9 }
  0x27   : > { %s256_s16 = scalar_lea.hbm %s3605_s1, %s2384_s10  ;;  %p2402_p3 = pnand %p1689_p1, %p309_p2 }
  0x28   : > { %s257_s17 = sshll.u32 %s256_s16, 4  ;;  %s229_s1 = scalar_lea.vmem [#allocation2], %s1681_s15  ;;  %s258_s17 = int_to_ptr.hbm [resolvable:$true] %s257_s17 }
  0x29   : > { %1792 = dma.hbm_to_vmem [thread:$0]  (!%p2388_p0), %s258_s17, 256, %s260_s27, %s248_s28, %s2279_s29, %s2280_s26, %s2281_s22  }
  0x2a   : > { %s237_s7 = sshll.u32 %s229_s1, 4  ;;  %s1685_s17 = sshll.u32 %s2381_s9, 9  ;;  %s238_s7 = int_to_ptr.vmem [resolvable:$true] %s237_s7 }
  0x2b   : > { %s278_s8 = scalar_lea.hbm %s3580_s2, %s2384_s10  ;;  %s273_s16 = scalar_lea.vmem [#allocation7], %s1685_s17 }
  0x2c   : > { %s234_s25 = scalar_lea.hbm %s3607_s0, %s2384_s10  ;;  %s279_s13 = sshll.u32 %s278_s8, 4  ;;  %s280_s13 = int_to_ptr.hbm [resolvable:$true] %s279_s13 }
  0x2d   : > { %s235_s12 = sshll.u32 %s234_s25, 4  ;;  %s281_s0 = sshll.u32 %s273_s16, 4  ;;  %s236_s12 = int_to_ptr.hbm [resolvable:$true] %s235_s12  ;;  %s282_s0 = int_to_ptr.vmem [resolvable:$true] %s281_s0 }
  0x2e   : > { %1789 = dma.hbm_to_vmem [thread:$0]  (!%p2388_p0), %s236_s12, 1024, %s238_s7, %s226_s20, %s2279_s29, %s2280_s26, %s2281_s22  }
  0x2f   : > { %1795 = dma.hbm_to_vmem [thread:$0]  (!%p2388_p0), %s280_s13, 8192, %s282_s0, %s248_s28, %s2279_s29, %s2280_s26, %s2281_s22  }
  0x30   : > { %s1687_s1 = sshll.u32 %s2381_s9, 3  ;;  %s300_s18 = scalar_lea.hbm %s3581_s3, %s2384_s10 }
  0x31   : > { %s302_s20 = sshll.u32 %s300_s18, 4  ;;  %s295_s7 = scalar_lea.vmem [#allocation8], %s1687_s1  ;;  %s303_s20 = int_to_ptr.hbm [resolvable:$true] %s302_s20 }
  0x32   : > { %s304_s12 = sshll.u32 %s295_s7, 4  ;;  %s292_s23 = scalar_lea.sflag [#allocation9], %s2381_s9  ;;  %s305_s12 = int_to_ptr.vmem [resolvable:$true] %s304_s12 }
  0x33   : > { %1798 = dma.hbm_to_vmem [thread:$0]  (!%p2388_p0), %s303_s20, 128, %s305_s12, %s292_s23  }
  0x34   : > { %313 = sbr.rel (%p2402_p3) target bundleno = 320 (0x140), region = 36  ;;  %s2432_s8 = sand.u32 (!%p2402_p3), 1, %s2261_s19  }
  0x35   : > { %s1690_s0 = sshll.u32 (!%p2402_p3), %s2432_s8, 6  ;;  %s316_s22 = scalar_lea.sflag (!%p2402_p3), [#allocation3], %s2432_s8 }
  0x36   : > { %s319_s26 = scalar_lea.vmem (!%p2402_p3), [#allocation2], %s1690_s0 }
  0x39   : > { %2236 = dma.done.wait (%p2363_p8), %s316_s22, 1024  }
  0x3a   : > { %2238 = vsyncadd (%p2363_p8), %s316_s22, 4294966272  ;;  %s325_s18 = sand.u32 1, %s2343_s24   ;;  %s1691_s9 = sshll.u32 %s2432_s8, 4 }
  0x3b   : > { %s326_s10 = scalar_lea.sflag [#allocation6], %s325_s18  ;;  %s2442_s11 = scalar_lea.vmem [#allocation5], %s1691_s9 }
  0x3c   : > { %2240 = dma.done.wait (%p2363_p8), %s326_s10, 8448  }
  0x3d   : > { %2242 = vsyncadd (%p2363_p8), %s326_s10, 4294958848  ;;  %s1692_s28 = sshll.u32 %s2432_s8, 9  ;;  %s2450_s29 = sshll.u32 %s2432_s8, 3 }
  0x3e   : > { %s2452_s14 = scalar_lea.vmem [#allocation7], %s1692_s28  ;;  %s346_s24 = scalar_lea.sflag [#allocation9], %s2432_s8 }
  0x3f   : > { %s349_s17 = scalar_lea.vmem [#allocation8], %s2450_s29 }
  0x40   : > { %2244 = dma.done.wait (%p2363_p8), %s346_s24, 128  }
  0x41   : > { %2246 = vsyncadd (%p2363_p8), %s346_s24, 4294967168  ;;  %v407_v0 = vld [vmem:[%s319_s26] sm:$0xff]  ;;  %v1696_v1 = vld [vmem:[%s319_s26 + $0x8] sm:$0xff]  ;;  %s389_s30 = scalar_lea.vmem [#allocation10], %s2450_s29  ;;  %s1770_s27 = sshll.u32 %s2269_s21, 3 }
  0x42   : > { %v1697_v2 = vld [vmem:[%s319_s26 + $0x10] sm:$0xff]  ;;  %v1698_v3 = vld [vmem:[%s319_s26 + $0x18] sm:$0xff]  ;;  %v1699_v4 = vld [vmem:[%s319_s26 + $0x20] sm:$0xff]  ;;  %s1477_s1 = scalar_lea.hbm %s3582_s4, %s1770_s27  ;;  %s3045_s15 = sshll.u32 %s389_s30, 4  ;;  %s1480_s15 = int_to_ptr.vmem [resolvable:$true] %s3045_s15 }
  0x43   : > { %v2460_v5 = vld [vmem:[%s319_s26 + $0x28] sm:$0xff]  ;;  %v427_v6 = vadd.f32 %v1697_v2, %v407_v0  ;;  %v2462_v7 = vld [vmem:[%s319_s26 + $0x30] sm:$0xff]  ;;  %v2464_v8 = vld [vmem:[%s319_s26 + $0x38] sm:$0xff]  ;;  %v429_v9 = vadd.f32 %v1698_v3, %v1696_v1  ;;  %v436_v10 = vmax.f32 %v407_v0, %v1699_v4  ;;  %v2466_v11 = vsub.f32 %v1698_v3, %v1696_v1  ;;  %s1481_s25 = sshll.u32 %s1477_s1, 4  ;;  %s1462_s20 = scalar_lea.sflag [#allocation4], %s2432_s8  ;;  %s1482_s25 = int_to_ptr.hbm [resolvable:$true] %s1481_s25 }
  0x44   : > { %v431_v13 = vadd.f32 %v2462_v7, %v1699_v4  ;;  %v440_v14 = vmax.f32 %v1696_v1, %v2460_v5  ;;  %v433_v16 = vadd.f32 %v2464_v8, %v2460_v5  ;;  %v435_v17 = vmin.f32 %v1697_v2, %v2462_v7  ;;  %v2487_v39 = vld [vmem:[%s2442_s11] sm:$0xff]  ;;  %v2500_v55 = vld [vmem:[%s2452_s14 + $0x8] sm:$0xff]  ;;  %s2169_s7 = sshra.s32 %s1482_s25, 4  ;;  %s2175_s22 = scalar_lea.hbm %s3582_s4, 16  ;;  %s2170_s7 = int_to_ptr.hbm [resolvable:$true] %s2169_s7 }
  0x45   : > { %v428_v12 = vmul.f32 0.5, %v427_v6  ;;  %v430_v15 = vmul.f32 0.5, %v429_v9  ;;  %v439_v18 = vmin.f32 %v1698_v3, %v2464_v8  ;;  %v423_v19 = vsub.f32 %v1697_v2, %v407_v0  ;;  %v2497_v54 = vld [vmem:[%s2452_s14] sm:$0xff]  ;;  %v2509_v62 = vld [vmem:[%s2452_s14 + $0x88] sm:$0xff]  ;;  %s2171_s12 = scalar_lea.hbm %s2170_s7, 8  ;;  %p2176_p7 = scmp.lt.s32.totalorder %s2170_s7, %s3582_s4 }
  0x46   : > { %v425_v20 = vsub.f32 %v2462_v7, %v1699_v4  ;;  %v432_v21 = vmul.f32 0.5, %v431_v13  ;;  %v470_v22 = vmin.f32 %v407_v0, %v1699_v4  ;;  %v426_v23 = vsub.f32 %v2464_v8, %v2460_v5  ;;  %v2506_v61 = vld [vmem:[%s2452_s14 + $0x80] sm:$0xff]  ;;  %v2512_v0 = vld [vmem:[%s2452_s14 + $0x10] sm:$0xff]  ;;  %p2172_p4 = scmp.ne.s32.totalorder %s2170_s7, %s2171_s12  ;;  %p2177_p8 = scmp.lt.s32.totalorder %s2175_s22, %s2171_s12 }
  0x47   : > { %v434_v24 = vmul.f32 0.5, %v433_v16  ;;  %v437_v25 = vsub.f32 %v435_v17, %v436_v10  ;;  %v471_v26 = vmin.f32 %v1696_v1, %v2460_v5  ;;  %v441_v27 = vsub.f32 %v439_v18, %v440_v14  ;;  %v2520_v10 = vld [vmem:[%s2452_s14 + $0x18] sm:$0xff]  ;;  %v2528_v16 = vld [vmem:[%s2452_s14 + $0x90] sm:$0xff] }
  0x48   : > { %v2478_v28 = vsub.f32 %v432_v21, %v428_v12  ;;  %v472_v29 = vmax.f32 %v1697_v2, %v2462_v7  ;;  %v473_v30 = vmax.f32 %v1698_v3, %v2464_v8  ;;  %v517_v32 = vadd.f32 1e-07, %v2466_v11  ;;  %v2534_v21 = vld [vmem:[%s2452_s14 + $0x20] sm:$0xff]  ;;  %p2173_p5 = pnand %p2172_p4, %p2367_p9  ;;  %p2178_p10 = por %p2177_p8, %p2176_p7 }
  0x49   : > { %v452_v31 = vsub.f32 %v434_v24, %v430_v15  ;;  %v444_v36 = vmul.f32 %v2466_v11, %v423_v19  ;;  %v520_v38 = vadd.f32 1e-07, %v426_v23  ;;  %v438_v40 = vmax.f32 %v437_v25, 0.0 }
  0x4a   : > { %v453_v33 = vmul.f32 %v2478_v28, %v2478_v28  ;;  %v474_v34 = vsub.f32 %v472_v29, %v470_v22  ;;  %v476_v35 = vsub.f32 %v473_v30, %v471_v26  ;;  %1860 = vrcp.f32 %v517_v32  ;;  %v2541_v29 = vld [vmem:[%s2452_s14 + $0x28] sm:$0xff]  ;;  %p2174_p6 = pneg %p2173_p5 }
  0x4b   : > { %v454_v37 = vmul.f32 %v452_v31, %v452_v31  ;;  %v442_v41 = vmax.f32 %v441_v27, 0.0  ;;  %v445_v42 = vmul.f32 %v426_v23, %v425_v20  ;;  %v539_v43 = vmax.f32 %v423_v19, %v425_v20  ;;  %v2545_v31 = vld [vmem:[%s2452_s14 + $0x98] sm:$0xff] }
  0x4c   : > { %v475_v45 = vadd.f32 1e-07, %v474_v34  ;;  %v477_v46 = vadd.f32 1e-07, %v476_v35  ;;  %1862 = vrcp.f32 %v520_v38  ;;  %v545_v48 = vmax.f32 %v2466_v11, %v426_v23  ;;  %p2179_p13 = pnand %p2178_p10, %p2174_p6 }
  0x4d   : > { %v2489_v44 = vadd.f32 %v454_v37, %v453_v33  ;;  %v540_v47 = vadd.f32 1e-07, %v539_v43  ;;  %v589_v49 = vsub.f32 %v2487_v39, %v1699_v4  ;;  %v537_v50 = vsub.f32 %v423_v19, %v425_v20 }
  0x4e   : > { %v2494_v51 = vmul.f32 %v442_v41, %v438_v40  ;;  %v446_v52 = vadd.f32 %v445_v42, %v444_v36  ;;  %v546_v53 = vadd.f32 1e-07, %v545_v48  ;;  %v499_v57 = vmul.f32 %v475_v45, %v475_v45  ;;  %v2552_v41 = vld [vmem:[%s2452_s14 + $0x30] sm:$0xff] }
  0x4f   : > { %1864 = vrsqrt.f32 %v2489_v44  ;;  %v500_v58 = vmul.f32 %v477_v46, %v477_v46  ;;  %v543_v59 = vsub.f32 %v2466_v11, %v426_v23  ;;  %v2503_v60 = vmax.f32 %v589_v49, 0.0  ;;  %v2537_v23 = vld [vmem:[%s2442_s11 + $0x8] sm:$0xff] }
  0x50   : > { %1866 = vrcp.f32 %v540_v47  ;;  %v1861_v56 = vpop.eup %1860  ;;  %v538_v3 = vand.u32 2147483647, %v537_v50  ;;  %v608_v6 = vmax.f32 %v2497_v54, %v2500_v55  ;;  %v822_v11 = vmax.f32 %v2506_v61, %v2509_v62  ;;  %v2562_v50 = vld [vmem:[%s2452_s14 + $0x38] sm:$0xff] }
  0x51   : > { %v519_v63 = vmul.f32 %v1861_v56, %v423_v19  ;;  %1868 = vrcp.f32 %v546_v53  ;;  %v2514_v2 = vadd.f32 %v500_v58, %v499_v57  ;;  %v591_v4 = vmin.f32 %v2503_v60, 14.99 }
  0x52   : > { %v1863_v1 = vpop.eup %1862  ;;  %v447_v13 = vsub.f32 %v446_v52, %v2494_v51  ;;  %v544_v14 = vand.u32 2147483647, %v543_v59  ;;  %v611_v15 = vmax.f32 %v608_v6, %v2512_v0  ;;  %v825_v30 = vmax.f32 %v822_v11, %v2528_v16  ;;  %v2565_v52 = vld [vmem:[%s2452_s14 + $0xa0] sm:$0xff] }
  0x53   : > { %v522_v9 = vmul.f32 %v1863_v1, %v425_v20  ;;  %1870 = vrsqrt.f32 %v2514_v2  ;;  %v2531_v20 = vfloor.f32 %v591_v4  ;;  %v592_v38 = vsub.f32 %v2537_v23, %v2460_v5 }
  0x54   : > { %v614_v24 = vmax.f32 %v611_v15, %v2520_v10  ;;  %v448_v32 = vadd.f32 1e-07, %v447_v13  ;;  %v828_v47 = vmax.f32 %v825_v30, %v2545_v31  ;;  %vm463_vm0 = vcmp.eq.f32.partialorder %v2489_v44, inf  ;;  %v2587_v13 = vld [vmem:[%s2452_s14 + $0xa8] sm:$0xff] }
  0x55   : > { %v1865_v12 = vpop.eup %1864  ;;  %v523_v19 = vsub.f32 %v519_v63, %v522_v9  ;;  %v602_v40 = vadd.f32 1.0, %v2531_v20  ;;  %v466_v53 = vand.u32 2147483648, %v2489_v44  ;;  %v2570_v60 = vmax.f32 %v592_v38, 0.0  ;;  %v2573_v63 = vld [vmem:[%s2452_s14 + $0x40] sm:$0xff] }
  0x56   : > { %v1867_v17 = vpop.eup %1866  ;;  %v457_v18 = vmul.f32 %v1865_v12, %v2489_v44  ;;  %v617_v35 = vmax.f32 %v614_v24, %v2534_v21  ;;  %v2579_v6 = vmax.f32 %v828_v47, %v2565_v52  ;;  %vm465_vm1 = vcmp.eq.f32.partialorder %v2489_v44, 0.0 }
  0x57   : > { %v542_v22 = vmul.f32 %v1867_v17, %v538_v3  ;;  %v1869_v25 = vpop.eup %1868  ;;  %v524_v27 = vand.u32 2147483647, %v523_v19  ;;  %v2575_v1 = vsub.f32 %v602_v40, %v591_v4  ;;  %v595_v19 = vsub.f32 %v2462_v7, %v2487_v39  ;;  %v2837_v39 = vld [vmem:[%s2452_s14 + $0xc0] sm:$0xff] }
  0x58   : > { %v458_v26 = vmul.f32 %v1865_v12, %v457_v18  ;;  %v548_v33 = vmul.f32 %v1869_v25, %v544_v14  ;;  %v620_v46 = vmax.f32 %v617_v35, %v2541_v29  ;;  %v478_v14 = vand.u32 2147483647, %v2478_v28 }
  0x59   : > { %v549_v34 = vsub.f32 0.0, %v542_v22  ;;  %v525_v37 = vsub.f32 0.0, %v524_v27  ;;  %v2554_v42 = vpop.eup %1870  ;;  %v594_v18 = vmin.f32 %v2570_v60, 14.99  ;;  %v2598_v22 = vld [vmem:[%s2452_s14 + $0x50] sm:$0xff]  ;;  %v834_v27 = vmax.f32 %v2579_v6, %v2587_v13 }
  0x5a   : > { %v459_v36 = vmul.f32 0.5, %v458_v26  ;;  %v561_v45 = vsub.f32 0.0, %v548_v33  ;;  %v503_v49 = vmul.f32 %v2554_v42, %v2514_v2  ;;  %v623_v57 = vmax.f32 %v620_v46, %v2552_v41  ;;  %v2610_v33 = vld [vmem:[%s2452_s14 + $0x58] sm:$0xff] }
  0x5b   : > { %v550_v43 = vmul.f32 1.442695, %v549_v34  ;;  %v526_v5 = vmul.f32 1.442695, %v525_v37  ;;  %v2601_v26 = vsub.f32 1.0, %v2575_v1  ;;  %vm508_vm2 = vweird.f32 %v2514_v2 }
  0x5c   : > { %v460_v48 = vsub.f32 1.5, %v459_v36  ;;  %v562_v56 = vmul.f32 1.442695, %v561_v45  ;;  %v504_v59 = vmul.f32 %v2554_v42, %v503_v49  ;;  %v626_v3 = vmax.f32 %v623_v57, %v2562_v50  ;;  %v2616_v45 = vld [vmem:[%s2452_s14 + $0x60] sm:$0xff]  ;;  %v2639_v57 = vld [vmem:[%s2452_s14 + $0x68] sm:$0xff] }
  0x5d   : > { %1872 = vpow2.f32 %v550_v43  ;;  %vm509_vm3 = vweird.f32 %v2554_v42  ;;  %vm655_vm5 = vcmp.eq.f32.partialorder %v2531_v20, 0.0  ;;  %vm663_vm9 = vcmp.eq.f32.partialorder %v2531_v20, 1.0 }
  0x5e   : > { %v461_v58 = vmul.f32 %v1865_v12, %v460_v48  ;;  %1874 = vpow2.f32 %v526_v5  ;;  %v505_v11 = vmul.f32 0.5, %v504_v59  ;;  %v2584_v12 = vld [vmem:[%s2452_s14 + $0x48] sm:$0xff]  ;;  %v629_v4 = vmax.f32 %v626_v3, %v2573_v63  ;;  %vm510_vm4 = vmor %vm508_vm2, %vm509_vm3 }
  0x5f   : > { %1876 = vpow2.f32 %v562_v56  ;;  %v656_v49 = vsel %vm655_vm5, %v2575_v1, 0.0  ;;  %vm673_vm10 = vcmp.eq.f32.partialorder %v2531_v20, 2.0  ;;  %vm683_vm11 = vcmp.eq.f32.partialorder %v2531_v20, 3.0 }
  0x60   : > { %v462_v9 = vmul.f32 %v461_v58, %v2489_v44  ;;  %1878 = vrcp.f32 %v448_v32  ;;  %v506_v17 = vsub.f32 1.5, %v505_v11  ;;  %v632_v28 = vmax.f32 %v629_v4, %v2584_v12 }
  0x61   : > { %v657_v3 = vmul.f32 %v656_v49, %v2497_v54  ;;  %v665_v11 = vsel %vm655_vm5, %v2601_v26, 0.0  ;;  %vm693_vm12 = vcmp.eq.f32.partialorder %v2531_v20, 4.0  ;;  %vm703_vm13 = vcmp.eq.f32.partialorder %v2531_v20, 5.0 }
  0x62   : > { %v464_v15 = vsel %vm463_vm0, %v2489_v44, %v462_v9  ;;  %v507_v32 = vmul.f32 %v2554_v42, %v506_v17  ;;  %v635_v37 = vmax.f32 %v632_v28, %v2598_v22  ;;  %v2646_v9 = vld [vmem:[%s2452_s14 + $0x70] sm:$0xff]  ;;  %v674_v28 = vsel %vm673_vm10, %v2575_v1, 0.0 }
  0x63   : > { %v1873_v24 = vpop.eup %1872  ;;  %v467_v25 = vsel %vm465_vm1, %v466_v53, %v464_v15  ;;  %v664_v15 = vsel %vm663_vm9, %v2575_v1, 0.0  ;;  %vm713_vm14 = vcmp.eq.f32.partialorder %v2531_v20, 6.0  ;;  %vm723_vm1 = vcmp.eq.f32.partialorder %v2531_v20, 7.0 }
  0x64   : > { %v1875_v30 = vpop.eup %1874  ;;  %v468_v44 = vadd.f32 1e-07, %v467_v25  ;;  %v552_v36 = vsub.f32 1.0, %v1873_v24  ;;  %v511_v40 = vsel %vm510_vm4, %v2554_v42, %v507_v32  ;;  %v638_v48 = vmax.f32 %v635_v37, %v2610_v33  ;;  %v2656_v24 = vld [vmem:[%s2452_s14 + $0x78] sm:$0xff] }
  0x65   : > { %v1877_v34 = vpop.eup %1876  ;;  %v528_v35 = vsub.f32 1.0, %v1875_v30  ;;  %v666_v25 = vadd.f32 %v665_v11, %v664_v15  ;;  %v675_v30 = vsel %vm663_vm9, %v2601_v26, 0.0  ;;  %v725_v56 = vsel %vm713_vm14, %v2601_v26, 0.0 }
  0x66   : > { %1880 = vrcp.f32 %v468_v44  ;;  %v498_v38 = vsub.f32 0.0, %v468_v44  ;;  %v564_v43 = vsub.f32 1.0, %v1877_v34  ;;  %v1879_v2 = vpop.eup %1878  ;;  %vm2622_vm7 = vcmp.gt.f32.partialorder %v552_v36, 0.0  ;;  %v2661_v44 = vld [vmem:[%s2452_s14 + $0xb0] sm:$0xff] }
  0x67   : > { %vm2618_vm6 = vcmp.gt.f32.partialorder %v528_v35, 0.0  ;;  %v554_v53 = vsel %vm2622_vm7, %v552_v36, 1.0  ;;  %v641_v59 = vmax.f32 %v638_v48, %v2616_v45  ;;  %v2668_v36 = vmul.f32 %v1879_v2, %v2494_v51 }
  0x68   : > { %v512_v42 = vmul.f32 %v511_v40, %v498_v38  ;;  %v530_v5 = vsel %vm2618_vm6, %v528_v35, 1.0  ;;  %vm2634_vm8 = vcmp.gt.f32.partialorder %v564_v43, 0.0  ;;  %v676_v35 = vadd.f32 %v675_v30, %v674_v28 }
  0x69   : > { %1882 = vlog2.f32 %v530_v5  ;;  %v566_v58 = vsel %vm2634_vm8, %v564_v43, 1.0  ;;  %v644_v4 = vmax.f32 %v641_v59, %v2639_v57  ;;  %v667_v37 = vmul.f32 %v2500_v55, %v666_v25 }
  0x6a   : > { %v513_v6 = vmul.f32 1.442695, %v512_v42  ;;  %1884 = vlog2.f32 %v554_v53  ;;  %v684_v38 = vsel %vm683_vm11, %v2575_v1, 0.0  ;;  %v685_v40 = vsel %vm673_vm10, %v2601_v26, 0.0 }
  0x6b   : > { %1886 = vlog2.f32 %v566_v58  ;;  %v647_v34 = vmax.f32 %v644_v4, %v2646_v9  ;;  %v2682_v51 = vmax.f32 %v834_v27, %v2661_v44  ;;  %v668_v42 = vadd.f32 %v667_v37, %v657_v3 }
  0x6c   : > { %v1881_v17 = vpop.eup %1880  ;;  %1888 = vpow2.f32 %v513_v6  ;;  %v677_v5 = vmul.f32 %v2512_v0, %v676_v35  ;;  %v686_v53 = vadd.f32 %v685_v40, %v684_v38  ;;  %v694_v3 = vsel %vm693_vm12, %v2575_v1, 0.0 }
  0x6d   : > { %v2663_v32 = vmul.f32 %v1881_v17, %v478_v14  ;;  %v2678_v48 = vmax.f32 %v647_v34, %v2656_v24  ;;  %v695_v38 = vsel %vm683_vm11, %v2601_v26, 0.0  ;;  %vm733_vm2 = vcmp.eq.f32.partialorder %v2531_v20, 8.0 }
  0x6e   : > { %vm743_vm3 = vcmp.eq.f32.partialorder %v2531_v20, 9.0  ;;  %vm753_vm4 = vcmp.eq.f32.partialorder %v2531_v20, 10.0  ;;  %vm763_vm5 = vcmp.eq.f32.partialorder %v2531_v20, 11.0  ;;  %vm803_vm9 = vcmp.eq.f32.partialorder %v2531_v20, 15.0 }
  0x6f   : > { %v1883_v43 = vpop.eup %1882  ;;  %v480_v14 = vmul.f32 %v2663_v32, %v2663_v32  ;;  %v651_v11 = vsub.f32 %v2497_v54, %v2678_v48  ;;  %v659_v4 = vsub.f32 %v2500_v55, %v2678_v48  ;;  %v669_v27 = vsub.f32 %v2512_v0, %v2678_v48 }
  0x70   : > { %v1885_v2 = vpop.eup %1884  ;;  %v532_v49 = vmul.f32 0.6931472, %v1883_v43  ;;  %v679_v55 = vsub.f32 %v2520_v10, %v2678_v48  ;;  %v678_v43 = vadd.f32 %v677_v5, %v668_v42  ;;  %v705_v5 = vsel %vm693_vm12, %v2601_v26, 0.0 }
  0x71   : > { %v1887_v58 = vpop.eup %1886  ;;  %v481_v59 = vsub.f32 1.0, %v480_v14  ;;  %v556_v6 = vmul.f32 0.6931472, %v1885_v2  ;;  %v652_v35 = vmul.f32 1.442695, %v651_v11  ;;  %v689_v11 = vsub.f32 %v2534_v21, %v2678_v48 }
  0x72   : > { %v1889_v15 = vpop.eup %1888  ;;  %v533_v17 = vmul.f32 0.6, %v532_v49  ;;  %v568_v25 = vmul.f32 0.6931472, %v1887_v58  ;;  %v660_v40 = vmul.f32 1.442695, %v659_v4  ;;  %v799_v7 = vsub.f32 %v2656_v24, %v2678_v48 }
  0x73   : > { %v2694_v28 = vmax.f32 %v481_v59, 0.0  ;;  %v2696_v30 = vmul.f32 2.0, %v1889_v15  ;;  %v557_v34 = vmul.f32 0.9, %v556_v6  ;;  %v670_v58 = vmul.f32 1.442695, %v669_v27 }
  0x74   : > { %v534_v54 = vmul.f32 1.442695, %v533_v17  ;;  %v569_v37 = vmul.f32 0.9, %v568_v25  ;;  %v680_v59 = vmul.f32 1.442695, %v679_v55  ;;  %v687_v6 = vmul.f32 %v2520_v10, %v686_v53 }
  0x75   : > { %1890 = vrsqrt.f32 %v2694_v28  ;;  %v493_v0 = vand.u32 2147483648, %v2694_v28  ;;  %v516_v14 = vsub.f32 2.0, %v2696_v30  ;;  %v558_v2 = vmul.f32 1.442695, %v557_v34 }
  0x76   : > { %1892 = vpow2.f32 %v534_v54  ;;  %v570_v49 = vmul.f32 1.442695, %v569_v37  ;;  %v696_v15 = vadd.f32 %v695_v38, %v694_v3  ;;  %v699_v17 = vsub.f32 %v2541_v29, %v2678_v48 }
  0x77   : > { %1894 = vpow2.f32 %v652_v35  ;;  %v688_v42 = vadd.f32 %v687_v6, %v678_v43  ;;  %v690_v4 = vmul.f32 1.442695, %v689_v11  ;;  %v704_v27 = vsel %vm703_vm13, %v2575_v1, 0.0 }
  0x78   : > { %1896 = vpow2.f32 %v558_v2  ;;  %v697_v10 = vmul.f32 %v2534_v21, %v696_v15  ;;  %v700_v53 = vmul.f32 1.442695, %v699_v17  ;;  %v709_v3 = vsub.f32 %v2552_v41, %v2678_v48 }
  0x79   : > { %1898 = vpow2.f32 %v570_v49  ;;  %v706_v37 = vadd.f32 %v705_v5, %v704_v27  ;;  %vm490_vm15 = vcmp.eq.f32.partialorder %v2694_v28, inf  ;;  %vm492_vm0 = vcmp.eq.f32.partialorder %v2694_v28, 0.0 }
  0x7a   : > { %1900 = vpow2.f32 %v660_v40  ;;  %v698_v54 = vadd.f32 %v697_v10, %v688_v42  ;;  %v710_v38 = vmul.f32 1.442695, %v709_v3  ;;  %v714_v40 = vsel %vm713_vm14, %v2575_v1, 0.0 }
  0x7b   : > { %v1891_v25 = vpop.eup %1890  ;;  %1902 = vpow2.f32 %v670_v58  ;;  %v707_v49 = vmul.f32 %v2541_v29, %v706_v37  ;;  %v715_v58 = vsel %vm703_vm13, %v2601_v26, 0.0  ;;  %v719_v11 = vsub.f32 %v2562_v50, %v2678_v48 }
  0x7c   : > { %v1893_v34 = vpop.eup %1892  ;;  %v484_v35 = vmul.f32 %v1891_v25, %v2694_v28  ;;  %1904 = vpow2.f32 %v680_v59  ;;  %v716_v6 = vadd.f32 %v715_v58, %v714_v40 }
  0x7d   : > { %v1895_v55 = vpop.eup %1894  ;;  %v536_v21 = vsel %vm2618_vm6, %v1893_v34, 0.0  ;;  %1906 = vpow2.f32 %v690_v4  ;;  %v708_v5 = vadd.f32 %v707_v49, %v698_v54  ;;  %v720_v47 = vmul.f32 1.442695, %v719_v11 }
  0x7e   : > { %v1897_v43 = vpop.eup %1896  ;;  %v485_v2 = vmul.f32 %v1891_v25, %v484_v35  ;;  %1908 = vpow2.f32 %v700_v53  ;;  %v717_v53 = vmul.f32 %v2552_v41, %v716_v6  ;;  %v724_v34 = vsel %vm723_vm1, %v2575_v1, 0.0 }
  0x7f   : > { %v1899_v59 = vpop.eup %1898  ;;  %v560_v46 = vsel %vm2622_vm7, %v1897_v43, 0.0  ;;  %1910 = vpow2.f32 %v710_v38  ;;  %v729_v35 = vsub.f32 %v2573_v63, %v2678_v48  ;;  %v726_v43 = vadd.f32 %v725_v56, %v724_v34 }
  0x80   : > { %v1901_v15 = vpop.eup %1900  ;;  %v486_v17 = vmul.f32 0.5, %v485_v2  ;;  %v572_v42 = vsel %vm2634_vm8, %v1899_v59, 0.0  ;;  %1912 = vpow2.f32 %v720_v47  ;;  %v735_v6 = vsel %vm723_vm1, %v2601_v26, 0.0 }
  0x81   : > { %v1903_v29 = vpop.eup %1902  ;;  %v573_v4 = vadd.f32 %v572_v42, %v560_v46  ;;  %v662_v10 = vadd.f32 %v1901_v15, %v1895_v55  ;;  %v718_v55 = vadd.f32 %v717_v53, %v708_v5  ;;  %v730_v2 = vmul.f32 1.442695, %v729_v35 }
  0x82   : > { %v1905_v27 = vpop.eup %1904  ;;  %v487_v3 = vsub.f32 1.5, %v486_v17  ;;  %v734_v46 = vsel %vm733_vm2, %v2575_v1, 0.0  ;;  %v727_v11 = vmul.f32 %v2562_v50, %v726_v43  ;;  %v739_v17 = vsub.f32 %v2584_v12, %v2678_v48 }
  0x83   : > { %v1907_v54 = vpop.eup %1906  ;;  %v576_v37 = vadd.f32 %v573_v4, %v536_v21  ;;  %v672_v38 = vadd.f32 %v1903_v29, %v662_v10  ;;  %1914 = vpow2.f32 %v730_v2  ;;  %v745_v42 = vsel %vm733_vm2, %v2601_v26, 0.0 }
  0x84   : > { %v1909_v41 = vpop.eup %1908  ;;  %v488_v40 = vmul.f32 %v1891_v25, %v487_v3  ;;  %v736_v25 = vadd.f32 %v735_v6, %v734_v46  ;;  %v728_v29 = vadd.f32 %v727_v11, %v718_v55  ;;  %v744_v50 = vsel %vm743_vm3, %v2575_v1, 0.0 }
  0x85   : > { %v1911_v49 = vpop.eup %1910  ;;  %v2751_v58 = vmul.f32 0.5, %v576_v37  ;;  %v682_v59 = vadd.f32 %v1905_v27, %v672_v38  ;;  %v740_v27 = vmul.f32 1.442695, %v739_v17  ;;  %v746_v3 = vadd.f32 %v745_v42, %v744_v50 }
  0x86   : > { %v489_v21 = vmul.f32 %v488_v40, %v2694_v28  ;;  %v737_v4 = vmul.f32 %v2573_v63, %v736_v25  ;;  %v1913_v10 = vpop.eup %1912  ;;  %v749_v35 = vsub.f32 %v2598_v22, %v2678_v48  ;;  %v759_v55 = vsub.f32 %v2610_v33, %v2678_v48 }
  0x87   : > { %v692_v15 = vadd.f32 %v1907_v54, %v682_v59  ;;  %1916 = vpow2.f32 %v740_v27  ;;  %v747_v54 = vmul.f32 %v2584_v12, %v746_v3  ;;  %v765_v6 = vsel %vm753_vm4, %v2601_v26, 0.0 }
  0x88   : > { %v491_v5 = vsel %vm490_vm15, %v2694_v28, %v489_v21  ;;  %v738_v56 = vadd.f32 %v737_v4, %v728_v29  ;;  %v754_v28 = vsel %vm753_vm4, %v2575_v1, 0.0  ;;  %v750_v38 = vmul.f32 1.442695, %v749_v35 }
  0x89   : > { %v494_v53 = vsel %vm492_vm0, %v493_v0, %v491_v5  ;;  %v702_v47 = vadd.f32 %v1909_v41, %v692_v15  ;;  %v1915_v0 = vpop.eup %1914  ;;  %v760_v2 = vmul.f32 1.442695, %v759_v55  ;;  %v769_v21 = vsub.f32 %v2616_v45, %v2678_v48 }
  0x8a   : > { %v495_v34 = vsub.f32 %v2663_v32, %v494_v53  ;;  %v755_v32 = vsel %vm743_vm3, %v2601_v26, 0.0  ;;  %v748_v40 = vadd.f32 %v747_v54, %v738_v56  ;;  %1918 = vpow2.f32 %v750_v38 }
  0x8b   : > { %v712_v63 = vadd.f32 %v1911_v49, %v702_v47  ;;  %v756_v43 = vadd.f32 %v755_v32, %v754_v28  ;;  %v764_v49 = vsel %vm763_vm5, %v2575_v1, 0.0  ;;  %1920 = vpow2.f32 %v760_v2 }
  0x8c   : > { %v496_v37 = vmul.f32 %v495_v34, %v495_v34  ;;  %v766_v25 = vadd.f32 %v765_v6, %v764_v49  ;;  %vm773_vm6 = vcmp.eq.f32.partialorder %v2531_v20, 12.0  ;;  %v770_v42 = vmul.f32 1.442695, %v769_v21  ;;  %v2844_v49 = vld [vmem:[%s2452_s14 + $0xc8] sm:$0xff] }
  0x8d   : > { %v722_v41 = vadd.f32 %v1913_v10, %v712_v63  ;;  %v757_v46 = vmul.f32 %v2598_v22, %v756_v43  ;;  %v1917_v15 = vpop.eup %1916  ;;  %v774_v5 = vsel %vm773_vm6, %v2575_v1, 0.0  ;;  %v775_v22 = vsel %vm763_vm5, %v2601_v26, 0.0 }
  0x8e   : > { %v497_v12 = vsub.f32 1.0, %v496_v37  ;;  %v776_v50 = vadd.f32 %v775_v22, %v774_v5  ;;  %1922 = vpow2.f32 %v770_v42  ;;  %v779_v10 = vsub.f32 %v2639_v57, %v2678_v48  ;;  %v2870_v5 = vld [vmem:[%s2452_s14 + $0xd8] sm:$0xff] }
  0x8f   : > { %v732_v59 = vadd.f32 %v1915_v0, %v722_v41  ;;  %v758_v17 = vadd.f32 %v757_v46, %v748_v40  ;;  %vm783_vm7 = vcmp.eq.f32.partialorder %v2531_v20, 13.0  ;;  %v785_v53 = vsel %vm773_vm6, %v2601_v26, 0.0 }
  0x90   : > { %v574_v11 = vsub.f32 %v2668_v36, %v497_v12  ;;  %v767_v36 = vmul.f32 %v2610_v33, %v766_v25  ;;  %v1919_v47 = vpop.eup %1918  ;;  %v777_v30 = vmul.f32 %v2616_v45, %v776_v50  ;;  %v784_v33 = vsel %vm783_vm7, %v2575_v1, 0.0  ;;  %v422_v45 = vld [vmem:[%s349_s17] sm:$0xff] }
  0x91   : > { %v742_v4 = vadd.f32 %v1917_v15, %v732_v59  ;;  %v780_v56 = vmul.f32 1.442695, %v779_v10  ;;  %v786_v35 = vadd.f32 %v785_v53, %v784_v33  ;;  %v789_v63 = vsub.f32 %v2646_v9, %v2678_v48  ;;  %v1921_v54 = vpop.eup %1920  ;;  %v2900_v33 = vld [vmem:[%s2452_s14 + $0xe8] sm:$0xff] }
  0x92   : > { %v575_v29 = vsub.f32 %v574_v11, %v516_v14  ;;  %v768_v3 = vadd.f32 %v767_v36, %v758_v17  ;;  %v2816_v14 = vld [vmem:[%s2452_s14 + $0xb8] sm:$0xff]  ;;  %vm793_vm8 = vcmp.eq.f32.partialorder %v2531_v20, 14.0  ;;  %v2830_v0 = vfloor.f32 %v594_v18  ;;  %v2856_v11 = vld [vmem:[%s2452_s14 + $0xd0] sm:$0xff] }
  0x93   : > { %v752_v34 = vadd.f32 %v1919_v47, %v742_v4  ;;  %1924 = vpow2.f32 %v780_v56  ;;  %v840_v37 = vmax.f32 %v2682_v51, %v2816_v14  ;;  %v790_v55 = vmul.f32 1.442695, %v789_v63  ;;  %v2882_v4 = vld [vmem:[%s2452_s14 + $0xe0] sm:$0xff] }
  0x94   : > { %v578_v27 = vsub.f32 %v575_v29, %v2751_v58  ;;  %v2823_v58 = vmax.f32 %v595_v19, 0.0  ;;  %v1923_v19 = vpop.eup %1922  ;;  %v778_v41 = vadd.f32 %v777_v30, %v768_v3  ;;  %v787_v40 = vmul.f32 %v2639_v57, %v786_v35 }
  0x95   : > { %v762_v32 = vadd.f32 %v1921_v54, %v752_v34  ;;  %v598_v2 = vsub.f32 %v2464_v8, %v2537_v23  ;;  %v800_v51 = vmul.f32 1.442695, %v799_v7  ;;  %v794_v59 = vsel %vm793_vm8, %v2575_v1, 0.0 }
  0x96   : > { %v1703_v28 = vclamps-f32 %v578_v27, 1.0  ;;  %v597_v12 = vmin.f32 %v2823_v58, 14.99  ;;  %v795_v57 = vsel %vm783_vm7, %v2601_v26, 0.0  ;;  %v815_v46 = vadd.f32 1.0, %v2830_v0 }
  0x97   : > { %v843_v6 = vmax.f32 %v840_v37, %v2837_v39  ;;  %v772_v21 = vadd.f32 %v1923_v19, %v762_v32  ;;  %1926 = vpow2.f32 %v790_v55  ;;  %v2858_v15 = vadd.f32 %v787_v40, %v778_v41  ;;  %v2913_v32 = vld [vmem:[%s2452_s14 + $0xf0] sm:$0xff] }
  0x98   : > { %v582_v38 = vsub.f32 1.0, %v1703_v28  ;;  %v2862_v17 = vsub.f32 %v815_v46, %v594_v18  ;;  %vm877_vm10 = vcmp.eq.f32.partialorder %v2830_v0, 1.0  ;;  %1928 = vpow2.f32 %v800_v51 }
  0x99   : > { %v1925_v25 = vpop.eup %1924  ;;  %v846_v42 = vmax.f32 %v843_v6, %v2844_v49  ;;  %vm869_vm11 = vcmp.eq.f32.partialorder %v2830_v0, 0.0  ;;  %vm887_vm12 = vcmp.eq.f32.partialorder %v2830_v0, 2.0  ;;  %vm897_vm13 = vcmp.eq.f32.partialorder %v2830_v0, 3.0 }
  0x9a   : > { %v583_v43 = vmul.f32 %v582_v38, %v422_v45  ;;  %v2876_v60 = vsub.f32 1.0, %v2862_v17  ;;  %v870_v22 = vsel %vm869_vm11, %v2862_v17, 0.0  ;;  %vm907_vm14 = vcmp.eq.f32.partialorder %v2830_v0, 4.0 }
  0x9b   : > { %v849_v18 = vmax.f32 %v846_v42, %v2856_v11  ;;  %v782_v29 = vadd.f32 %v1925_v25, %v772_v21  ;;  %v871_v36 = vmul.f32 %v2506_v61, %v870_v22  ;;  %v878_v50 = vsel %vm877_vm10, %v2862_v17, 0.0 }
  0x9c   : > { %585 = vst [vmem:[%s389_s30] sm:$0xff] %v583_v43  ;;  %v888_v10 = vsel %vm887_vm12, %v2862_v17, 0.0  ;;  %v879_v47 = vsel %vm869_vm11, %v2876_v60, 0.0  ;;  %v889_v27 = vsel %vm877_vm10, %v2876_v60, 0.0  ;;  %v898_v3 = vsel %vm897_vm13, %v2862_v17, 0.0 }
  0x9d   : > { %v852_v53 = vmax.f32 %v849_v18, %v2870_v5  ;;  %v1927_v30 = vpop.eup %1926  ;;  %v880_v34 = vadd.f32 %v879_v47, %v878_v50  ;;  %v890_v56 = vadd.f32 %v889_v27, %v888_v10  ;;  %v899_v35 = vsel %vm887_vm12, %v2876_v60, 0.0 }
  0x9e   : > { %v908_v63 = vsel %vm907_vm14, %v2862_v17, 0.0  ;;  %v796_v54 = vadd.f32 %v795_v57, %v794_v59  ;;  %v900_v45 = vadd.f32 %v899_v35, %v898_v3  ;;  %v909_v37 = vsel %vm897_vm13, %v2876_v60, 0.0  ;;  %v1929_v38 = vpop.eup %1928  ;;  %v2924_v59 = vld [vmem:[%s2452_s14 + $0xf8] sm:$0xff] }
  0x9f   : > { %v855_v28 = vmax.f32 %v852_v53, %v2882_v4  ;;  %v881_v55 = vmul.f32 %v2509_v62, %v880_v34  ;;  %v891_v7 = vmul.f32 %v2528_v16, %v890_v56  ;;  %v910_v19 = vadd.f32 %v909_v37, %v908_v63 }
  0xa0   : > { %vm917_vm15 = vcmp.eq.f32.partialorder %v2830_v0, 5.0  ;;  %v792_v41 = vadd.f32 %v1927_v30, %v782_v29  ;;  %v804_v40 = vsel %vm803_vm9, %v2575_v1, 0.0  ;;  %v901_v46 = vmul.f32 %v2545_v31, %v900_v45 }
  0xa1   : > { %v858_v43 = vmax.f32 %v855_v28, %v2900_v33  ;;  %v918_v51 = vsel %vm917_vm15, %v2862_v17, 0.0  ;;  %v882_v57 = vadd.f32 %v881_v55, %v871_v36  ;;  %v919_v6 = vsel %vm907_vm14, %v2876_v60, 0.0 }
  0xa2   : > { %vm927_vm0 = vcmp.eq.f32.partialorder %v2830_v0, 6.0  ;;  %v920_v25 = vadd.f32 %v919_v6, %v918_v51  ;;  %v929_v42 = vsel %vm917_vm15, %v2876_v60, 0.0  ;;  %v805_v18 = vsel %vm793_vm8, %v2601_v26, 0.0 }
  0xa3   : > { %v861_v21 = vmax.f32 %v858_v43, %v2913_v32  ;;  %v928_v1 = vsel %vm927_vm0, %v2862_v17, 0.0  ;;  %v892_v22 = vadd.f32 %v891_v7, %v882_v57  ;;  %v911_v29 = vmul.f32 %v2565_v52, %v910_v19 }
  0xa4   : > { %vm937_vm1 = vcmp.eq.f32.partialorder %v2830_v0, 7.0  ;;  %v930_v50 = vadd.f32 %v929_v42, %v928_v1  ;;  %v939_v53 = vsel %vm927_vm0, %v2876_v60, 0.0  ;;  %v802_v47 = vadd.f32 %v1929_v38, %v792_v41 }
  0xa5   : > { %v2940_v36 = vmax.f32 %v861_v21, %v2924_v59  ;;  %v938_v10 = vsel %vm937_vm1, %v2862_v17, 0.0  ;;  %v902_v27 = vadd.f32 %v901_v46, %v892_v22  ;;  %v921_v20 = vmul.f32 %v2587_v13, %v920_v25 }
  0xa6   : > { %vm947_vm2 = vcmp.eq.f32.partialorder %v2830_v0, 8.0  ;;  %v940_v28 = vadd.f32 %v939_v53, %v938_v10  ;;  %v931_v38 = vmul.f32 %v2661_v44, %v930_v50  ;;  %v2962_v55 = vadd.f32 %v805_v18, %v804_v40 }
  0xa7   : > { %v865_v26 = vsub.f32 %v2506_v61, %v2940_v36  ;;  %v873_v3 = vsub.f32 %v2509_v62, %v2940_v36  ;;  %v883_v30 = vsub.f32 %v2528_v16, %v2940_v36  ;;  %v893_v34 = vsub.f32 %v2545_v31, %v2940_v36 }
  0xa8   : > { %v903_v56 = vsub.f32 %v2565_v52, %v2940_v36  ;;  %v912_v35 = vadd.f32 %v911_v29, %v902_v27  ;;  %v913_v63 = vsub.f32 %v2587_v13, %v2940_v36  ;;  %v797_v62 = vmul.f32 %v2646_v9, %v796_v54 }
  0xa9   : > { %v866_v45 = vmul.f32 1.442695, %v865_v26  ;;  %v874_v37 = vmul.f32 1.442695, %v873_v3  ;;  %v884_v61 = vmul.f32 1.442695, %v883_v30  ;;  %1930 = vlog2.f32 %v802_v47 }
  0xaa   : > { %v894_v16 = vmul.f32 1.442695, %v893_v34  ;;  %v922_v31 = vadd.f32 %v921_v20, %v912_v35  ;;  %v923_v52 = vsub.f32 %v2661_v44, %v2940_v36  ;;  %v948_v13 = vsel %vm947_vm2, %v2862_v17, 0.0 }
  0xab   : > { %1932 = vpow2.f32 %v866_v45  ;;  %v904_v7 = vmul.f32 1.442695, %v903_v56  ;;  %v914_v19 = vmul.f32 1.442695, %v913_v63  ;;  %v941_v41 = vmul.f32 %v2816_v14, %v940_v28 }
  0xac   : > { %1934 = vpow2.f32 %v874_v37  ;;  %v932_v9 = vadd.f32 %v931_v38, %v922_v31  ;;  %v933_v54 = vsub.f32 %v2816_v14, %v2940_v36  ;;  %v949_v40 = vsel %vm937_vm1, %v2876_v60, 0.0 }
  0xad   : > { %1936 = vpow2.f32 %v884_v61  ;;  %v2976_v44 = vadd.f32 %v797_v62, %v2858_v15  ;;  %v943_v43 = vsub.f32 %v2837_v39, %v2940_v36  ;;  %v950_v51 = vadd.f32 %v949_v40, %v948_v13 }
  0xae   : > { %1938 = vpow2.f32 %v894_v16  ;;  %v942_v57 = vadd.f32 %v941_v41, %v932_v9  ;;  %v953_v46 = vsub.f32 %v2844_v49, %v2940_v36  ;;  %vm957_vm3 = vcmp.eq.f32.partialorder %v2830_v0, 9.0 }
  0xaf   : > { %v959_v14 = vsel %vm947_vm2, %v2876_v60, 0.0  ;;  %v2986_v6 = vpop.eup %1930  ;;  %1940 = vpow2.f32 %v904_v7  ;;  %v924_v15 = vmul.f32 1.442695, %v923_v52  ;;  %v951_v21 = vmul.f32 %v2837_v39, %v950_v51 }
  0xb0   : > { %v958_v25 = vsel %vm957_vm3, %v2862_v17, 0.0  ;;  %1942 = vpow2.f32 %v914_v19  ;;  %v934_v42 = vmul.f32 1.442695, %v933_v54  ;;  %vm967_vm4 = vcmp.eq.f32.partialorder %v2830_v0, 10.0 }
  0xb1   : > { %v1933_v1 = vpop.eup %1932  ;;  %v960_v18 = vadd.f32 %v959_v14, %v958_v25  ;;  %v952_v29 = vadd.f32 %v951_v21, %v942_v57  ;;  %v963_v50 = vsub.f32 %v2856_v11, %v2940_v36  ;;  %v968_v10 = vsel %vm967_vm4, %v2862_v17, 0.0 }
  0xb2   : > { %v1935_v22 = vpop.eup %1934  ;;  %v969_v39 = vsel %vm957_vm3, %v2876_v60, 0.0  ;;  %v944_v27 = vmul.f32 1.442695, %v943_v43  ;;  %v954_v20 = vmul.f32 1.442695, %v953_v46  ;;  %1944 = vpow2.f32 %v924_v15 }
  0xb3   : > { %v1937_v53 = vpop.eup %1936  ;;  %v876_v47 = vadd.f32 %v1935_v22, %v1933_v1  ;;  %v961_v26 = vmul.f32 %v2844_v49, %v960_v18  ;;  %v970_v30 = vadd.f32 %v969_v39, %v968_v10  ;;  %v973_v34 = vsub.f32 %v2870_v5, %v2940_v36  ;;  %v3038_v1 = vld [vmem:[%s2452_s14 + $0x100] sm:$0xff] }
  0xb4   : > { %v1939_v3 = vpop.eup %1938  ;;  %vm977_vm5 = vcmp.eq.f32.partialorder %v2830_v0, 11.0  ;;  %1946 = vpow2.f32 %v934_v42  ;;  %v964_v45 = vmul.f32 1.442695, %v963_v50  ;;  %v979_v49 = vsel %vm967_vm4, %v2876_v60, 0.0  ;;  %v3041_v42 = vld [vmem:[%s2452_s14 + $0x108] sm:$0xff] }
  0xb5   : > { %v886_v56 = vadd.f32 %v1937_v53, %v876_v47  ;;  %v962_v35 = vadd.f32 %v961_v26, %v952_v29  ;;  %v978_v63 = vsel %vm977_vm5, %v2862_v17, 0.0  ;;  %v1941_v28 = vpop.eup %1940  ;;  %v971_v37 = vmul.f32 %v2856_v11, %v970_v30  ;;  %v3058_v53 = vld [vmem:[%s2452_s14 + $0x110] sm:$0xff]  ;;  %v3072_v30 = vld [vmem:[%s2452_s14 + $0x188] sm:$0xff] }
  0xb6   : > { %v983_v61 = vsub.f32 %v2882_v4, %v2940_v36  ;;  %v1943_v38 = vpop.eup %1942  ;;  %v980_v16 = vadd.f32 %v979_v49, %v978_v63  ;;  %vm987_vm6 = vcmp.eq.f32.partialorder %v2830_v0, 12.0  ;;  %v989_v31 = vsel %vm977_vm5, %v2876_v60, 0.0 }
  0xb7   : > { %v896_v62 = vadd.f32 %v1939_v3, %v886_v56  ;;  %1948 = vpow2.f32 %v944_v27  ;;  %v972_v52 = vadd.f32 %v971_v37, %v962_v35  ;;  %v974_v13 = vmul.f32 1.442695, %v973_v34 }
  0xb8   : > { %v988_v11 = vsel %vm987_vm6, %v2862_v17, 0.0  ;;  %v981_v19 = vmul.f32 %v2870_v5, %v980_v16  ;;  %v993_v9 = vsub.f32 %v2900_v33, %v2940_v36  ;;  %v1945_v54 = vpop.eup %1944  ;;  %v3020_v40 = vmul.f32 %v2656_v24, %v2962_v55 }
  0xb9   : > { %v906_v7 = vadd.f32 %v1941_v28, %v896_v62  ;;  %v990_v41 = vadd.f32 %v989_v31, %v988_v11  ;;  %1950 = vpow2.f32 %v954_v20  ;;  %vm997_vm7 = vcmp.eq.f32.partialorder %v2830_v0, 13.0 }
  0xba   : > { %v999_v43 = vsel %vm987_vm6, %v2876_v60, 0.0  ;;  %v1947_v51 = vpop.eup %1946  ;;  %1952 = vpow2.f32 %v964_v45  ;;  %v984_v5 = vmul.f32 1.442695, %v983_v61  ;;  %v1003_v46 = vsub.f32 %v2913_v32, %v2940_v36 }
  0xbb   : > { %v916_v57 = vadd.f32 %v1943_v38, %v906_v7  ;;  %v982_v14 = vadd.f32 %v981_v19, %v972_v52  ;;  %v991_v24 = vmul.f32 %v2882_v4, %v990_v41  ;;  %v998_v55 = vsel %vm997_vm7, %v2862_v17, 0.0 }
  0xbc   : > { %vm1007_vm8 = vcmp.eq.f32.partialorder %v2830_v0, 14.0  ;;  %1954 = vpow2.f32 %v974_v13  ;;  %v994_v21 = vmul.f32 1.442695, %v993_v9  ;;  %v1000_v25 = vadd.f32 %v999_v43, %v998_v55 }
  0xbd   : > { %v926_v15 = vadd.f32 %v1945_v54, %v916_v57  ;;  %v1949_v4 = vpop.eup %1948  ;;  %v1008_v18 = vsel %vm1007_vm8, %v2862_v17, 0.0  ;;  %v1009_v22 = vsel %vm997_vm7, %v2876_v60, 0.0  ;;  %v1013_v29 = vsub.f32 %v2924_v59, %v2940_v36 }
  0xbe   : > { %vm1017_vm9 = vcmp.eq.f32.partialorder %v2830_v0, 15.0  ;;  %v810_v50 = vmul.f32 0.6931472, %v2986_v6  ;;  %1956 = vpow2.f32 %v984_v5  ;;  %v1004_v39 = vmul.f32 1.442695, %v1003_v46  ;;  %v3069_v6 = vld [vmem:[%s2452_s14 + $0x180] sm:$0xff] }
  0xbf   : > { %v936_v10 = vadd.f32 %v1947_v51, %v926_v15  ;;  %v1951_v47 = vpop.eup %1950  ;;  %v992_v27 = vadd.f32 %v991_v24, %v982_v14  ;;  %v1001_v20 = vmul.f32 %v2900_v33, %v1000_v25  ;;  %v3064_v26 = vfloor.f32 %v597_v12 }
  0xc0   : > { %v1036_v3 = vmax.f32 %v3038_v1, %v3041_v42 }
  0xc1   : > { %2182 = shalt.err (!%p2179_p13)
}
  0xc2   : > { %1782 = dma.vmem_to_hbm [thread:$0]  (%p2367_p9), %s1480_s15, 128, %s1482_s25, %s1462_s20   ;;  %v1953_v33 = vpop.eup %1952  ;;  %v946_v34 = vadd.f32 %v1949_v4, %v936_v10  ;;  %1958 = vpow2.f32 %v994_v21  ;;  %v1010_v56 = vadd.f32 %v1009_v22, %v1008_v18  ;;  %v1018_v35 = vsel %vm1017_vm9, %v2862_v17, 0.0  ;;  %v3089_v63 = vld [vmem:[%s2452_s14 + $0x118] sm:$0xff]  ;;  %v3097_v61 = vld [vmem:[%s2452_s14 + $0x190] sm:$0xff]  ;;  %v3109_v0 = vld [vmem:[%s2452_s14 + $0x120] sm:$0xff] }
  0xc3   : > { %v1014_v28 = vmul.f32 1.442695, %v1013_v29  ;;  %v1019_v45 = vsel %vm1007_vm8, %v2876_v60, 0.0  ;;  %v1029_v37 = vadd.f32 1.0, %v3064_v26  ;;  %v1039_v49 = vmax.f32 %v1036_v3, %v3058_v53  ;;  %v1955_v38 = vpop.eup %1954  ;;  %v3119_v23 = vld [vmem:[%s2452_s14 + $0x198] sm:$0xff]  ;;  %v3123_v7 = vld [vmem:[%s2452_s14 + $0x128] sm:$0xff]  ;;  %s1491_s11 = scalar_lea.hbm %s3583_s5, %s1770_s27 }
  0xc4   : > { %v3102_v17 = vmax.f32 %v598_v2, 0.0  ;;  %v3106_v62 = vadd.f32 %v3020_v40, %v2976_v44  ;;  %v956_v16 = vadd.f32 %v1951_v47, %v946_v34  ;;  %v1250_v60 = vmax.f32 %v3069_v6, %v3072_v30  ;;  %v1957_v2 = vpop.eup %1956  ;;  %v3134_v40 = vld [vmem:[%s2452_s14 + $0x130] sm:$0xff]  ;;  %v3141_v51 = vld [vmem:[%s2452_s14 + $0x1a0] sm:$0xff]  ;;  %v3146_v24 = vld [vmem:[%s2452_s14 + $0x138] sm:$0xff]  ;;  %s396_s28 = scalar_lea.vmem [#allocation11], %s2450_s29  ;;  %s1495_s24 = sshll.u32 %s1491_s11, 4  ;;  %s1496_s24 = int_to_ptr.hbm [resolvable:$true] %s1495_s24 }
  0xc5   : > { %v1002_v31 = vadd.f32 %v1001_v20, %v992_v27  ;;  %1960 = vpow2.f32 %v1004_v39  ;;  %v3115_v52 = vsub.f32 %v1029_v37, %v597_v12  ;;  %v1042_v8 = vmax.f32 %v1039_v49, %v3089_v63  ;;  %v3154_v18 = vld [vmem:[%s2452_s14 + $0x140] sm:$0xff]  ;;  %v3163_v27 = vld [vmem:[%s2452_s14 + $0x1a8] sm:$0xff]  ;;  %v3179_v49 = vld [vmem:[%s2452_s14 + $0x150] sm:$0xff]  ;;  %s1467_s30 = scalar_lea.sflag [#allocation12], %s2432_s8  ;;  %s2197_s13 = sshra.s32 %s1496_s24, 4  ;;  %s2198_s13 = int_to_ptr.hbm [resolvable:$true] %s2197_s13 }
  0xc6   : > { %v966_v44 = vadd.f32 %v1953_v33, %v956_v16  ;;  %v1011_v13 = vmul.f32 %v2913_v32, %v1010_v56  ;;  %v1020_v11 = vadd.f32 %v1019_v45, %v1018_v35  ;;  %v1253_v19 = vmax.f32 %v1250_v60, %v3097_v61  ;;  %v3168_v33 = vld [vmem:[%s2452_s14 + $0x148] sm:$0xff]  ;;  %s2199_s16 = scalar_lea.hbm %s2198_s13, 8  ;;  %s2203_s1 = scalar_lea.hbm %s3583_s5, 16 }
  0xc7   : > { %v3127_v41 = vadd.f32 %v810_v50, %v2678_v48  ;;  %1962 = vpow2.f32 %v1014_v28  ;;  %v3130_v58 = vsub.f32 1.0, %v3115_v52  ;;  %v1045_v12 = vmax.f32 %v1042_v8, %v3109_v0  ;;  %p2200_p0 = scmp.ne.s32.totalorder %s2198_s13, %s2199_s16  ;;  %p2204_p3 = scmp.lt.s32.totalorder %s2198_s13, %s3583_s5 }
  0xc8   : > { %v1959_v9 = vpop.eup %1958  ;;  %v976_v54 = vadd.f32 %v1955_v38, %v966_v44  ;;  %vm1083_vm10 = vcmp.eq.f32.partialorder %v3064_v26, 0.0  ;;  %v1256_v32 = vmax.f32 %v1253_v19, %v3119_v23  ;;  %v600_v57 = vmin.f32 %v3102_v17, 14.99  ;;  %p2205_p4 = scmp.lt.s32.totalorder %s2203_s1, %s2199_s16 }
  0xc9   : > { %v1048_v43 = vmax.f32 %v1045_v12, %v3123_v7  ;;  %v1084_v48 = vsel %vm1083_vm10, %v3115_v52, 0.0  ;;  %v1012_v46 = vadd.f32 %v1011_v13, %v1002_v31  ;;  %v1021_v14 = vmul.f32 %v2924_v59, %v1020_v11  ;;  %v3187_v13 = vld [vmem:[%s2452_s14 + $0x1b0] sm:$0xff]  ;;  %v3190_v11 = vld [vmem:[%s2452_s14 + $0x158] sm:$0xff]  ;;  %p2201_p1 = pnand %p2200_p0, %p2367_p9 }
  0xca   : > { %v986_v5 = vadd.f32 %v1957_v2, %v976_v54  ;;  %v812_v15 = vsub.f32 %v3127_v41, %v3106_v62  ;;  %vm1091_vm11 = vcmp.eq.f32.partialorder %v3064_v26, 1.0  ;;  %v1093_v25 = vsel %vm1083_vm10, %v3130_v58, 0.0  ;;  %p2206_p5 = por %p2205_p4, %p2204_p3 }
  0xcb   : > { %v1961_v55 = vpop.eup %1960  ;;  %v1051_v21 = vmax.f32 %v1048_v43, %v3134_v40  ;;  %v1085_v22 = vmul.f32 %v3038_v1, %v1084_v48  ;;  %v1092_v59 = vsel %vm1091_vm11, %v3115_v52, 0.0  ;;  %v1259_v29 = vmax.f32 %v1256_v32, %v3141_v51  ;;  %v3199_v48 = vld [vmem:[%s2452_s14 + $0x160] sm:$0xff]  ;;  %p2202_p2 = pneg %p2201_p1 }
  0xcc   : > { %v996_v4 = vadd.f32 %v1959_v9, %v986_v5  ;;  %v1094_v39 = vadd.f32 %v1093_v25, %v1092_v59  ;;  %vm1101_vm12 = vcmp.eq.f32.partialorder %v3064_v26, 2.0  ;;  %v1103_v47 = vsel %vm1091_vm11, %v3130_v58, 0.0 }
  0xcd   : > { %v1963_v50 = vpop.eup %1962  ;;  %v1054_v10 = vmax.f32 %v1051_v21, %v3146_v24  ;;  %v3165_v3 = vadd.f32 %v1021_v14, %v1012_v46  ;;  %v1102_v34 = vsel %vm1101_vm12, %v3115_v52, 0.0  ;;  %v3173_v56 = vfloor.f32 %v600_v57  ;;  %p2207_p6 = pnand %p2206_p5, %p2202_p2 }
  0xce   : > { %v1006_v20 = vadd.f32 %v1961_v55, %v996_v4  ;;  %v1095_v28 = vmul.f32 %v3041_v42, %v1094_v39  ;;  %v1104_v45 = vadd.f32 %v1103_v47, %v1102_v34  ;;  %vm1111_vm13 = vcmp.eq.f32.partialorder %v3064_v26, 3.0  ;;  %v3208_v4 = vld [vmem:[%s2452_s14 + $0x168] sm:$0xff] }
  0xcf   : > { %v1057_v35 = vmax.f32 %v1054_v10, %v3154_v18  ;;  %v1112_v38 = vsel %vm1111_vm13, %v3115_v52, 0.0  ;;  %v1113_v16 = vsel %vm1101_vm12, %v3130_v58, 0.0  ;;  %v1262_v60 = vmax.f32 %v1259_v29, %v3163_v27 }
  0xd0   : > { %v1016_v37 = vadd.f32 %v1963_v50, %v1006_v20  ;;  %v1096_v8 = vadd.f32 %v1095_v28, %v1085_v22  ;;  %v1105_v2 = vmul.f32 %v3058_v53, %v1104_v45  ;;  %v1114_v44 = vadd.f32 %v1113_v16, %v1112_v38  ;;  %v3217_v20 = vld [vmem:[%s2452_s14 + $0x1b8] sm:$0xff] }
  0xd1   : > { %v1060_v31 = vmax.f32 %v1057_v35, %v3168_v33  ;;  %vm1121_vm14 = vcmp.eq.f32.partialorder %v3064_v26, 4.0  ;;  %v1123_v19 = vsel %vm1111_vm13, %v3130_v58, 0.0  ;;  %v1243_v12 = vadd.f32 1.0, %v3173_v56  ;;  %v3220_v35 = vld [vmem:[%s2452_s14 + $0x170] sm:$0xff] }
  0xd2   : > { %1964 = vlog2.f32 %v1016_v37  ;;  %v1106_v54 = vadd.f32 %v1105_v2, %v1096_v8  ;;  %v1115_v32 = vmul.f32 %v3089_v63, %v1114_v44  ;;  %v1122_v43 = vsel %vm1121_vm14, %v3115_v52, 0.0  ;;  %v3233_v2 = vld [vmem:[%s2452_s14 + $0x178] sm:$0xff] }
  0xd3   : > { %v1063_v9 = vmax.f32 %v1060_v31, %v3179_v49  ;;  %v1124_v5 = vadd.f32 %v1123_v19, %v1122_v43  ;;  %vm1131_vm15 = vcmp.eq.f32.partialorder %v3064_v26, 5.0  ;;  %v1133_v46 = vsel %vm1121_vm14, %v3130_v58, 0.0 }
  0xd4   : > { %v1265_v14 = vmax.f32 %v1262_v60, %v3187_v13  ;;  %v1116_v21 = vadd.f32 %v1115_v32, %v1106_v54  ;;  %v1132_v25 = vsel %vm1131_vm15, %v3115_v52, 0.0  ;;  %vm1141_vm0 = vcmp.eq.f32.partialorder %v3064_v26, 6.0  ;;  %v3245_v32 = vld [vmem:[%s2452_s14 + $0x1c0] sm:$0xff] }
  0xd5   : > { %v1066_v55 = vmax.f32 %v1063_v9, %v3190_v11  ;;  %v1125_v22 = vmul.f32 %v3109_v0, %v1124_v5  ;;  %v1134_v59 = vadd.f32 %v1133_v46, %v1132_v25  ;;  %v1142_v29 = vsel %vm1141_vm0, %v3115_v52, 0.0 }
  0xd6   : > { %v1143_v50 = vsel %vm1131_vm15, %v3130_v58, 0.0  ;;  %vm1151_vm1 = vcmp.eq.f32.partialorder %v3064_v26, 7.0  ;;  %v1153_v47 = vsel %vm1141_vm0, %v3130_v58, 0.0  ;;  %v3228_v38 = vsub.f32 %v1243_v12, %v600_v57 }
  0xd7   : > { %v1069_v10 = vmax.f32 %v1066_v55, %v3199_v48  ;;  %v1144_v39 = vadd.f32 %v1143_v50, %v1142_v29  ;;  %v1126_v28 = vadd.f32 %v1125_v22, %v1116_v21  ;;  %v1135_v45 = vmul.f32 %v3123_v7, %v1134_v59 }
  0xd8   : > { %v1965_v34 = vpop.eup %1964  ;;  %v1152_v37 = vsel %vm1151_vm1, %v3115_v52, 0.0  ;;  %vm1161_vm2 = vcmp.eq.f32.partialorder %v3064_v26, 8.0  ;;  %v1163_v19 = vsel %vm1151_vm1, %v3130_v58, 0.0  ;;  %v1268_v9 = vmax.f32 %v1265_v14, %v3217_v20 }
  0xd9   : > { %v1024_v16 = vmul.f32 0.6931472, %v1965_v34  ;;  %v1072_v60 = vmax.f32 %v1069_v10, %v3208_v4  ;;  %v1145_v31 = vmul.f32 %v3134_v40, %v1144_v39  ;;  %v1154_v8 = vadd.f32 %v1153_v47, %v1152_v37  ;;  %v3276_v39 = vld [vmem:[%s2452_s14 + $0x1c8] sm:$0xff] }
  0xda   : > { %v1136_v44 = vadd.f32 %v1135_v45, %v1126_v28  ;;  %v1162_v54 = vsel %vm1161_vm2, %v3115_v52, 0.0  ;;  %vm1171_vm3 = vcmp.eq.f32.partialorder %v3064_v26, 9.0  ;;  %v3249_v46 = vsub.f32 1.0, %v3228_v38 }
  0xdb   : > { %v1025_v17 = vadd.f32 %v1024_v16, %v2940_v36  ;;  %v1075_v57 = vmax.f32 %v1072_v60, %v3220_v35  ;;  %v1155_v12 = vmul.f32 %v3146_v24, %v1154_v8  ;;  %v1164_v5 = vadd.f32 %v1163_v19, %v1162_v54 }
  0xdc   : > { %v1146_v43 = vadd.f32 %v1145_v31, %v1136_v44  ;;  %v1172_v55 = vsel %vm1171_vm3, %v3115_v52, 0.0  ;;  %v1173_v21 = vsel %vm1161_vm2, %v3130_v58, 0.0  ;;  %vm1181_vm4 = vcmp.eq.f32.partialorder %v3064_v26, 10.0 }
  0xdd   : > { %v1026_v14 = vsub.f32 %v1025_v17, %v3165_v3  ;;  %v3253_v36 = vmax.f32 %v1075_v57, %v3233_v2  ;;  %v1165_v22 = vmul.f32 %v3154_v18, %v1164_v5  ;;  %v3262_v59 = vmax.f32 %v1268_v9, %v3245_v32 }
  0xde   : > { %v1156_v25 = vadd.f32 %v1155_v12, %v1146_v43  ;;  %v1174_v41 = vadd.f32 %v1173_v21, %v1172_v55  ;;  %v1183_v44 = vsel %vm1171_vm3, %v3130_v58, 0.0  ;;  %vm1191_vm5 = vcmp.eq.f32.partialorder %v3064_v26, 11.0 }
  0xdf   : > { %v3267_v3 = vadd.f32 %v1026_v14, %v812_v15  ;;  %v1079_v29 = vsub.f32 %v3038_v1, %v3253_v36  ;;  %v1087_v50 = vsub.f32 %v3041_v42, %v3253_v36  ;;  %v1097_v10 = vsub.f32 %v3058_v53, %v3253_v36 }
  0xe0   : > { %v1107_v47 = vsub.f32 %v3089_v63, %v3253_v36  ;;  %v1117_v34 = vsub.f32 %v3109_v0, %v3253_v36  ;;  %v1127_v62 = vsub.f32 %v3123_v7, %v3253_v36  ;;  %v1137_v42 = vsub.f32 %v3134_v40, %v3253_v36 }
  0xe1   : > { %v1080_v15 = vmul.f32 1.442695, %v1079_v29  ;;  %v1088_v1 = vmul.f32 1.442695, %v1087_v50  ;;  %v1098_v28 = vmul.f32 1.442695, %v1097_v10  ;;  %v1147_v53 = vsub.f32 %v3146_v24, %v3253_v36 }
  0xe2   : > { %v1108_v45 = vmul.f32 1.442695, %v1107_v47  ;;  %v1182_v63 = vsel %vm1181_vm4, %v3115_v52, 0.0  ;;  %v1274_v0 = vmax.f32 %v3262_v59, %v3276_v39  ;;  %v1118_v7 = vmul.f32 1.442695, %v1117_v34  ;;  %v3367_v59 = vld [vmem:[%s2452_s14 + $0x1e8] sm:$0xff] }
  0xe3   : > { %1966 = vpow2.f32 %v1080_v15  ;;  %v1157_v37 = vsub.f32 %v3154_v18, %v3253_v36  ;;  %v1166_v16 = vadd.f32 %v1165_v22, %v1156_v25  ;;  %v1128_v60 = vmul.f32 1.442695, %v1127_v62 }
  0xe4   : > { %1968 = vpow2.f32 %v1088_v1  ;;  %v1167_v40 = vsub.f32 %v3168_v33, %v3253_v36  ;;  %v1175_v24 = vmul.f32 %v3168_v33, %v1174_v41  ;;  %v1138_v31 = vmul.f32 1.442695, %v1137_v42 }
  0xe5   : > { %1970 = vpow2.f32 %v1098_v28  ;;  %v1177_v8 = vsub.f32 %v3179_v49, %v3253_v36  ;;  %v1148_v19 = vmul.f32 1.442695, %v1147_v53  ;;  %v1184_v9 = vadd.f32 %v1183_v44, %v1182_v63 }
  0xe6   : > { %1972 = vpow2.f32 %v1108_v45  ;;  %v1176_v18 = vadd.f32 %v1175_v24, %v1166_v16  ;;  %v1158_v17 = vmul.f32 1.442695, %v1157_v37  ;;  %v1168_v57 = vmul.f32 1.442695, %v1167_v40 }
  0xe7   : > { %v1187_v12 = vsub.f32 %v3190_v11, %v3253_v36  ;;  %1974 = vpow2.f32 %v1118_v7  ;;  %v1185_v33 = vmul.f32 %v3179_v49, %v1184_v9  ;;  %v1192_v54 = vsel %vm1191_vm5, %v3115_v52, 0.0  ;;  %v3340_v9 = vld [vmem:[%s2452_s14 + $0x1d0] sm:$0xff] }
  0xe8   : > { %v1193_v43 = vsel %vm1181_vm4, %v3130_v58, 0.0  ;;  %1976 = vpow2.f32 %v1128_v60  ;;  %v1178_v14 = vmul.f32 1.442695, %v1177_v8  ;;  %vm1201_vm6 = vcmp.eq.f32.partialorder %v3064_v26, 12.0 }
  0xe9   : > { %v1967_v5 = vpop.eup %1966  ;;  %v1194_v55 = vadd.f32 %v1193_v43, %v1192_v54  ;;  %v1186_v25 = vadd.f32 %v1185_v33, %v1176_v18  ;;  %v1197_v22 = vsub.f32 %v3199_v48, %v3253_v36  ;;  %v1202_v49 = vsel %vm1201_vm6, %v3115_v52, 0.0 }
  0xea   : > { %v1969_v21 = vpop.eup %1968  ;;  %v1203_v29 = vsel %vm1191_vm5, %v3130_v58, 0.0  ;;  %1978 = vpow2.f32 %v1138_v31  ;;  %v1188_v47 = vmul.f32 1.442695, %v1187_v12  ;;  %v1207_v15 = vsub.f32 %v3208_v4, %v3253_v36 }
  0xeb   : > { %v1971_v50 = vpop.eup %1970  ;;  %v1090_v10 = vadd.f32 %v1969_v21, %v1967_v5  ;;  %v1195_v34 = vmul.f32 %v3190_v11, %v1194_v55  ;;  %1980 = vpow2.f32 %v1148_v19  ;;  %v1204_v41 = vadd.f32 %v1203_v29, %v1202_v49  ;;  %v3350_v5 = vld [vmem:[%s2452_s14 + $0x1d8] sm:$0xff] }
  0xec   : > { %v1973_v62 = vpop.eup %1972  ;;  %vm1211_vm7 = vcmp.eq.f32.partialorder %v3064_v26, 13.0  ;;  %1982 = vpow2.f32 %v1158_v17  ;;  %v1198_v53 = vmul.f32 1.442695, %v1197_v22  ;;  %v1213_v63 = vsel %vm1201_vm6, %v3130_v58, 0.0 }
  0xed   : > { %v1100_v1 = vadd.f32 %v1971_v50, %v1090_v10  ;;  %v1196_v28 = vadd.f32 %v1195_v34, %v1186_v25  ;;  %v1212_v42 = vsel %vm1211_vm7, %v3115_v52, 0.0  ;;  %v1975_v45 = vpop.eup %1974  ;;  %1984 = vpow2.f32 %v1168_v57 }
  0xee   : > { %v1205_v11 = vmul.f32 %v3199_v48, %v1204_v41  ;;  %v1977_v7 = vpop.eup %1976  ;;  %1986 = vpow2.f32 %v1178_v14  ;;  %v1214_v16 = vadd.f32 %v1213_v63, %v1212_v42  ;;  %v1217_v60 = vsub.f32 %v3220_v35, %v3253_v36  ;;  %v3379_v42 = vld [vmem:[%s2452_s14 + $0x1f0] sm:$0xff] }
  0xef   : > { %v1110_v37 = vadd.f32 %v1973_v62, %v1100_v1  ;;  %v1208_v24 = vmul.f32 1.442695, %v1207_v15  ;;  %vm1221_vm8 = vcmp.eq.f32.partialorder %v3064_v26, 14.0  ;;  %v1223_v48 = vsel %vm1211_vm7, %v3130_v58, 0.0 }
  0xf0   : > { %v1206_v40 = vadd.f32 %v1205_v11, %v1196_v28  ;;  %v1979_v31 = vpop.eup %1978  ;;  %v1215_v44 = vmul.f32 %v3208_v4, %v1214_v16  ;;  %v1218_v19 = vmul.f32 1.442695, %v1217_v60  ;;  %v1222_v18 = vsel %vm1221_vm8, %v3115_v52, 0.0 }
  0xf1   : > { %v1120_v8 = vadd.f32 %v1975_v45, %v1110_v37  ;;  %v1981_v17 = vpop.eup %1980  ;;  %1988 = vpow2.f32 %v1188_v47  ;;  %v1224_v57 = vadd.f32 %v1223_v48, %v1222_v18  ;;  %v1227_v12 = vsub.f32 %v3233_v2, %v3253_v36 }
  0xf2   : > { %vm1231_vm9 = vcmp.eq.f32.partialorder %v3064_v26, 15.0  ;;  %v1983_v33 = vpop.eup %1982  ;;  %1990 = vpow2.f32 %v1198_v53  ;;  %v1233_v43 = vsel %vm1221_vm8, %v3130_v58, 0.0  ;;  %v1216_v55 = vadd.f32 %v1215_v44, %v1206_v40 }
  0xf3   : > { %v1130_v54 = vadd.f32 %v1977_v7, %v1120_v8  ;;  %v1232_v4 = vsel %vm1231_vm9, %v3115_v52, 0.0  ;;  %v1985_v14 = vpop.eup %1984  ;;  %1992 = vpow2.f32 %v1208_v24  ;;  %v1225_v21 = vmul.f32 %v3220_v35, %v1224_v57  ;;  %v3358_v52 = vld [vmem:[%s2452_s14 + $0x1e0] sm:$0xff]  ;;  %v3392_v24 = vld [vmem:[%s2452_s14 + $0x1f8] sm:$0xff]  ;;  %s1493_s14 = sshll.u32 %s396_s28, 4  ;;  %s1494_s14 = int_to_ptr.vmem [resolvable:$true] %s1493_s14 }
  0xf4   : > { %v1277_v25 = vmax.f32 %v1274_v0, %v3340_v9  ;;  %v1987_v22 = vpop.eup %1986  ;;  %1994 = vpow2.f32 %v1218_v19  ;;  %vm1297_vm10 = vcmp.eq.f32.partialorder %v3173_v56, 0.0  ;;  %vm1305_vm11 = vcmp.eq.f32.partialorder %v3173_v56, 1.0 }
  0xf5   : > { %v1140_v49 = vadd.f32 %v1979_v31, %v1130_v54  ;;  %v1228_v26 = vmul.f32 1.442695, %v1227_v12  ;;  %v3362_v58 = vadd.f32 %v1233_v43, %v1232_v4  ;;  %vm1315_vm12 = vcmp.eq.f32.partialorder %v3173_v56, 2.0 }
  0xf6   : > { %v1280_v35 = vmax.f32 %v1277_v25, %v3350_v5  ;;  %v1298_v0 = vsel %vm1297_vm10, %v3228_v38, 0.0  ;;  %v1306_v50 = vsel %vm1305_vm11, %v3228_v38, 0.0  ;;  %v1307_v10 = vsel %vm1297_vm10, %v3249_v46, 0.0 }
  0xf7   : > { %v1150_v29 = vadd.f32 %v1981_v17, %v1140_v49  ;;  %v1989_v47 = vpop.eup %1988  ;;  %v3374_v34 = vadd.f32 %v1225_v21, %v1216_v55  ;;  %v1299_v41 = vmul.f32 %v3069_v6, %v1298_v0  ;;  %v1308_v15 = vadd.f32 %v1307_v10, %v1306_v50 }
  0xf8   : > { %v1283_v62 = vmax.f32 %v1280_v35, %v3358_v52  ;;  %v1991_v1 = vpop.eup %1990  ;;  %v1316_v45 = vsel %vm1315_vm12, %v3228_v38, 0.0  ;;  %v1317_v53 = vsel %vm1305_vm11, %v3249_v46, 0.0  ;;  %vm1325_vm13 = vcmp.eq.f32.partialorder %v3173_v56, 3.0 }
  0xf9   : > { %v1160_v28 = vadd.f32 %v1983_v33, %v1150_v29  ;;  %v1993_v11 = vpop.eup %1992  ;;  %v1309_v7 = vmul.f32 %v3072_v30, %v1308_v15  ;;  %v1318_v37 = vadd.f32 %v1317_v53, %v1316_v45  ;;  %v1326_v16 = vsel %vm1325_vm13, %v3228_v38, 0.0 }
  0xfa   : > { %v1286_v63 = vmax.f32 %v1283_v62, %v3367_v59  ;;  %v1995_v60 = vpop.eup %1994  ;;  %v1327_v48 = vsel %vm1315_vm12, %v3249_v46, 0.0  ;;  %vm1335_vm14 = vcmp.eq.f32.partialorder %v3173_v56, 4.0  ;;  %v1337_v31 = vsel %vm1325_vm13, %v3249_v46, 0.0 }
  0xfb   : > { %v1170_v40 = vadd.f32 %v1985_v14, %v1160_v28  ;;  %v1310_v44 = vadd.f32 %v1309_v7, %v1299_v41  ;;  %v1319_v19 = vmul.f32 %v3097_v61, %v1318_v37  ;;  %v1328_v18 = vadd.f32 %v1327_v48, %v1326_v16 }
  0xfc   : > { %v1289_v8 = vmax.f32 %v1286_v63, %v3379_v42  ;;  %1996 = vpow2.f32 %v1228_v26  ;;  %v1336_v57 = vsel %vm1335_vm14, %v3228_v38, 0.0  ;;  %vm1345_vm15 = vcmp.eq.f32.partialorder %v3173_v56, 5.0 }
  0xfd   : > { %v1180_v17 = vadd.f32 %v1987_v22, %v1170_v40  ;;  %v1320_v33 = vadd.f32 %v1319_v19, %v1310_v44  ;;  %v1329_v54 = vmul.f32 %v3119_v23, %v1328_v18  ;;  %v1338_v4 = vadd.f32 %v1337_v31, %v1336_v57 }
  0xfe   : > { %v3406_v12 = vmax.f32 %v1289_v8, %v3392_v24  ;;  %v1346_v14 = vsel %vm1345_vm15, %v3228_v38, 0.0  ;;  %v1347_v55 = vsel %vm1335_vm14, %v3249_v46, 0.0  ;;  %vm1355_vm0 = vcmp.eq.f32.partialorder %v3173_v56, 6.0 }
  0xff   : > { %v1190_v43 = vadd.f32 %v1989_v47, %v1180_v17  ;;  %v1330_v35 = vadd.f32 %v1329_v54, %v1320_v33  ;;  %v1339_v0 = vmul.f32 %v3141_v51, %v1338_v4  ;;  %v1356_v53 = vsel %vm1355_vm0, %v3228_v38, 0.0 }
 0x100   : > { %v1293_v21 = vsub.f32 %v3069_v6, %v3406_v12  ;;  %v1301_v25 = vsub.f32 %v3072_v30, %v3406_v12  ;;  %v1311_v22 = vsub.f32 %v3097_v61, %v3406_v12  ;;  %v1321_v49 = vsub.f32 %v3119_v23, %v3406_v12 }
 0x101   : > { %v1200_v26 = vadd.f32 %v1991_v1, %v1190_v43  ;;  %v1331_v29 = vsub.f32 %v3141_v51, %v3406_v12  ;;  %v1341_v6 = vsub.f32 %v3163_v27, %v3406_v12  ;;  %v1357_v23 = vsel %vm1345_vm15, %v3249_v46, 0.0 }
 0x102   : > { %v1294_v50 = vmul.f32 1.442695, %v1293_v21  ;;  %v1302_v10 = vmul.f32 1.442695, %v1301_v25  ;;  %v1312_v47 = vmul.f32 1.442695, %v1311_v22  ;;  %v1997_v30 = vpop.eup %1996  ;;  %v1340_v15 = vadd.f32 %v1339_v0, %v1330_v35 }
 0x103   : > { %v1210_v62 = vadd.f32 %v1993_v11, %v1200_v26  ;;  %v1322_v41 = vmul.f32 1.442695, %v1321_v49  ;;  %v1332_v61 = vmul.f32 1.442695, %v1331_v29  ;;  %v1348_v1 = vadd.f32 %v1347_v55, %v1346_v14 }
 0x104   : > { %1998 = vpow2.f32 %v1294_v50  ;;  %v1351_v51 = vsub.f32 %v3187_v13, %v3406_v12  ;;  %v1342_v45 = vmul.f32 1.442695, %v1341_v6  ;;  %v1358_v63 = vadd.f32 %v1357_v23, %v1356_v53 }
 0x105   : > { %v1220_v28 = vadd.f32 %v1995_v60, %v1210_v62  ;;  %2000 = vpow2.f32 %v1302_v10  ;;  %v1349_v11 = vmul.f32 %v3163_v27, %v1348_v1  ;;  %v1361_v7 = vsub.f32 %v3217_v20, %v3406_v12 }
 0x106   : > { %2002 = vpow2.f32 %v1312_v47  ;;  %v1352_v16 = vmul.f32 1.442695, %v1351_v51  ;;  %vm1365_vm1 = vcmp.eq.f32.partialorder %v3173_v56, 7.0  ;;  %v1359_v40 = vmul.f32 %v3187_v13, %v1358_v63 }
 0x107   : > { %v1230_v37 = vadd.f32 %v1997_v30, %v1220_v28  ;;  %2004 = vpow2.f32 %v1322_v41  ;;  %v1350_v60 = vadd.f32 %v1349_v11, %v1340_v15  ;;  %v1366_v48 = vsel %vm1365_vm1, %v3228_v38, 0.0 }
 0x108   : > { %2006 = vpow2.f32 %v1332_v61  ;;  %v1367_v27 = vsel %vm1355_vm0, %v3249_v46, 0.0  ;;  %v1371_v31 = vsub.f32 %v3245_v32, %v3406_v12  ;;  %vm1375_vm2 = vcmp.eq.f32.partialorder %v3173_v56, 8.0 }
 0x109   : > { %2008 = vlog2.f32 %v1230_v37  ;;  %v1235_v44 = vmul.f32 %v3233_v2, %v3362_v58  ;;  %v1362_v19 = vmul.f32 1.442695, %v1361_v7  ;;  %v1368_v13 = vadd.f32 %v1367_v27, %v1366_v48 }
 0x10a   : > { %v1999_v8 = vpop.eup %1998  ;;  %v1376_v18 = vsel %vm1375_vm2, %v3228_v38, 0.0  ;;  %2010 = vpow2.f32 %v1342_v45  ;;  %v1360_v57 = vadd.f32 %v1359_v40, %v1350_v60  ;;  %v1377_v33 = vsel %vm1365_vm1, %v3249_v46, 0.0 }
 0x10b   : > { %v2001_v17 = vpop.eup %2000  ;;  %v1381_v54 = vsub.f32 %v3276_v39, %v3406_v12  ;;  %v1369_v2 = vmul.f32 %v3217_v20, %v1368_v13  ;;  %v1378_v58 = vadd.f32 %v1377_v33, %v1376_v18  ;;  %2012 = vpow2.f32 %v1352_v16 }
 0x10c   : > { %v2003_v4 = vpop.eup %2002  ;;  %v1304_v43 = vadd.f32 %v2001_v17, %v1999_v8  ;;  %v1372_v55 = vmul.f32 1.442695, %v1371_v31  ;;  %vm1385_vm3 = vcmp.eq.f32.partialorder %v3173_v56, 9.0  ;;  %v1387_v21 = vsel %vm1375_vm2, %v3249_v46, 0.0 }
 0x10d   : > { %v2005_v14 = vpop.eup %2004  ;;  %v1236_v22 = vadd.f32 %v1235_v44, %v3374_v34  ;;  %2014 = vpow2.f32 %v1362_v19  ;;  %v1386_v26 = vsel %vm1385_vm3, %v3228_v38, 0.0  ;;  %v1370_v35 = vadd.f32 %v1369_v2, %v1360_v57 }
 0x10e   : > { %v2007_v25 = vpop.eup %2006  ;;  %v1314_v49 = vadd.f32 %v2003_v4, %v1304_v43  ;;  %v1382_v29 = vmul.f32 1.442695, %v1381_v54  ;;  %v1391_v0 = vsub.f32 %v3340_v9, %v3406_v12  ;;  %vm1395_vm4 = vcmp.eq.f32.partialorder %v3173_v56, 10.0 }
 0x10f   : > { %v2009_v20 = vpop.eup %2008  ;;  %v1379_v47 = vmul.f32 %v3245_v32, %v1378_v58  ;;  %v1388_v6 = vadd.f32 %v1387_v21, %v1386_v26  ;;  %2016 = vpow2.f32 %v1372_v55  ;;  %v1401_v62 = vsub.f32 %v3350_v5, %v3406_v12 }
 0x110   : > { %v1238_v50 = vmul.f32 0.6931472, %v2009_v20  ;;  %v1324_v10 = vadd.f32 %v2005_v14, %v1314_v49  ;;  %v2011_v34 = vpop.eup %2010  ;;  %v1392_v30 = vmul.f32 1.442695, %v1391_v0  ;;  %v1396_v23 = vsel %vm1395_vm4, %v3228_v38, 0.0 }
 0x111   : > { %v1397_v15 = vsel %vm1385_vm3, %v3249_v46, 0.0  ;;  %v2013_v1 = vpop.eup %2012  ;;  %2018 = vpow2.f32 %v1382_v29  ;;  %v1402_v32 = vmul.f32 1.442695, %v1401_v62  ;;  %vm1405_vm5 = vcmp.eq.f32.partialorder %v3173_v56, 11.0 }
 0x112   : > { %v1239_v41 = vadd.f32 %v1238_v50, %v3253_v36  ;;  %v1334_v61 = vadd.f32 %v2007_v25, %v1324_v10  ;;  %v1380_v53 = vadd.f32 %v1379_v47, %v1370_v35  ;;  %v1389_v36 = vmul.f32 %v3276_v39, %v1388_v6 }
 0x113   : > { %v2015_v51 = vpop.eup %2014  ;;  %2020 = vpow2.f32 %v1392_v30  ;;  %v1398_v11 = vadd.f32 %v1397_v15, %v1396_v23  ;;  %v1411_v63 = vsub.f32 %v3358_v52, %v3406_v12  ;;  %v1406_v16 = vsel %vm1405_vm5, %v3228_v38, 0.0 }
 0x114   : > { %v1240_v28 = vsub.f32 %v1239_v41, %v1236_v22  ;;  %v1344_v45 = vadd.f32 %v2011_v34, %v1334_v61  ;;  %v1407_v60 = vsel %vm1395_vm4, %v3249_v46, 0.0  ;;  %2022 = vpow2.f32 %v1402_v32 }
 0x115   : > { %v2017_v40 = vpop.eup %2016  ;;  %v1412_v39 = vmul.f32 1.442695, %v1411_v63  ;;  %vm1415_vm6 = vcmp.eq.f32.partialorder %v3173_v56, 12.0  ;;  %v1421_v48 = vsub.f32 %v3367_v59, %v3406_v12  ;;  %v1399_v8 = vmul.f32 %v3340_v9, %v1398_v11 }
 0x116   : > { %v3488_v7 = vadd.f32 %v1240_v28, %v3267_v3  ;;  %v1354_v37 = vadd.f32 %v2013_v1, %v1344_v45  ;;  %v1390_v3 = vadd.f32 %v1389_v36, %v1380_v53  ;;  %v1408_v44 = vadd.f32 %v1407_v60, %v1406_v16 }
 0x117   : > { %v2019_v31 = vpop.eup %2018  ;;  %2024 = vpow2.f32 %v1412_v39  ;;  %v1422_v19 = vmul.f32 1.442695, %v1421_v48  ;;  %v1416_v18 = vsel %vm1415_vm6, %v3228_v38, 0.0  ;;  %v1417_v17 = vsel %vm1405_vm5, %v3249_v46, 0.0 }
 0x118   : > { %v1364_v27 = vadd.f32 %v2015_v51, %v1354_v37  ;;  %v1431_v57 = vsub.f32 %v3379_v42, %v3406_v12  ;;  %vm1425_vm7 = vcmp.eq.f32.partialorder %v3173_v56, 13.0  ;;  %v1441_v9 = vsub.f32 %v3392_v24, %v3406_v12 }
 0x119   : > { %v2021_v33 = vpop.eup %2020  ;;  %2026 = vpow2.f32 %v1422_v19  ;;  %v1400_v2 = vadd.f32 %v1399_v8, %v1390_v3  ;;  %v1409_v58 = vmul.f32 %v3350_v5, %v1408_v44  ;;  %v1418_v14 = vadd.f32 %v1417_v17, %v1416_v18 }
 0x11a   : > { %v1374_v13 = vadd.f32 %v2017_v40, %v1364_v27  ;;  %v1432_v4 = vmul.f32 1.442695, %v1431_v57  ;;  %v2023_v43 = vpop.eup %2022  ;;  %v1442_v55 = vmul.f32 1.442695, %v1441_v9  ;;  %v1426_v25 = vsel %vm1425_vm7, %v3228_v38, 0.0 }
 0x11b   : > { %v1427_v22 = vsel %vm1415_vm6, %v3249_v46, 0.0  ;;  %vm1435_vm8 = vcmp.eq.f32.partialorder %v3173_v56, 14.0  ;;  %v1410_v35 = vadd.f32 %v1409_v58, %v1400_v2  ;;  %v1419_v5 = vmul.f32 %v3358_v52, %v1418_v14 }
 0x11c   : > { %v1384_v54 = vadd.f32 %v2019_v31, %v1374_v13  ;;  %2028 = vpow2.f32 %v1432_v4  ;;  %v1428_v29 = vadd.f32 %v1427_v22, %v1426_v25  ;;  %v1436_v50 = vsel %vm1435_vm8, %v3228_v38, 0.0 }
 0x11d   : > { %v2025_v49 = vpop.eup %2024  ;;  %2030 = vpow2.f32 %v1442_v55  ;;  %v1437_v10 = vsel %vm1425_vm7, %v3249_v46, 0.0  ;;  %vm1445_vm9 = vcmp.eq.f32.partialorder %v3173_v56, 15.0  ;;  %v1420_v30 = vadd.f32 %v1419_v5, %v1410_v35 }
 0x11e   : > { %v1394_v21 = vadd.f32 %v2021_v33, %v1384_v54  ;;  %v1429_v62 = vmul.f32 %v3367_v59, %v1428_v29  ;;  %v1438_v41 = vadd.f32 %v1437_v10, %v1436_v50  ;;  %v1446_v61 = vsel %vm1445_vm9, %v3228_v38, 0.0 }
 0x11f   : > { %v2027_v20 = vpop.eup %2026  ;;  %v1447_v23 = vsel %vm1435_vm8, %v3249_v46, 0.0 }
 0x120   : > { %v1404_v26 = vadd.f32 %v2023_v43, %v1394_v21  ;;  %v1430_v1 = vadd.f32 %v1429_v62, %v1420_v30  ;;  %v1439_v32 = vmul.f32 %v3379_v42, %v1438_v41  ;;  %v1448_v51 = vadd.f32 %v1447_v23, %v1446_v61  ;;  %v2034_v42 = vld [vmem:[%s349_s17] sm:$0xff] }
 0x122   : > { %v1414_v0 = vadd.f32 %v2025_v49, %v1404_v26  ;;  %v2029_v47 = vpop.eup %2028  ;;  %v1440_v28 = vadd.f32 %v1439_v32, %v1430_v1  ;;  %v1449_v59 = vmul.f32 %v3392_v24, %v1448_v51 }
 0x123   : > { %v2031_v34 = vpop.eup %2030 }
 0x124   : > { %v1424_v6 = vadd.f32 %v2027_v20, %v1414_v0  ;;  %v1450_v53 = vadd.f32 %v1449_v59, %v1440_v28 }
 0x126   : > { %v1434_v52 = vadd.f32 %v2029_v47, %v1424_v6 }
 0x128   : > { %v1444_v15 = vadd.f32 %v2031_v34, %v1434_v52 }
 0x12a   : > { %2032 = vlog2.f32 %v1444_v15 }
 0x130   : > { %v2033_v45 = vpop.eup %2032 }
 0x131   : > { %v1452_v36 = vmul.f32 0.6931472, %v2033_v45 }
 0x133   : > { %v1453_v38 = vadd.f32 %v1452_v36, %v3406_v12 }
 0x135   : > { %v1454_v11 = vsub.f32 %v1453_v38, %v1450_v53 }
 0x137   : > { %v1455_v56 = vadd.f32 %v1454_v11, %v3488_v7 }
 0x139   : > { %v1457_v46 = vmul.f32 0.25, %v1455_v56 }
 0x13b   : > { %v1458_v24 = vmul.f32 %v2034_v42, %v1457_v46 }
 0x13d   : > { %1460 = vst [vmem:[%s396_s28] sm:$0xff] %v1458_v24 }
 0x13e   : > { %2210 = shalt.err (!%p2207_p6)
}
 0x13f   : > { %1783 = dma.vmem_to_hbm [thread:$0]  (%p2367_p9), %s1494_s14, 128, %s1496_s24, %s1467_s30  }
 0x140 PF: > { %s3614_s8 = sld [smem:[#allocation18_spill]]  ;;  %p1800_p7 = pnand %p1680_p12, %p2374_p11 }
 0x141   : > { %s3616_s17 = sld [smem:[#allocation21_spill]] }
 0x142   : > { %p1801_p8 = pneg %p1800_p7 }
 0x146   : > { %s1507_s20 = sand.u32 1, %s3614_s8  }
 0x147   : > { %s1508_s7 = scalar_lea.sflag [#allocation4], %s1507_s20 }
 0x148   : > { %2248 = dma.done.wait (%p1801_p8), %s1508_s7, 128  }
 0x149   : > { %2250 = vsyncadd (%p1801_p8), %s1508_s7, 4294967168  ;;  %s1518_s12 = scalar_lea.sflag [#allocation12], %s1507_s20 }
 0x14a   : > { %2252 = dma.done.wait (%p1801_p8), %s1518_s12, 128  }
 0x14b   : > { %2254 = vsyncadd (%p1801_p8), %s1518_s12, 4294967168  ;;  %s31_s23 = sadd.s32 1, %s3616_s17   ;;  %s3617_s6 = sld [smem:[#allocation19_spill]] }
 0x14c   : > { %p28_p10 = scmp.ge.s32.totalorder %s31_s23, 4   ;;  %s3618_s20 = sld [smem:[#allocation23_spill]] }
 0x14d   : > { %s3619_s21 = sld [smem:[#allocation20_spill]]  ;;  %s3621_s18 = smov %s2261_s19 }
 0x14e   : > { %s3620_s22 = sld [smem:[#allocation22_spill]]  ;;  %30 = sbr.rel (!%p28_p10) target bundleno = 15 (0xf), region = 210 }
 0x151   : > { %s3622_s19 = smov %s3617_s6 }
 0x153   :  { %1524 = vsyncpa [#allocation3], 1 }
 0x154   :  { %1526 = vsyncpa [#allocation3 + $0x1], 1 }
 0x155   :  { %1527 = vsyncpa [#allocation6], 1 }
 0x156   :  { %1529 = vsyncpa [#allocation6 + $0x1], 1 }
 0x157   :  { %1530 = vsyncpa [#allocation9], 1 }
 0x158   :  { %1532 = vsyncpa [#allocation9 + $0x1], 1 }
 0x159   :  { %1533 = vsyncpa [#allocation4], 1 }
 0x15a   :  { %1535 = vsyncpa [#allocation4 + $0x1], 1 }
 0x15b   :  { %1536 = vsyncpa [#allocation12], 1 }
 0x15c   :  { %1538 = vsyncpa [#allocation12 + $0x1], 1 }

</bundles_post_ra>
